<compile_context>
chip_gen: v6e
topology: v6e:2x2x1
jax: 0.10.0
libtpu: 0.0.40
codegen_flags: <defaults>
</compile_context>

<pallas_src>
import functools

import jax
import jax.numpy as jnp
from jax.experimental import pallas as pl
from jax.experimental.pallas import tpu as pltpu


# ------------------------------ Pallas kernel --------------------------------

def _make_stem_kernel(H, W, cin, cmid, cout, with_maxpool):
    ho, wo = H // 2, W // 2          # spatial dims after the stride-2 conv
    hp, wp = ho // 2, wo // 2        # after the 2x2 pool
    m = ho * wo

    def kernel(x_ref, w1_ref, b1_ref, w2_ref, b2_ref, w3_ref, b3_ref,
               o_ref, buf1, buf2):

        def conv3x3(tap, w_ref, b_ref, c_in, c_out):
            # 9 accumulated bf16 MXU dots (f32 accumulate) -- no (M, 9C)
            # patch matrix, no lane-concat, no f32->bf16 cast pass.
            acc = jnp.zeros((m, c_out), jnp.float32)
            for kh in range(3):
                for kw in range(3):
                    lhs = tap(kh, kw).reshape(m, c_in)            # bf16 tap
                    acc += jnp.dot(lhs, w_ref[kh * 3 + kw],
                                   preferred_element_type=jnp.float32)
            # Folded-BN shift + ReLU epilogue in f32.
            return jnp.maximum(acc + b_ref[...], 0.0)             # (M, c_out)

        def zero_border(buf, c):
            # Re-zero only the 1-pixel halo; the interior is fully rewritten
            # below, so no full-buffer zero pass is needed.
            zr = jnp.zeros((1, wo + 2, c), jnp.bfloat16)
            zc = jnp.zeros((ho + 2, 1, c), jnp.bfloat16)
            buf[0:1, :, :] = zr
            buf[ho + 1:ho + 2, :, :] = zr
            buf[:, 0:1, :] = zc
            buf[:, wo + 1:wo + 2, :] = zc

        # ---- conv1 (stride 2): taps from the phase-split padded input, every
        #      read is a contiguous static slice. -----------------------------
        def tap1(kh, kw):
            p = 2 * (kh % 2) + (kw % 2)
            return x_ref[0, p, kh // 2:kh // 2 + ho, kw // 2:kw // 2 + wo, :]

        y1 = conv3x3(tap1, w1_ref, b1_ref, cin, cmid)             # (M, cmid) f32
        zero_border(buf1, cmid)
        buf1[1:1 + ho, 1:1 + wo, :] = (
            y1.astype(jnp.bfloat16).reshape(ho, wo, cmid))

        # ---- conv2 / conv3 (stride 1): taps are contiguous slices of the
        #      bf16 zero-halo VMEM scratch (no HBM round trip). ---------------
        def halo_tap(src):
            return lambda kh, kw: src[kh:kh + ho, kw:kw + wo, :]

        y2 = conv3x3(halo_tap(buf1), w2_ref, b2_ref, cmid, cmid)
        zero_border(buf2, cmid)
        buf2[1:1 + ho, 1:1 + wo, :] = (
            y2.astype(jnp.bfloat16).reshape(ho, wo, cmid))

        y3 = conv3x3(halo_tap(buf2), w3_ref, b3_ref, cmid, cout)  # (M, cout) f32

        if with_maxpool:
            # Fused 2x2/stride-2 max-pool entirely in registers: view the
            # (M, cout) result as (hp, 2, wp, 2, cout) and reduce the window.
            y5 = y3.reshape(hp, 2, wp, 2, cout)
            pooled = jnp.max(jnp.max(y5, axis=3), axis=1)         # (hp, wp, cout)
            o_ref[0] = pooled.astype(o_ref.dtype)
        else:
            o_ref[0] = y3.reshape(ho, wo, cout).astype(o_ref.dtype)

    return kernel


# ------------------------------ JAX wrapper -----------------------------------

def _fold_bn(p, eps=1e-5):
    """Fold BN(eval) into per-tap bf16 weights + an f32 shift vector.

    The scale*W product is computed in f32 and only then cast to bf16.
    Returns w of shape (9, Cin, Cout) (tap index = kh*3 + kw) and shift (1, Cout).
    """
    w = p["weight"]                                               # (Cout, Cin, 3, 3)
    scale = p["gamma"] / jnp.sqrt(p["var"] + eps)
    shift = p["beta"] - p["mean"] * scale
    wk = jnp.transpose(w, (2, 3, 1, 0)).reshape(9, w.shape[1], w.shape[0])
    wk = (wk * scale[None, None, :]).astype(jnp.bfloat16)
    return wk, shift.reshape(1, -1).astype(jnp.float32)


@functools.partial(jax.jit, static_argnames=("with_maxpool",))
def deep_stem_forward(x_nchw, params, with_maxpool=True):
    """DeepStem forward. Input/output are NCHW to mirror the PyTorch module."""
    x = jnp.transpose(x_nchw, (0, 2, 3, 1))                       # NCHW -> NHWC
    n, h, w, cin = x.shape
    assert h % 4 == 0 and w % 4 == 0, "wrapper assumes H, W divisible by 4"
    cmid = params[0]["weight"].shape[0]
    cout = params[2]["weight"].shape[0]
    ho, wo = h // 2, w // 2
    hp, wp = ho // 2, wo // 2

    # Single zero-pad of the raw input + split into the 4 (row,col) parity
    # phases so the stride-2 conv1 taps become contiguous slices in-kernel.
    xp = jnp.pad(x, ((0, 0), (1, 1), (1, 1), (0, 0)))
    phases = jnp.stack([xp[:, bh::2, bw::2, :]
                        for bh in (0, 1) for bw in (0, 1)], axis=1)
    phases = phases.astype(jnp.bfloat16)                          # (N, 4, hq, wq, cin)
    hq, wq = phases.shape[2], phases.shape[3]

    w1, b1 = _fold_bn(params[0])
    w2, b2 = _fold_bn(params[1])
    w3, b3 = _fold_bn(params[2])

    if with_maxpool:
        out_shape = jax.ShapeDtypeStruct((n, hp, wp, cout), jnp.float32)
        out_spec = pl.BlockSpec((1, hp, wp, cout), lambda i: (i, 0, 0, 0))
    else:
        out_shape = jax.ShapeDtypeStruct((n, ho, wo, cout), jnp.float32)
        out_spec = pl.BlockSpec((1, ho, wo, cout), lambda i: (i, 0, 0, 0))

    def const_spec(shape):
        return pl.BlockSpec(shape, lambda i: (0,) * len(shape))

    kernel = _make_stem_kernel(h, w, cin, cmid, cout, with_maxpool)

    out = pl.pallas_call(
        kernel,
        out_shape=out_shape,
        grid_spec=pltpu.PrefetchScalarGridSpec(
            num_scalar_prefetch=0,
            grid=(n,),
            in_specs=[
                pl.BlockSpec((1, 4, hq, wq, cin), lambda i: (i, 0, 0, 0, 0)),
                const_spec(w1.shape), const_spec(b1.shape),
                const_spec(w2.shape), const_spec(b2.shape),
                const_spec(w3.shape), const_spec(b3.shape),
            ],
            out_specs=out_spec,
            scratch_shapes=[
                pltpu.VMEM((ho + 2, wo + 2, cmid), jnp.bfloat16),  # layer-1 (haloed)
                pltpu.VMEM((ho + 2, wo + 2, cmid), jnp.bfloat16),  # layer-2 (haloed)
            ]),
        compiler_params=pltpu.CompilerParams(
            dimension_semantics=("parallel",),
            vmem_limit_bytes=32 * 1024 * 1024),
    )(phases, w1, b1, w2, b2, w3, b3)

    return jnp.transpose(out, (0, 3, 1, 2))                       # NHWC -> NCHW


# ------------------------------ params & reference ----------------------------

def init_deepstem_params(key, inplanes, planes, kernel_size=3):
    """Deterministic synthetic parameters matching DeepStem.__init__ shapes."""
    midplanes = planes // 2
    layer_dims = [
        (inplanes, midplanes, kernel_size),   # conv1[0], stride 2
        (midplanes, midplanes, 3),            # conv1[1], stride 1
        (midplanes, planes, 3),               # conv1[2], stride 1
    ]
    params = []
    for (cin, cout, k) in layer_dims:
        key, kw, kg, kb, km, kv = jax.random.split(key, 6)
        params.append(dict(
            weight=jax.random.normal(kw, (cout, cin, k, k), jnp.float32) * 0.1,
            gamma=1.0 + 0.1 * jax.random.normal(kg, (cout,), jnp.float32),
            beta=0.1 * jax.random.normal(kb, (cout,), jnp.float32),
            mean=0.05 * jax.random.normal(km, (cout,), jnp.float32),
            var=jnp.abs(jax.random.normal(kv, (cout,), jnp.float32)) * 0.2 + 0.8,
        ))
    return params


def _reference_forward(x_nchw, params, with_maxpool=True):
    """Pure lax reference (conv_general_dilated) for validation."""
    x = x_nchw
    strides = (2, 1, 1)
    eps = 1e-5
    for p, s in zip(params, strides):
        k = p["weight"].shape[-1]
        pad = (k - 1) // 2
        x = jax.lax.conv_general_dilated(
            x, p["weight"], window_strides=(s, s),
            padding=((pad, pad), (pad, pad)),
            dimension_numbers=("NCHW", "OIHW", "NCHW"))
        scale = p["gamma"] / jnp.sqrt(p["var"] + eps)
        shift = p["beta"] - p["mean"] * scale
        x = x * scale[None, :, None, None] + shift[None, :, None, None]
        x = jnp.maximum(x, 0.0)
    if with_maxpool:
        x = jax.lax.reduce_window(
            x, -jnp.inf, jax.lax.max,
            window_dimensions=(1, 1, 2, 2), window_strides=(1, 1, 2, 2),
            padding="VALID")
    return x


# ---------------------------------- main ---------------------------------------

if __name__ == "__main__":
    key = jax.random.PRNGKey(0)
    k_x, k_p = jax.random.split(key)

    batch, inplanes, planes, spatial = 2, 4, 32, 16
    x = jax.random.normal(k_x, (batch, inplanes, spatial, spatial), jnp.float32)
    params = init_deepstem_params(k_p, inplanes, planes)

    out = jax.block_until_ready(deep_stem_forward(x, params, with_maxpool=True))

    expected_shape = (batch, planes, spatial // 4, spatial // 4)
    assert out.shape == expected_shape, (out.shape, expected_shape)

    ref = _reference_forward(x, params, with_maxpool=True)
    max_err = float(jnp.max(jnp.abs(out - ref)))
    assert jnp.allclose(out, ref, rtol=2e-2, atol=2e-2), max_err

    print("KERNEL_OK")
</pallas_src>

<mosaic_0001>
module attributes {stable_mosaic.version = 11 : i64} {
  func.func @kernel(%arg0: i32, %arg1: memref<1x4x9x9x4xbf16, #tpu.memory_space<vmem>>, %arg2: memref<9x4x16xbf16, #tpu.memory_space<vmem>>, %arg3: memref<1x16xf32, #tpu.memory_space<vmem>>, %arg4: memref<9x16x16xbf16, #tpu.memory_space<vmem>>, %arg5: memref<1x16xf32, #tpu.memory_space<vmem>>, %arg6: memref<9x16x32xbf16, #tpu.memory_space<vmem>>, %arg7: memref<1x32xf32, #tpu.memory_space<vmem>>, %arg8: memref<1x4x4x32xf32, #tpu.memory_space<vmem>>, %arg9: memref<10x10x16xbf16, #tpu.memory_space<vmem>>, %arg10: memref<10x10x16xbf16, #tpu.memory_space<vmem>>) attributes {dimension_semantics = [#tpu.dimension_semantics<parallel>], iteration_bounds = array<i64: 2>, scalar_prefetch = 0 : i64, scratch_operands = 2 : i64, tpu.core_type = #tpu.core_type<tc>, window_params = [{transform_indices = @transform_0, window_bounds = array<i64: 1, 4, 9, 9, 4>}, {pipeline_mode = #tpu.pipeline_mode<synchronous>, transform_indices = @transform_1, window_bounds = array<i64: 9, 4, 16>}, {pipeline_mode = #tpu.pipeline_mode<synchronous>, transform_indices = @transform_2, window_bounds = array<i64: 1, 16>}, {pipeline_mode = #tpu.pipeline_mode<synchronous>, transform_indices = @transform_3, window_bounds = array<i64: 9, 16, 16>}, {pipeline_mode = #tpu.pipeline_mode<synchronous>, transform_indices = @transform_4, window_bounds = array<i64: 1, 16>}, {pipeline_mode = #tpu.pipeline_mode<synchronous>, transform_indices = @transform_5, window_bounds = array<i64: 9, 16, 32>}, {pipeline_mode = #tpu.pipeline_mode<synchronous>, transform_indices = @transform_6, window_bounds = array<i64: 1, 32>}, {transform_indices = @transform_7, window_bounds = array<i64: 1, 4, 4, 32>}]} {
    %cst = arith.constant 0.000000e+00 : f32
    %0 = vector.broadcast %cst : f32 to vector<64x16xf32>
    %c0 = arith.constant 0 : index
    %c0_0 = arith.constant 0 : index
    %c0_1 = arith.constant 0 : index
    %c0_2 = arith.constant 0 : index
    %c0_3 = arith.constant 0 : index
    %1 = vector.load %arg1[%c0, %c0_0, %c0_1, %c0_2, %c0_3] : memref<1x4x9x9x4xbf16, #tpu.memory_space<vmem>>, vector<1x1x8x8x4xbf16>
    %2 = vector.shape_cast %1 : vector<1x1x8x8x4xbf16> to vector<8x8x4xbf16>
    %3 = vector.shape_cast %2 : vector<8x8x4xbf16> to vector<64x4xbf16>
    %c0_4 = arith.constant 0 : index
    %c0_5 = arith.constant 0 : index
    %c0_6 = arith.constant 0 : index
    %4 = vector.load %arg2[%c0_4, %c0_5, %c0_6] : memref<9x4x16xbf16, #tpu.memory_space<vmem>>, vector<1x4x16xbf16>
    %5 = vector.shape_cast %4 : vector<1x4x16xbf16> to vector<4x16xbf16>
    %cst_7 = arith.constant dense<0.000000e+00> : vector<64x16xf32>
    %6 = tpu.matmul %3, %5, %cst_7 {dimension_numbers = #tpu.dot_dimension_numbers<[1], [0], [0], [1], [0, 0, 1, 1], [], []>} : vector<64x4xbf16>, vector<4x16xbf16>, vector<64x16xf32> -> vector<64x16xf32>
    %7 = arith.addf %0, %6 : vector<64x16xf32>
    %c0_8 = arith.constant 0 : index
    %c1 = arith.constant 1 : index
    %c0_9 = arith.constant 0 : index
    %c0_10 = arith.constant 0 : index
    %c0_11 = arith.constant 0 : index
    %8 = vector.load %arg1[%c0_8, %c1, %c0_9, %c0_10, %c0_11] : memref<1x4x9x9x4xbf16, #tpu.memory_space<vmem>>, vector<1x1x8x8x4xbf16>
    %9 = vector.shape_cast %8 : vector<1x1x8x8x4xbf16> to vector<8x8x4xbf16>
    %10 = vector.shape_cast %9 : vector<8x8x4xbf16> to vector<64x4xbf16>
    %c1_12 = arith.constant 1 : index
    %c0_13 = arith.constant 0 : index
    %c0_14 = arith.constant 0 : index
    %11 = vector.load %arg2[%c1_12, %c0_13, %c0_14] : memref<9x4x16xbf16, #tpu.memory_space<vmem>>, vector<1x4x16xbf16>
    %12 = vector.shape_cast %11 : vector<1x4x16xbf16> to vector<4x16xbf16>
    %cst_15 = arith.constant dense<0.000000e+00> : vector<64x16xf32>
    %13 = tpu.matmul %10, %12, %cst_15 {dimension_numbers = #tpu.dot_dimension_numbers<[1], [0], [0], [1], [0, 0, 1, 1], [], []>} : vector<64x4xbf16>, vector<4x16xbf16>, vector<64x16xf32> -> vector<64x16xf32>
    %14 = arith.addf %7, %13 : vector<64x16xf32>
    %c0_16 = arith.constant 0 : index
    %c0_17 = arith.constant 0 : index
    %c0_18 = arith.constant 0 : index
    %c1_19 = arith.constant 1 : index
    %c0_20 = arith.constant 0 : index
    %15 = vector.load %arg1[%c0_16, %c0_17, %c0_18, %c1_19, %c0_20] : memref<1x4x9x9x4xbf16, #tpu.memory_space<vmem>>, vector<1x1x8x8x4xbf16>
    %16 = vector.shape_cast %15 : vector<1x1x8x8x4xbf16> to vector<8x8x4xbf16>
    %17 = vector.shape_cast %16 : vector<8x8x4xbf16> to vector<64x4xbf16>
    %c2 = arith.constant 2 : index
    %c0_21 = arith.constant 0 : index
    %c0_22 = arith.constant 0 : index
    %18 = vector.load %arg2[%c2, %c0_21, %c0_22] : memref<9x4x16xbf16, #tpu.memory_space<vmem>>, vector<1x4x16xbf16>
    %19 = vector.shape_cast %18 : vector<1x4x16xbf16> to vector<4x16xbf16>
    %cst_23 = arith.constant dense<0.000000e+00> : vector<64x16xf32>
    %20 = tpu.matmul %17, %19, %cst_23 {dimension_numbers = #tpu.dot_dimension_numbers<[1], [0], [0], [1], [0, 0, 1, 1], [], []>} : vector<64x4xbf16>, vector<4x16xbf16>, vector<64x16xf32> -> vector<64x16xf32>
    %21 = arith.addf %14, %20 : vector<64x16xf32>
    %c0_24 = arith.constant 0 : index
    %c2_25 = arith.constant 2 : index
    %c0_26 = arith.constant 0 : index
    %c0_27 = arith.constant 0 : index
    %c0_28 = arith.constant 0 : index
    %22 = vector.load %arg1[%c0_24, %c2_25, %c0_26, %c0_27, %c0_28] : memref<1x4x9x9x4xbf16, #tpu.memory_space<vmem>>, vector<1x1x8x8x4xbf16>
    %23 = vector.shape_cast %22 : vector<1x1x8x8x4xbf16> to vector<8x8x4xbf16>
    %24 = vector.shape_cast %23 : vector<8x8x4xbf16> to vector<64x4xbf16>
    %c3 = arith.constant 3 : index
    %c0_29 = arith.constant 0 : index
    %c0_30 = arith.constant 0 : index
    %25 = vector.load %arg2[%c3, %c0_29, %c0_30] : memref<9x4x16xbf16, #tpu.memory_space<vmem>>, vector<1x4x16xbf16>
    %26 = vector.shape_cast %25 : vector<1x4x16xbf16> to vector<4x16xbf16>
    %cst_31 = arith.constant dense<0.000000e+00> : vector<64x16xf32>
    %27 = tpu.matmul %24, %26, %cst_31 {dimension_numbers = #tpu.dot_dimension_numbers<[1], [0], [0], [1], [0, 0, 1, 1], [], []>} : vector<64x4xbf16>, vector<4x16xbf16>, vector<64x16xf32> -> vector<64x16xf32>
    %28 = arith.addf %21, %27 : vector<64x16xf32>
    %c0_32 = arith.constant 0 : index
    %c3_33 = arith.constant 3 : index
    %c0_34 = arith.constant 0 : index
    %c0_35 = arith.constant 0 : index
    %c0_36 = arith.constant 0 : index
    %29 = vector.load %arg1[%c0_32, %c3_33, %c0_34, %c0_35, %c0_36] : memref<1x4x9x9x4xbf16, #tpu.memory_space<vmem>>, vector<1x1x8x8x4xbf16>
    %30 = vector.shape_cast %29 : vector<1x1x8x8x4xbf16> to vector<8x8x4xbf16>
    %31 = vector.shape_cast %30 : vector<8x8x4xbf16> to vector<64x4xbf16>
    %c4 = arith.constant 4 : index
    %c0_37 = arith.constant 0 : index
    %c0_38 = arith.constant 0 : index
    %32 = vector.load %arg2[%c4, %c0_37, %c0_38] : memref<9x4x16xbf16, #tpu.memory_space<vmem>>, vector<1x4x16xbf16>
    %33 = vector.shape_cast %32 : vector<1x4x16xbf16> to vector<4x16xbf16>
    %cst_39 = arith.constant dense<0.000000e+00> : vector<64x16xf32>
    %34 = tpu.matmul %31, %33, %cst_39 {dimension_numbers = #tpu.dot_dimension_numbers<[1], [0], [0], [1], [0, 0, 1, 1], [], []>} : vector<64x4xbf16>, vector<4x16xbf16>, vector<64x16xf32> -> vector<64x16xf32>
    %35 = arith.addf %28, %34 : vector<64x16xf32>
    %c0_40 = arith.constant 0 : index
    %c2_41 = arith.constant 2 : index
    %c0_42 = arith.constant 0 : index
    %c1_43 = arith.constant 1 : index
    %c0_44 = arith.constant 0 : index
    %36 = vector.load %arg1[%c0_40, %c2_41, %c0_42, %c1_43, %c0_44] : memref<1x4x9x9x4xbf16, #tpu.memory_space<vmem>>, vector<1x1x8x8x4xbf16>
    %37 = vector.shape_cast %36 : vector<1x1x8x8x4xbf16> to vector<8x8x4xbf16>
    %38 = vector.shape_cast %37 : vector<8x8x4xbf16> to vector<64x4xbf16>
    %c5 = arith.constant 5 : index
    %c0_45 = arith.constant 0 : index
    %c0_46 = arith.constant 0 : index
    %39 = vector.load %arg2[%c5, %c0_45, %c0_46] : memref<9x4x16xbf16, #tpu.memory_space<vmem>>, vector<1x4x16xbf16>
    %40 = vector.shape_cast %39 : vector<1x4x16xbf16> to vector<4x16xbf16>
    %cst_47 = arith.constant dense<0.000000e+00> : vector<64x16xf32>
    %41 = tpu.matmul %38, %40, %cst_47 {dimension_numbers = #tpu.dot_dimension_numbers<[1], [0], [0], [1], [0, 0, 1, 1], [], []>} : vector<64x4xbf16>, vector<4x16xbf16>, vector<64x16xf32> -> vector<64x16xf32>
    %42 = arith.addf %35, %41 : vector<64x16xf32>
    %c0_48 = arith.constant 0 : index
    %c0_49 = arith.constant 0 : index
    %c1_50 = arith.constant 1 : index
    %c0_51 = arith.constant 0 : index
    %c0_52 = arith.constant 0 : index
    %43 = vector.load %arg1[%c0_48, %c0_49, %c1_50, %c0_51, %c0_52] : memref<1x4x9x9x4xbf16, #tpu.memory_space<vmem>>, vector<1x1x8x8x4xbf16>
    %44 = vector.shape_cast %43 : vector<1x1x8x8x4xbf16> to vector<8x8x4xbf16>
    %45 = vector.shape_cast %44 : vector<8x8x4xbf16> to vector<64x4xbf16>
    %c6 = arith.constant 6 : index
    %c0_53 = arith.constant 0 : index
    %c0_54 = arith.constant 0 : index
    %46 = vector.load %arg2[%c6, %c0_53, %c0_54] : memref<9x4x16xbf16, #tpu.memory_space<vmem>>, vector<1x4x16xbf16>
    %47 = vector.shape_cast %46 : vector<1x4x16xbf16> to vector<4x16xbf16>
    %cst_55 = arith.constant dense<0.000000e+00> : vector<64x16xf32>
    %48 = tpu.matmul %45, %47, %cst_55 {dimension_numbers = #tpu.dot_dimension_numbers<[1], [0], [0], [1], [0, 0, 1, 1], [], []>} : vector<64x4xbf16>, vector<4x16xbf16>, vector<64x16xf32> -> vector<64x16xf32>
    %49 = arith.addf %42, %48 : vector<64x16xf32>
    %c0_56 = arith.constant 0 : index
    %c1_57 = arith.constant 1 : index
    %c1_58 = arith.constant 1 : index
    %c0_59 = arith.constant 0 : index
    %c0_60 = arith.constant 0 : index
    %50 = vector.load %arg1[%c0_56, %c1_57, %c1_58, %c0_59, %c0_60] : memref<1x4x9x9x4xbf16, #tpu.memory_space<vmem>>, vector<1x1x8x8x4xbf16>
    %51 = vector.shape_cast %50 : vector<1x1x8x8x4xbf16> to vector<8x8x4xbf16>
    %52 = vector.shape_cast %51 : vector<8x8x4xbf16> to vector<64x4xbf16>
    %c7 = arith.constant 7 : index
    %c0_61 = arith.constant 0 : index
    %c0_62 = arith.constant 0 : index
    %53 = vector.load %arg2[%c7, %c0_61, %c0_62] : memref<9x4x16xbf16, #tpu.memory_space<vmem>>, vector<1x4x16xbf16>
    %54 = vector.shape_cast %53 : vector<1x4x16xbf16> to vector<4x16xbf16>
    %cst_63 = arith.constant dense<0.000000e+00> : vector<64x16xf32>
    %55 = tpu.matmul %52, %54, %cst_63 {dimension_numbers = #tpu.dot_dimension_numbers<[1], [0], [0], [1], [0, 0, 1, 1], [], []>} : vector<64x4xbf16>, vector<4x16xbf16>, vector<64x16xf32> -> vector<64x16xf32>
    %56 = arith.addf %49, %55 : vector<64x16xf32>
    %c0_64 = arith.constant 0 : index
    %c0_65 = arith.constant 0 : index
    %c1_66 = arith.constant 1 : index
    %c1_67 = arith.constant 1 : index
    %c0_68 = arith.constant 0 : index
    %57 = vector.load %arg1[%c0_64, %c0_65, %c1_66, %c1_67, %c0_68] : memref<1x4x9x9x4xbf16, #tpu.memory_space<vmem>>, vector<1x1x8x8x4xbf16>
    %58 = vector.shape_cast %57 : vector<1x1x8x8x4xbf16> to vector<8x8x4xbf16>
    %59 = vector.shape_cast %58 : vector<8x8x4xbf16> to vector<64x4xbf16>
    %c8 = arith.constant 8 : index
    %c0_69 = arith.constant 0 : index
    %c0_70 = arith.constant 0 : index
    %60 = vector.load %arg2[%c8, %c0_69, %c0_70] : memref<9x4x16xbf16, #tpu.memory_space<vmem>>, vector<1x4x16xbf16>
    %61 = vector.shape_cast %60 : vector<1x4x16xbf16> to vector<4x16xbf16>
    %cst_71 = arith.constant dense<0.000000e+00> : vector<64x16xf32>
    %62 = tpu.matmul %59, %61, %cst_71 {dimension_numbers = #tpu.dot_dimension_numbers<[1], [0], [0], [1], [0, 0, 1, 1], [], []>} : vector<64x4xbf16>, vector<4x16xbf16>, vector<64x16xf32> -> vector<64x16xf32>
    %63 = arith.addf %56, %62 : vector<64x16xf32>
    %c0_72 = arith.constant 0 : index
    %c0_73 = arith.constant 0 : index
    %64 = vector.load %arg3[%c0_72, %c0_73] : memref<1x16xf32, #tpu.memory_space<vmem>>, vector<1x16xf32>
    %65 = vector.broadcast %64 : vector<1x16xf32> to vector<64x16xf32>
    %66 = arith.addf %63, %65 : vector<64x16xf32>
    %cst_74 = arith.constant 0.000000e+00 : f32
    %67 = vector.broadcast %cst_74 : f32 to vector<64x16xf32>
    %68 = arith.maximumf %66, %67 : vector<64x16xf32>
    %cst_75 = arith.constant 0.000000e+00 : bf16
    %69 = vector.broadcast %cst_75 : bf16 to vector<1x10x16xbf16>
    %cst_76 = arith.constant 0.000000e+00 : bf16
    %70 = vector.broadcast %cst_76 : bf16 to vector<10x1x16xbf16>
    %c0_77 = arith.constant 0 : index
    %c0_78 = arith.constant 0 : index
    %c0_79 = arith.constant 0 : index
    %71 = vector.load %arg9[%c0_77, %c0_78, %c0_79] : memref<10x10x16xbf16, #tpu.memory_space<vmem>>, vector<1x10x16xbf16>
    tpu.vector_store %arg9[%c0_77, %c0_78, %c0_79], %69 {strides = array<i32>} : memref<10x10x16xbf16, #tpu.memory_space<vmem>>, vector<1x10x16xbf16>,
    %c9 = arith.constant 9 : index
    %c0_80 = arith.constant 0 : index
    %c0_81 = arith.constant 0 : index
    %72 = vector.load %arg9[%c9, %c0_80, %c0_81] : memref<10x10x16xbf16, #tpu.memory_space<vmem>>, vector<1x10x16xbf16>
    tpu.vector_store %arg9[%c9, %c0_80, %c0_81], %69 {strides = array<i32>} : memref<10x10x16xbf16, #tpu.memory_space<vmem>>, vector<1x10x16xbf16>,
    %c0_82 = arith.constant 0 : index
    %c0_83 = arith.constant 0 : index
    %c0_84 = arith.constant 0 : index
    %73 = vector.load %arg9[%c0_82, %c0_83, %c0_84] : memref<10x10x16xbf16, #tpu.memory_space<vmem>>, vector<10x1x16xbf16>
    tpu.vector_store %arg9[%c0_82, %c0_83, %c0_84], %70 {strides = array<i32>} : memref<10x10x16xbf16, #tpu.memory_space<vmem>>, vector<10x1x16xbf16>,
    %c0_85 = arith.constant 0 : index
    %c9_86 = arith.constant 9 : index
    %c0_87 = arith.constant 0 : index
    %74 = vector.load %arg9[%c0_85, %c9_86, %c0_87] : memref<10x10x16xbf16, #tpu.memory_space<vmem>>, vector<10x1x16xbf16>
    tpu.vector_store %arg9[%c0_85, %c9_86, %c0_87], %70 {strides = array<i32>} : memref<10x10x16xbf16, #tpu.memory_space<vmem>>, vector<10x1x16xbf16>,
    %75 = arith.truncf %68 : vector<64x16xf32> to vector<64x16xbf16>
    %76 = vector.shape_cast %75 : vector<64x16xbf16> to vector<8x8x16xbf16>
    %c1_88 = arith.constant 1 : index
    %c1_89 = arith.constant 1 : index
    %c0_90 = arith.constant 0 : index
    %77 = vector.load %arg9[%c1_88, %c1_89, %c0_90] : memref<10x10x16xbf16, #tpu.memory_space<vmem>>, vector<8x8x16xbf16>
    tpu.vector_store %arg9[%c1_88, %c1_89, %c0_90], %76 {strides = array<i32>} : memref<10x10x16xbf16, #tpu.memory_space<vmem>>, vector<8x8x16xbf16>,
    %cst_91 = arith.constant 0.000000e+00 : f32
    %78 = vector.broadcast %cst_91 : f32 to vector<64x16xf32>
    %c0_92 = arith.constant 0 : index
    %c0_93 = arith.constant 0 : index
    %c0_94 = arith.constant 0 : index
    %79 = vector.load %arg9[%c0_92, %c0_93, %c0_94] : memref<10x10x16xbf16, #tpu.memory_space<vmem>>, vector<8x8x16xbf16>
    %80 = vector.shape_cast %79 : vector<8x8x16xbf16> to vector<64x16xbf16>
    %c0_95 = arith.constant 0 : index
    %c0_96 = arith.constant 0 : index
    %c0_97 = arith.constant 0 : index
    %81 = vector.load %arg4[%c0_95, %c0_96, %c0_97] : memref<9x16x16xbf16, #tpu.memory_space<vmem>>, vector<1x16x16xbf16>
    %82 = vector.shape_cast %81 : vector<1x16x16xbf16> to vector<16x16xbf16>
    %cst_98 = arith.constant dense<0.000000e+00> : vector<64x16xf32>
    %83 = tpu.matmul %80, %82, %cst_98 {dimension_numbers = #tpu.dot_dimension_numbers<[1], [0], [0], [1], [0, 0, 1, 1], [], []>} : vector<64x16xbf16>, vector<16x16xbf16>, vector<64x16xf32> -> vector<64x16xf32>
    %84 = arith.addf %78, %83 : vector<64x16xf32>
    %c0_99 = arith.constant 0 : index
    %c1_100 = arith.constant 1 : index
    %c0_101 = arith.constant 0 : index
    %85 = vector.load %arg9[%c0_99, %c1_100, %c0_101] : memref<10x10x16xbf16, #tpu.memory_space<vmem>>, vector<8x8x16xbf16>
    %86 = vector.shape_cast %85 : vector<8x8x16xbf16> to vector<64x16xbf16>
    %c1_102 = arith.constant 1 : index
    %c0_103 = arith.constant 0 : index
    %c0_104 = arith.constant 0 : index
    %87 = vector.load %arg4[%c1_102, %c0_103, %c0_104] : memref<9x16x16xbf16, #tpu.memory_space<vmem>>, vector<1x16x16xbf16>
    %88 = vector.shape_cast %87 : vector<1x16x16xbf16> to vector<16x16xbf16>
    %cst_105 = arith.constant dense<0.000000e+00> : vector<64x16xf32>
    %89 = tpu.matmul %86, %88, %cst_105 {dimension_numbers = #tpu.dot_dimension_numbers<[1], [0], [0], [1], [0, 0, 1, 1], [], []>} : vector<64x16xbf16>, vector<16x16xbf16>, vector<64x16xf32> -> vector<64x16xf32>
    %90 = arith.addf %84, %89 : vector<64x16xf32>
    %c0_106 = arith.constant 0 : index
    %c2_107 = arith.constant 2 : index
    %c0_108 = arith.constant 0 : index
    %91 = vector.load %arg9[%c0_106, %c2_107, %c0_108] : memref<10x10x16xbf16, #tpu.memory_space<vmem>>, vector<8x8x16xbf16>
    %92 = vector.shape_cast %91 : vector<8x8x16xbf16> to vector<64x16xbf16>
    %c2_109 = arith.constant 2 : index
    %c0_110 = arith.constant 0 : index
    %c0_111 = arith.constant 0 : index
    %93 = vector.load %arg4[%c2_109, %c0_110, %c0_111] : memref<9x16x16xbf16, #tpu.memory_space<vmem>>, vector<1x16x16xbf16>
    %94 = vector.shape_cast %93 : vector<1x16x16xbf16> to vector<16x16xbf16>
    %cst_112 = arith.constant dense<0.000000e+00> : vector<64x16xf32>
    %95 = tpu.matmul %92, %94, %cst_112 {dimension_numbers = #tpu.dot_dimension_numbers<[1], [0], [0], [1], [0, 0, 1, 1], [], []>} : vector<64x16xbf16>, vector<16x16xbf16>, vector<64x16xf32> -> vector<64x16xf32>
    %96 = arith.addf %90, %95 : vector<64x16xf32>
    %c1_113 = arith.constant 1 : index
    %c0_114 = arith.constant 0 : index
    %c0_115 = arith.constant 0 : index
    %97 = vector.load %arg9[%c1_113, %c0_114, %c0_115] : memref<10x10x16xbf16, #tpu.memory_space<vmem>>, vector<8x8x16xbf16>
    %98 = vector.shape_cast %97 : vector<8x8x16xbf16> to vector<64x16xbf16>
    %c3_116 = arith.constant 3 : index
    %c0_117 = arith.constant 0 : index
    %c0_118 = arith.constant 0 : index
    %99 = vector.load %arg4[%c3_116, %c0_117, %c0_118] : memref<9x16x16xbf16, #tpu.memory_space<vmem>>, vector<1x16x16xbf16>
    %100 = vector.shape_cast %99 : vector<1x16x16xbf16> to vector<16x16xbf16>
    %cst_119 = arith.constant dense<0.000000e+00> : vector<64x16xf32>
    %101 = tpu.matmul %98, %100, %cst_119 {dimension_numbers = #tpu.dot_dimension_numbers<[1], [0], [0], [1], [0, 0, 1, 1], [], []>} : vector<64x16xbf16>, vector<16x16xbf16>, vector<64x16xf32> -> vector<64x16xf32>
    %102 = arith.addf %96, %101 : vector<64x16xf32>
    %c1_120 = arith.constant 1 : index
    %c1_121 = arith.constant 1 : index
    %c0_122 = arith.constant 0 : index
    %103 = vector.load %arg9[%c1_120, %c1_121, %c0_122] : memref<10x10x16xbf16, #tpu.memory_space<vmem>>, vector<8x8x16xbf16>
    %104 = vector.shape_cast %103 : vector<8x8x16xbf16> to vector<64x16xbf16>
    %c4_123 = arith.constant 4 : index
    %c0_124 = arith.constant 0 : index
    %c0_125 = arith.constant 0 : index
    %105 = vector.load %arg4[%c4_123, %c0_124, %c0_125] : memref<9x16x16xbf16, #tpu.memory_space<vmem>>, vector<1x16x16xbf16>
    %106 = vector.shape_cast %105 : vector<1x16x16xbf16> to vector<16x16xbf16>
    %cst_126 = arith.constant dense<0.000000e+00> : vector<64x16xf32>
    %107 = tpu.matmul %104, %106, %cst_126 {dimension_numbers = #tpu.dot_dimension_numbers<[1], [0], [0], [1], [0, 0, 1, 1], [], []>} : vector<64x16xbf16>, vector<16x16xbf16>, vector<64x16xf32> -> vector<64x16xf32>
    %108 = arith.addf %102, %107 : vector<64x16xf32>
    %c1_127 = arith.constant 1 : index
    %c2_128 = arith.constant 2 : index
    %c0_129 = arith.constant 0 : index
    %109 = vector.load %arg9[%c1_127, %c2_128, %c0_129] : memref<10x10x16xbf16, #tpu.memory_space<vmem>>, vector<8x8x16xbf16>
    %110 = vector.shape_cast %109 : vector<8x8x16xbf16> to vector<64x16xbf16>
    %c5_130 = arith.constant 5 : index
    %c0_131 = arith.constant 0 : index
    %c0_132 = arith.constant 0 : index
    %111 = vector.load %arg4[%c5_130, %c0_131, %c0_132] : memref<9x16x16xbf16, #tpu.memory_space<vmem>>, vector<1x16x16xbf16>
    %112 = vector.shape_cast %111 : vector<1x16x16xbf16> to vector<16x16xbf16>
    %cst_133 = arith.constant dense<0.000000e+00> : vector<64x16xf32>
    %113 = tpu.matmul %110, %112, %cst_133 {dimension_numbers = #tpu.dot_dimension_numbers<[1], [0], [0], [1], [0, 0, 1, 1], [], []>} : vector<64x16xbf16>, vector<16x16xbf16>, vector<64x16xf32> -> vector<64x16xf32>
    %114 = arith.addf %108, %113 : vector<64x16xf32>
    %c2_134 = arith.constant 2 : index
    %c0_135 = arith.constant 0 : index
    %c0_136 = arith.constant 0 : index
    %115 = vector.load %arg9[%c2_134, %c0_135, %c0_136] : memref<10x10x16xbf16, #tpu.memory_space<vmem>>, vector<8x8x16xbf16>
    %116 = vector.shape_cast %115 : vector<8x8x16xbf16> to vector<64x16xbf16>
    %c6_137 = arith.constant 6 : index
    %c0_138 = arith.constant 0 : index
    %c0_139 = arith.constant 0 : index
    %117 = vector.load %arg4[%c6_137, %c0_138, %c0_139] : memref<9x16x16xbf16, #tpu.memory_space<vmem>>, vector<1x16x16xbf16>
    %118 = vector.shape_cast %117 : vector<1x16x16xbf16> to vector<16x16xbf16>
    %cst_140 = arith.constant dense<0.000000e+00> : vector<64x16xf32>
    %119 = tpu.matmul %116, %118, %cst_140 {dimension_numbers = #tpu.dot_dimension_numbers<[1], [0], [0], [1], [0, 0, 1, 1], [], []>} : vector<64x16xbf16>, vector<16x16xbf16>, vector<64x16xf32> -> vector<64x16xf32>
    %120 = arith.addf %114, %119 : vector<64x16xf32>
    %c2_141 = arith.constant 2 : index
    %c1_142 = arith.constant 1 : index
    %c0_143 = arith.constant 0 : index
    %121 = vector.load %arg9[%c2_141, %c1_142, %c0_143] : memref<10x10x16xbf16, #tpu.memory_space<vmem>>, vector<8x8x16xbf16>
    %122 = vector.shape_cast %121 : vector<8x8x16xbf16> to vector<64x16xbf16>
    %c7_144 = arith.constant 7 : index
    %c0_145 = arith.constant 0 : index
    %c0_146 = arith.constant 0 : index
    %123 = vector.load %arg4[%c7_144, %c0_145, %c0_146] : memref<9x16x16xbf16, #tpu.memory_space<vmem>>, vector<1x16x16xbf16>
    %124 = vector.shape_cast %123 : vector<1x16x16xbf16> to vector<16x16xbf16>
    %cst_147 = arith.constant dense<0.000000e+00> : vector<64x16xf32>
    %125 = tpu.matmul %122, %124, %cst_147 {dimension_numbers = #tpu.dot_dimension_numbers<[1], [0], [0], [1], [0, 0, 1, 1], [], []>} : vector<64x16xbf16>, vector<16x16xbf16>, vector<64x16xf32> -> vector<64x16xf32>
    %126 = arith.addf %120, %125 : vector<64x16xf32>
    %c2_148 = arith.constant 2 : index
    %c2_149 = arith.constant 2 : index
    %c0_150 = arith.constant 0 : index
    %127 = vector.load %arg9[%c2_148, %c2_149, %c0_150] : memref<10x10x16xbf16, #tpu.memory_space<vmem>>, vector<8x8x16xbf16>
    %128 = vector.shape_cast %127 : vector<8x8x16xbf16> to vector<64x16xbf16>
    %c8_151 = arith.constant 8 : index
    %c0_152 = arith.constant 0 : index
    %c0_153 = arith.constant 0 : index
    %129 = vector.load %arg4[%c8_151, %c0_152, %c0_153] : memref<9x16x16xbf16, #tpu.memory_space<vmem>>, vector<1x16x16xbf16>
    %130 = vector.shape_cast %129 : vector<1x16x16xbf16> to vector<16x16xbf16>
    %cst_154 = arith.constant dense<0.000000e+00> : vector<64x16xf32>
    %131 = tpu.matmul %128, %130, %cst_154 {dimension_numbers = #tpu.dot_dimension_numbers<[1], [0], [0], [1], [0, 0, 1, 1], [], []>} : vector<64x16xbf16>, vector<16x16xbf16>, vector<64x16xf32> -> vector<64x16xf32>
    %132 = arith.addf %126, %131 : vector<64x16xf32>
    %c0_155 = arith.constant 0 : index
    %c0_156 = arith.constant 0 : index
    %133 = vector.load %arg5[%c0_155, %c0_156] : memref<1x16xf32, #tpu.memory_space<vmem>>, vector<1x16xf32>
    %134 = vector.broadcast %133 : vector<1x16xf32> to vector<64x16xf32>
    %135 = arith.addf %132, %134 : vector<64x16xf32>
    %cst_157 = arith.constant 0.000000e+00 : f32
    %136 = vector.broadcast %cst_157 : f32 to vector<64x16xf32>
    %137 = arith.maximumf %135, %136 : vector<64x16xf32>
    %cst_158 = arith.constant 0.000000e+00 : bf16
    %138 = vector.broadcast %cst_158 : bf16 to vector<1x10x16xbf16>
    %cst_159 = arith.constant 0.000000e+00 : bf16
    %139 = vector.broadcast %cst_159 : bf16 to vector<10x1x16xbf16>
    %c0_160 = arith.constant 0 : index
    %c0_161 = arith.constant 0 : index
    %c0_162 = arith.constant 0 : index
    %140 = vector.load %arg10[%c0_160, %c0_161, %c0_162] : memref<10x10x16xbf16, #tpu.memory_space<vmem>>, vector<1x10x16xbf16>
    tpu.vector_store %arg10[%c0_160, %c0_161, %c0_162], %138 {strides = array<i32>} : memref<10x10x16xbf16, #tpu.memory_space<vmem>>, vector<1x10x16xbf16>,
    %c9_163 = arith.constant 9 : index
    %c0_164 = arith.constant 0 : index
    %c0_165 = arith.constant 0 : index
    %141 = vector.load %arg10[%c9_163, %c0_164, %c0_165] : memref<10x10x16xbf16, #tpu.memory_space<vmem>>, vector<1x10x16xbf16>
    tpu.vector_store %arg10[%c9_163, %c0_164, %c0_165], %138 {strides = array<i32>} : memref<10x10x16xbf16, #tpu.memory_space<vmem>>, vector<1x10x16xbf16>,
    %c0_166 = arith.constant 0 : index
    %c0_167 = arith.constant 0 : index
    %c0_168 = arith.constant 0 : index
    %142 = vector.load %arg10[%c0_166, %c0_167, %c0_168] : memref<10x10x16xbf16, #tpu.memory_space<vmem>>, vector<10x1x16xbf16>
    tpu.vector_store %arg10[%c0_166, %c0_167, %c0_168], %139 {strides = array<i32>} : memref<10x10x16xbf16, #tpu.memory_space<vmem>>, vector<10x1x16xbf16>,
    %c0_169 = arith.constant 0 : index
    %c9_170 = arith.constant 9 : index
    %c0_171 = arith.constant 0 : index
    %143 = vector.load %arg10[%c0_169, %c9_170, %c0_171] : memref<10x10x16xbf16, #tpu.memory_space<vmem>>, vector<10x1x16xbf16>
    tpu.vector_store %arg10[%c0_169, %c9_170, %c0_171], %139 {strides = array<i32>} : memref<10x10x16xbf16, #tpu.memory_space<vmem>>, vector<10x1x16xbf16>,
    %144 = arith.truncf %137 : vector<64x16xf32> to vector<64x16xbf16>
    %145 = vector.shape_cast %144 : vector<64x16xbf16> to vector<8x8x16xbf16>
    %c1_172 = arith.constant 1 : index
    %c1_173 = arith.constant 1 : index
    %c0_174 = arith.constant 0 : index
    %146 = vector.load %arg10[%c1_172, %c1_173, %c0_174] : memref<10x10x16xbf16, #tpu.memory_space<vmem>>, vector<8x8x16xbf16>
    tpu.vector_store %arg10[%c1_172, %c1_173, %c0_174], %145 {strides = array<i32>} : memref<10x10x16xbf16, #tpu.memory_space<vmem>>, vector<8x8x16xbf16>,
    %cst_175 = arith.constant 0.000000e+00 : f32
    %147 = vector.broadcast %cst_175 : f32 to vector<64x32xf32>
    %c0_176 = arith.constant 0 : index
    %c0_177 = arith.constant 0 : index
    %c0_178 = arith.constant 0 : index
    %148 = vector.load %arg10[%c0_176, %c0_177, %c0_178] : memref<10x10x16xbf16, #tpu.memory_space<vmem>>, vector<8x8x16xbf16>
    %149 = vector.shape_cast %148 : vector<8x8x16xbf16> to vector<64x16xbf16>
    %c0_179 = arith.constant 0 : index
    %c0_180 = arith.constant 0 : index
    %c0_181 = arith.constant 0 : index
    %150 = vector.load %arg6[%c0_179, %c0_180, %c0_181] : memref<9x16x32xbf16, #tpu.memory_space<vmem>>, vector<1x16x32xbf16>
    %151 = vector.shape_cast %150 : vector<1x16x32xbf16> to vector<16x32xbf16>
    %cst_182 = arith.constant dense<0.000000e+00> : vector<64x32xf32>
    %152 = tpu.matmul %149, %151, %cst_182 {dimension_numbers = #tpu.dot_dimension_numbers<[1], [0], [0], [1], [0, 0, 1, 1], [], []>} : vector<64x16xbf16>, vector<16x32xbf16>, vector<64x32xf32> -> vector<64x32xf32>
    %153 = arith.addf %147, %152 : vector<64x32xf32>
    %c0_183 = arith.constant 0 : index
    %c1_184 = arith.constant 1 : index
    %c0_185 = arith.constant 0 : index
    %154 = vector.load %arg10[%c0_183, %c1_184, %c0_185] : memref<10x10x16xbf16, #tpu.memory_space<vmem>>, vector<8x8x16xbf16>
    %155 = vector.shape_cast %154 : vector<8x8x16xbf16> to vector<64x16xbf16>
    %c1_186 = arith.constant 1 : index
    %c0_187 = arith.constant 0 : index
    %c0_188 = arith.constant 0 : index
    %156 = vector.load %arg6[%c1_186, %c0_187, %c0_188] : memref<9x16x32xbf16, #tpu.memory_space<vmem>>, vector<1x16x32xbf16>
    %157 = vector.shape_cast %156 : vector<1x16x32xbf16> to vector<16x32xbf16>
    %cst_189 = arith.constant dense<0.000000e+00> : vector<64x32xf32>
    %158 = tpu.matmul %155, %157, %cst_189 {dimension_numbers = #tpu.dot_dimension_numbers<[1], [0], [0], [1], [0, 0, 1, 1], [], []>} : vector<64x16xbf16>, vector<16x32xbf16>, vector<64x32xf32> -> vector<64x32xf32>
    %159 = arith.addf %153, %158 : vector<64x32xf32>
    %c0_190 = arith.constant 0 : index
    %c2_191 = arith.constant 2 : index
    %c0_192 = arith.constant 0 : index
    %160 = vector.load %arg10[%c0_190, %c2_191, %c0_192] : memref<10x10x16xbf16, #tpu.memory_space<vmem>>, vector<8x8x16xbf16>
    %161 = vector.shape_cast %160 : vector<8x8x16xbf16> to vector<64x16xbf16>
    %c2_193 = arith.constant 2 : index
    %c0_194 = arith.constant 0 : index
    %c0_195 = arith.constant 0 : index
    %162 = vector.load %arg6[%c2_193, %c0_194, %c0_195] : memref<9x16x32xbf16, #tpu.memory_space<vmem>>, vector<1x16x32xbf16>
    %163 = vector.shape_cast %162 : vector<1x16x32xbf16> to vector<16x32xbf16>
    %cst_196 = arith.constant dense<0.000000e+00> : vector<64x32xf32>
    %164 = tpu.matmul %161, %163, %cst_196 {dimension_numbers = #tpu.dot_dimension_numbers<[1], [0], [0], [1], [0, 0, 1, 1], [], []>} : vector<64x16xbf16>, vector<16x32xbf16>, vector<64x32xf32> -> vector<64x32xf32>
    %165 = arith.addf %159, %164 : vector<64x32xf32>
    %c1_197 = arith.constant 1 : index
    %c0_198 = arith.constant 0 : index
    %c0_199 = arith.constant 0 : index
    %166 = vector.load %arg10[%c1_197, %c0_198, %c0_199] : memref<10x10x16xbf16, #tpu.memory_space<vmem>>, vector<8x8x16xbf16>
    %167 = vector.shape_cast %166 : vector<8x8x16xbf16> to vector<64x16xbf16>
    %c3_200 = arith.constant 3 : index
    %c0_201 = arith.constant 0 : index
    %c0_202 = arith.constant 0 : index
    %168 = vector.load %arg6[%c3_200, %c0_201, %c0_202] : memref<9x16x32xbf16, #tpu.memory_space<vmem>>, vector<1x16x32xbf16>
    %169 = vector.shape_cast %168 : vector<1x16x32xbf16> to vector<16x32xbf16>
    %cst_203 = arith.constant dense<0.000000e+00> : vector<64x32xf32>
    %170 = tpu.matmul %167, %169, %cst_203 {dimension_numbers = #tpu.dot_dimension_numbers<[1], [0], [0], [1], [0, 0, 1, 1], [], []>} : vector<64x16xbf16>, vector<16x32xbf16>, vector<64x32xf32> -> vector<64x32xf32>
    %171 = arith.addf %165, %170 : vector<64x32xf32>
    %c1_204 = arith.constant 1 : index
    %c1_205 = arith.constant 1 : index
    %c0_206 = arith.constant 0 : index
    %172 = vector.load %arg10[%c1_204, %c1_205, %c0_206] : memref<10x10x16xbf16, #tpu.memory_space<vmem>>, vector<8x8x16xbf16>
    %173 = vector.shape_cast %172 : vector<8x8x16xbf16> to vector<64x16xbf16>
    %c4_207 = arith.constant 4 : index
    %c0_208 = arith.constant 0 : index
    %c0_209 = arith.constant 0 : index
    %174 = vector.load %arg6[%c4_207, %c0_208, %c0_209] : memref<9x16x32xbf16, #tpu.memory_space<vmem>>, vector<1x16x32xbf16>
    %175 = vector.shape_cast %174 : vector<1x16x32xbf16> to vector<16x32xbf16>
    %cst_210 = arith.constant dense<0.000000e+00> : vector<64x32xf32>
    %176 = tpu.matmul %173, %175, %cst_210 {dimension_numbers = #tpu.dot_dimension_numbers<[1], [0], [0], [1], [0, 0, 1, 1], [], []>} : vector<64x16xbf16>, vector<16x32xbf16>, vector<64x32xf32> -> vector<64x32xf32>
    %177 = arith.addf %171, %176 : vector<64x32xf32>
    %c1_211 = arith.constant 1 : index
    %c2_212 = arith.constant 2 : index
    %c0_213 = arith.constant 0 : index
    %178 = vector.load %arg10[%c1_211, %c2_212, %c0_213] : memref<10x10x16xbf16, #tpu.memory_space<vmem>>, vector<8x8x16xbf16>
    %179 = vector.shape_cast %178 : vector<8x8x16xbf16> to vector<64x16xbf16>
    %c5_214 = arith.constant 5 : index
    %c0_215 = arith.constant 0 : index
    %c0_216 = arith.constant 0 : index
    %180 = vector.load %arg6[%c5_214, %c0_215, %c0_216] : memref<9x16x32xbf16, #tpu.memory_space<vmem>>, vector<1x16x32xbf16>
    %181 = vector.shape_cast %180 : vector<1x16x32xbf16> to vector<16x32xbf16>
    %cst_217 = arith.constant dense<0.000000e+00> : vector<64x32xf32>
    %182 = tpu.matmul %179, %181, %cst_217 {dimension_numbers = #tpu.dot_dimension_numbers<[1], [0], [0], [1], [0, 0, 1, 1], [], []>} : vector<64x16xbf16>, vector<16x32xbf16>, vector<64x32xf32> -> vector<64x32xf32>
    %183 = arith.addf %177, %182 : vector<64x32xf32>
    %c2_218 = arith.constant 2 : index
    %c0_219 = arith.constant 0 : index
    %c0_220 = arith.constant 0 : index
    %184 = vector.load %arg10[%c2_218, %c0_219, %c0_220] : memref<10x10x16xbf16, #tpu.memory_space<vmem>>, vector<8x8x16xbf16>
    %185 = vector.shape_cast %184 : vector<8x8x16xbf16> to vector<64x16xbf16>
    %c6_221 = arith.constant 6 : index
    %c0_222 = arith.constant 0 : index
    %c0_223 = arith.constant 0 : index
    %186 = vector.load %arg6[%c6_221, %c0_222, %c0_223] : memref<9x16x32xbf16, #tpu.memory_space<vmem>>, vector<1x16x32xbf16>
    %187 = vector.shape_cast %186 : vector<1x16x32xbf16> to vector<16x32xbf16>
    %cst_224 = arith.constant dense<0.000000e+00> : vector<64x32xf32>
    %188 = tpu.matmul %185, %187, %cst_224 {dimension_numbers = #tpu.dot_dimension_numbers<[1], [0], [0], [1], [0, 0, 1, 1], [], []>} : vector<64x16xbf16>, vector<16x32xbf16>, vector<64x32xf32> -> vector<64x32xf32>
    %189 = arith.addf %183, %188 : vector<64x32xf32>
    %c2_225 = arith.constant 2 : index
    %c1_226 = arith.constant 1 : index
    %c0_227 = arith.constant 0 : index
    %190 = vector.load %arg10[%c2_225, %c1_226, %c0_227] : memref<10x10x16xbf16, #tpu.memory_space<vmem>>, vector<8x8x16xbf16>
    %191 = vector.shape_cast %190 : vector<8x8x16xbf16> to vector<64x16xbf16>
    %c7_228 = arith.constant 7 : index
    %c0_229 = arith.constant 0 : index
    %c0_230 = arith.constant 0 : index
    %192 = vector.load %arg6[%c7_228, %c0_229, %c0_230] : memref<9x16x32xbf16, #tpu.memory_space<vmem>>, vector<1x16x32xbf16>
    %193 = vector.shape_cast %192 : vector<1x16x32xbf16> to vector<16x32xbf16>
    %cst_231 = arith.constant dense<0.000000e+00> : vector<64x32xf32>
    %194 = tpu.matmul %191, %193, %cst_231 {dimension_numbers = #tpu.dot_dimension_numbers<[1], [0], [0], [1], [0, 0, 1, 1], [], []>} : vector<64x16xbf16>, vector<16x32xbf16>, vector<64x32xf32> -> vector<64x32xf32>
    %195 = arith.addf %189, %194 : vector<64x32xf32>
    %c2_232 = arith.constant 2 : index
    %c2_233 = arith.constant 2 : index
    %c0_234 = arith.constant 0 : index
    %196 = vector.load %arg10[%c2_232, %c2_233, %c0_234] : memref<10x10x16xbf16, #tpu.memory_space<vmem>>, vector<8x8x16xbf16>
    %197 = vector.shape_cast %196 : vector<8x8x16xbf16> to vector<64x16xbf16>
    %c8_235 = arith.constant 8 : index
    %c0_236 = arith.constant 0 : index
    %c0_237 = arith.constant 0 : index
    %198 = vector.load %arg6[%c8_235, %c0_236, %c0_237] : memref<9x16x32xbf16, #tpu.memory_space<vmem>>, vector<1x16x32xbf16>
    %199 = vector.shape_cast %198 : vector<1x16x32xbf16> to vector<16x32xbf16>
    %cst_238 = arith.constant dense<0.000000e+00> : vector<64x32xf32>
    %200 = tpu.matmul %197, %199, %cst_238 {dimension_numbers = #tpu.dot_dimension_numbers<[1], [0], [0], [1], [0, 0, 1, 1], [], []>} : vector<64x16xbf16>, vector<16x32xbf16>, vector<64x32xf32> -> vector<64x32xf32>
    %201 = arith.addf %195, %200 : vector<64x32xf32>
    %c0_239 = arith.constant 0 : index
    %c0_240 = arith.constant 0 : index
    %202 = vector.load %arg7[%c0_239, %c0_240] : memref<1x32xf32, #tpu.memory_space<vmem>>, vector<1x32xf32>
    %203 = vector.broadcast %202 : vector<1x32xf32> to vector<64x32xf32>
    %204 = arith.addf %201, %203 : vector<64x32xf32>
    %cst_241 = arith.constant 0.000000e+00 : f32
    %205 = vector.broadcast %cst_241 : f32 to vector<64x32xf32>
    %206 = arith.maximumf %204, %205 : vector<64x32xf32>
    %207 = vector.shape_cast %206 : vector<64x32xf32> to vector<4x2x4x2x32xf32>
    %cst_242 = arith.constant dense<0xFF800000> : vector<4x2x4x32xf32>
    %208 = vector.multi_reduction <maximumf>, %207, %cst_242 [3] : vector<4x2x4x2x32xf32> to vector<4x2x4x32xf32>
    %cst_243 = arith.constant dense<0xFF800000> : vector<4x4x32xf32>
    %209 = vector.multi_reduction <maximumf>, %208, %cst_243 [1] : vector<4x2x4x32xf32> to vector<4x4x32xf32>
    %c0_244 = arith.constant 0 : index
    %c0_245 = arith.constant 0 : index
    %c0_246 = arith.constant 0 : index
    %c0_247 = arith.constant 0 : index
    %210 = vector.load %arg8[%c0_244, %c0_245, %c0_246, %c0_247] : memref<1x4x4x32xf32, #tpu.memory_space<vmem>>, vector<1x4x4x32xf32>
    %211 = vector.shape_cast %210 : vector<1x4x4x32xf32> to vector<4x4x32xf32>
    %212 = vector.shape_cast %209 : vector<4x4x32xf32> to vector<1x4x4x32xf32>
    tpu.vector_store %arg8[%c0_244, %c0_245, %c0_246, %c0_247], %212 {strides = array<i32>} : memref<1x4x4x32xf32, #tpu.memory_space<vmem>>, vector<1x4x4x32xf32>,
    return
  }
  func.func @transform_0(%arg0: i32) -> (i32, i32, i32, i32, i32) {
    %c0_i32 = arith.constant 0 : i32
    %c0_i32_0 = arith.constant 0 : i32
    %c0_i32_1 = arith.constant 0 : i32
    %c0_i32_2 = arith.constant 0 : i32
    %c0_i32_3 = arith.constant 0 : i32
    return %arg0, %c0_i32, %c0_i32_0, %c0_i32_1, %c0_i32_2 : i32, i32, i32, i32, i32
  }
  func.func @transform_1(%arg0: i32) -> (i32, i32, i32) {
    %c0_i32 = arith.constant 0 : i32
    %c0_i32_0 = arith.constant 0 : i32
    %c0_i32_1 = arith.constant 0 : i32
    %c0_i32_2 = arith.constant 0 : i32
    return %c0_i32, %c0_i32_0, %c0_i32_1 : i32, i32, i32
  }
  func.func @transform_2(%arg0: i32) -> (i32, i32) {
    %c0_i32 = arith.constant 0 : i32
    %c0_i32_0 = arith.constant 0 : i32
    %c0_i32_1 = arith.constant 0 : i32
    return %c0_i32, %c0_i32_0 : i32, i32
  }
  func.func @transform_3(%arg0: i32) -> (i32, i32, i32) {
    %c0_i32 = arith.constant 0 : i32
    %c0_i32_0 = arith.constant 0 : i32
    %c0_i32_1 = arith.constant 0 : i32
    %c0_i32_2 = arith.constant 0 : i32
    return %c0_i32, %c0_i32_0, %c0_i32_1 : i32, i32, i32
  }
  func.func @transform_4(%arg0: i32) -> (i32, i32) {
    %c0_i32 = arith.constant 0 : i32
    %c0_i32_0 = arith.constant 0 : i32
    %c0_i32_1 = arith.constant 0 : i32
    return %c0_i32, %c0_i32_0 : i32, i32
  }
  func.func @transform_5(%arg0: i32) -> (i32, i32, i32) {
    %c0_i32 = arith.constant 0 : i32
    %c0_i32_0 = arith.constant 0 : i32
    %c0_i32_1 = arith.constant 0 : i32
    %c0_i32_2 = arith.constant 0 : i32
    return %c0_i32, %c0_i32_0, %c0_i32_1 : i32, i32, i32
  }
  func.func @transform_6(%arg0: i32) -> (i32, i32) {
    %c0_i32 = arith.constant 0 : i32
    %c0_i32_0 = arith.constant 0 : i32
    %c0_i32_1 = arith.constant 0 : i32
    return %c0_i32, %c0_i32_0 : i32, i32
  }
  func.func @transform_7(%arg0: i32) -> (i32, i32, i32, i32) {
    %c0_i32 = arith.constant 0 : i32
    %c0_i32_0 = arith.constant 0 : i32
    %c0_i32_1 = arith.constant 0 : i32
    %c0_i32_2 = arith.constant 0 : i32
    return %arg0, %c0_i32, %c0_i32_0, %c0_i32_1 : i32, i32, i32, i32
  }
}

</mosaic_0001>

<bundles_post_ra>
// kernel: deep_stem_forward.1
= control target key start
LH: loop header
LB: loop body
LE: loop exit
PB: predicated region body
PF: predicated region fallthrough
CT: control target
= control target key end

     0   :  { %12 = vsyncpa [#allocation5], 0  ;;  %s8514_s0 = inlined_call_operand.vmem [shape: bf16[2,4,9,9,4], index: 0, kind: input, shape index: {}]   ;;  %s8515_s1 = inlined_call_operand.vmem [shape: bf16[9,4,16], index: 1, kind: input, shape index: {}]   ;;  %s8516_s2 = inlined_call_operand.vmem [shape: f32[1,16], index: 2, kind: input, shape index: {}]   ;;  %s8517_s3 = inlined_call_operand.vmem [shape: bf16[9,16,16], index: 3, kind: input, shape index: {}]   ;;  %s8518_s4 = inlined_call_operand.vmem [shape: f32[1,16], index: 4, kind: input, shape index: {}]   ;;  %s8519_s5 = inlined_call_operand.vmem [shape: bf16[9,16,32], index: 5, kind: input, shape index: {}]   ;;  %s8520_s6 = inlined_call_operand.vmem [shape: f32[1,32], index: 6, kind: input, shape index: {}]   ;;  %s8521_s7 = inlined_call_operand.hbm [shape: f32[2,4,4,32], index: 7, kind: output, shape index: {}]  }
   0x1   :  { %14 = vsyncpa [#allocation5 + $0x1], 0  ;;  %s6888_s24 = smov 0   ;;  %s6890_s25 = smov 0  }
   0x2   :  { %s6892_s26 = smov 0   ;;  %s6894_s27 = smov 0  }
   0x3 LB: > { %s6909_s28 = sadd.s32 4294967295, %s6841_s27   ;;  %s5813_s29 = sadd.s32 4294967294, %s6841_s27   ;;  %s6841_s27 = sphi %s6894_s27, %s8565_s27   ;;  %s6837_s26 = sphi %s6892_s26, %s8564_s26   ;;  %s6833_s25 = sphi %s6890_s25, %s8563_s25   ;;  %s6829_s24 = sphi %s6888_s24, %s8562_s24  }
   0x4   : > { %s6913_s30 = sadd.s32 1, %s6841_s27   ;;  %s179_s8 = sadd.s32 1, %s6837_s26 }
   0x5   : > { %s176_s9 = ssub.s32 %s6841_s27, %s6913_s30  ;;  %p189_p0 = scmp.ne.s32.totalorder %s6837_s26, %s6833_s25 }
   0x6   : > { %p177_p1 = scmp.eq.s32.totalorder %s176_s9, 0  ;;  %p190_p2 = scmp.eq.s32.totalorder %s6909_s28, 1 }
   0x7   : > { %p195_p3 = scmp.ne.s32.totalorder %s6833_s25, %s6829_s24  ;;  %p196_p4 = scmp.eq.s32.totalorder %s5813_s29, 1 }
   0x8   : > { %s6924_s10 = scalar_select %p177_p1, %s6837_s26, %s179_s8  }
   0x9   : > { %p6926_p5 = por %p190_p2, %p189_p0  ;;  %p6930_p6 = por %p196_p4, %p195_p3 }
   0xa   : > { %p5816_p7 = scmp.ge.s32.totalorder %s6841_s27, 1  ;;  %p240_p8 = scmp.lt.s32.totalorder %s6841_s27, 3 }
   0xc   : > { %p241_p9 = pnand %p5816_p7, %p240_p8 }
   0xe   : > { %244 = sbr.rel (%p241_p9) target bundleno = 1028 (0x404), region = 48 }
  0x13   : > { %v5827_v0 = vld [vmem:[%s8515_s1 + $0x2] sm:$0x3]  ;;  %vm331_vm0 = vcmask 1041408   ;;  %p272_p10 = scmp.lt.s32.totalorder %s6909_s28, 1  ;;  %v286_v2 = vld [vmem:[%s8515_s1] sm:$0x3] }
  0x14   : > { %6662 = vmatprep.subr.msk.bf16.mxu1 %vm331_vm0, %v5827_v0  ;;  %6661 = vmatprep.subr.msk.bf16.mxu0 %vm331_vm0, %v5827_v0  ;;  %v333_v1 = vsel %vm331_vm0, %v5827_v0, 0  ;;  %v5844_v3 = vld [vmem:[%s8515_s1 + $0x4] sm:$0x3]  ;;  %vm318_vm1 = vcmask 31744   ;;  %v433_v4 = vsel %vm331_vm0, %v286_v2, 0  ;;  %v8536_v43 = vmov 0 }
  0x15   : > { %6660 = vmatpush3.bf16.msra.mxu1 %v333_v1  ;;  %6390 = vmatpush3.bf16.msra.mxu0 %v333_v1  ;;  %s273_s19 = scalar_select %p272_p10, %s6909_s28, 1  ;;  %v658_v5 = vsel %vm331_vm0, %v5844_v3, 0  ;;  %v5861_v7 = vld [vmem:[%s8515_s1 + $0x6] sm:$0x3]  ;;  %v5878_v8 = vld [vmem:[%s8515_s1 + $0x8] sm:$0x3] }
  0x16   : > { %6663 = vmatprep.subr.msk.bf16.mxu1 %vm331_vm0, %v286_v2  ;;  %6664 = vmatprep.subr.msk.bf16.mxu0 %vm331_vm0, %v5844_v3  ;;  %vm516_vm2 = vsmask.f32 3328  ;;  %vm517_vm3 = vsmask.f32 7440  ;;  %v777_v13 = vsel %vm331_vm0, %v5861_v7, 0  ;;  %v6976_v14 = vsel %vm331_vm0, %v5878_v8, 0 }
  0x17   : > { %s6671_s20 = smul.u32 288, %s273_s19  ;;  %v6993_v38 = vld [vmem:[%s8515_s1 + $0xa] sm:$0x3]  ;;  %vm6997_vm4 = vmor %vm516_vm2, %vm517_vm3  ;;  %vm1694_vm5 = vcmask 122880   ;;  %vm1700_vm6 = vsmask.f32 256 }
  0x18   : > { %v8537_v43 = vsel %vm6997_vm4, 4294967295, %v8536_v43  ;;  %vm7163_vm7 = vmand %vm1694_vm5, %vm1700_vm6  ;;  %vm1732_vm8 = vsmask.f32 7938  ;;  %vm1692_vm10 = vcmask 125952   ;;  %vm2275_vm12 = vcmask 1042432   ;;  %s269_s22 = sand.u32 1, %s6833_s25  }
  0x19   : > { %s6955_s23 = scalar_lea.vmem %s8514_s0, %s6671_s20  ;;  %8538 = vst [vmem:[#allocation7_spill] sm:$0xff] %v8537_v43  ;;  %vm7171_vm9 = vmand %vm1694_vm5, %vm1732_vm8  ;;  %vm2276_vm13 = vcmask 1046532   ;;  %vm2070_vm15 = vcmask 130048   ;;  %vm5713_vm2 = vcmask 1041409   ;;  %vm5715_vm3 = vcmask 1042434   ;;  %s6253_s8 = sshll.u32 %s6909_s28, 8 }
  0x1a   : > { %v6715_v6 = vld [vmem:[%s6955_s23 + $0x48] ss:$8 sps:$4 sm:$0xff]   ;;  %v6717_v10 = vld [vmem:[%s6955_s23 + $0x58] ss:$8 sps:$4 sm:$0xff]   ;;  %v501_v16 = vld [vmem:[%s6955_s23 + $0x4] sm:$0x1]  ;;  %s8465_s15 = scalar_lea.hbm %s8521_s7, %s6253_s8 }
  0x1b   : > { %v6716_v9 = vld [vmem:[%s6955_s23 + $0x68] ss:$8 sps:$4 sm:$0xff]   ;;  %6391 = vmatprep.mubr.msk.bf16.mxu0 %vm318_vm1, %v6715_v6  ;;  %v6718_v11 = vld [vmem:[%s6955_s23 + $0x78] ss:$8 sps:$4 sm:$0xff]   ;;  %v503_v19 = vld [vmem:[%s6955_s23 + $0xc] sm:$0x1] }
  0x1c   : > { %6395 = vmatprep.mubr.msk.bf16.mxu1 %vm318_vm1, %v6716_v9  ;;  %6392 = vmatmul.mubr.msk.bf16.vlgmr.msra.gmra.mxu0 %vm318_vm1, %v6717_v10  ;;  %v6719_v12 = vld [vmem:[%s6955_s23] ss:$8 sps:$4 sm:$0xff]   ;;  %v6720_v18 = vld [vmem:[%s6955_s23 + $0x10] ss:$8 sps:$4 sm:$0xff]   ;;  %v529_v22 = vshll.u32 %v501_v16, 16  ;;  %v543_v25 = vshll.u32 %v503_v19, 16  ;;  %vm7187_vm11 = vmand %vm1692_vm10, %vm1732_vm8 }
  0x1d   : > { %6396 = vmatmul.mubr.msk.bf16.vlgmr.msra.gmra.mxu1 %vm318_vm1, %v6718_v11  ;;  %6410 = vmatpush3.bf16.msra.mxu0 %v658_v5  ;;  %v500_v15 = vld [vmem:[%s6955_s23] sm:$0xf]  ;;  %v502_v17 = vld [vmem:[%s6955_s23 + $0x8] sm:$0xf]  ;;  %v504_v26 = vld [vmem:[%s6955_s23 + $0x10] sm:$0xf] }
  0x1e   : > { %6400 = vmatpush3.bf16.msra.mxu1 %v433_v4  ;;  %6401 = vmatprep.mubr.msk.bf16.mxu1 %vm318_vm1, %v6719_v12  ;;  %v520_v20 = vshrl.u32 %v500_v15, 16  ;;  %v523_v21 = vshll.u32 %v500_v15, 16  ;;  %v534_v23 = vshrl.u32 %v502_v17, 16  ;;  %v537_v24 = vshll.u32 %v502_v17, 16  ;;  %v505_v27 = vld [vmem:[%s6955_s23 + $0x14] sm:$0x1]  ;;  %vm7331_vm14 = vmor %vm2275_vm12, %vm2276_vm13 }
  0x1f   : > { %6665 = vmatprep.subr.msk.bf16.mxu1 %vm331_vm0, %v5861_v7  ;;  %6666 = vmatprep.subr.msk.bf16.mxu0 %vm331_vm0, %v5878_v8  ;;  %v531_v30 = vrot.slane %v529_v22, 5  ;;  %v506_v32 = vld [vmem:[%s6955_s23 + $0x18] sm:$0xf]  ;;  %v545_v34 = vrot.slane %v543_v25, 5  ;;  %v507_v35 = vld [vmem:[%s6955_s23 + $0x1c] sm:$0x1] }
  0x20   : > { %v522_v28 = vrot.slane %v520_v20, 4  ;;  %v525_v29 = vrot.slane %v523_v21, 5  ;;  %v536_v31 = vrot.slane %v534_v23, 4  ;;  %v539_v33 = vrot.slane %v537_v24, 5  ;;  %v6721_v52 = vld [vmem:[%s6955_s23 + $0x20] ss:$8 sps:$4 sm:$0xff]  }
  0x21   : > { %v548_v36 = vshrl.u32 %v504_v26, 16  ;;  %v551_v37 = vshll.u32 %v504_v26, 16  ;;  %v557_v40 = vshll.u32 %v505_v27, 16  ;;  %v562_v41 = vshrl.u32 %v506_v32, 16  ;;  %v6722_v58 = vld [vmem:[%s6955_s23 + $0x30] ss:$8 sps:$4 sm:$0xff]  }
  0x22   : > { %v526_v39 = vor.u32 %v525_v29, %v522_v28  ;;  %v565_v42 = vshll.u32 %v506_v32, 16  ;;  %v540_v44 = vor.u32 %v539_v33, %v536_v31  ;;  %v571_v47 = vshll.u32 %v507_v35, 16  ;;  %v508_v59 = vld [vmem:[%s6955_s23 + $0x20] sm:$0xf]  ;;  %v509_v60 = vld [vmem:[%s6955_s23 + $0x24] sm:$0x1] }
  0x23   : > { %v550_v45 = vrot.slane %v548_v36, 4  ;;  %v553_v46 = vrot.slane %v551_v37, 5  ;;  %v559_v49 = vrot.slane %v557_v40, 5  ;;  %v564_v50 = vrot.slane %v562_v41, 4  ;;  %v510_v63 = vld [vmem:[%s6955_s23 + $0x28] sm:$0xf] }
  0x24   : > { %v527_v48 = vrot.slane %v526_v39, 4  ;;  %v567_v51 = vrot.slane %v565_v42, 5  ;;  %v541_v53 = vrot.slane %v540_v44, 4  ;;  %v573_v55 = vrot.slane %v571_v47, 5  ;;  %v511_v0 = vld [vmem:[%s6955_s23 + $0x2c] sm:$0x1] }
  0x25   : > { %6402 = vmatmul.mubr.msk.bf16.vlgmr.msra.gmra.mxu1 %vm318_vm1, %v6720_v18  ;;  %v554_v54 = vor.u32 %v553_v46, %v550_v45  ;;  %v576_v1 = vshrl.u32 %v508_v59, 16  ;;  %v579_v4 = vshll.u32 %v508_v59, 16  ;;  %v585_v5 = vshll.u32 %v509_v60, 16  ;;  %v512_v6 = vld [vmem:[%s6955_s23 + $0x30] sm:$0xf]  ;;  %s8474_s28 = scalar_lea.sflag [#allocation5], %s269_s22 }
  0x26   : > { %6420 = vmatpush3.bf16.msra.mxu1 %v777_v13  ;;  %v532_v56 = vsel %vm6997_vm4, %v527_v48, %v531_v30  ;;  %v568_v57 = vor.u32 %v567_v51, %v564_v50  ;;  %6405 = vmatprep.mubr.msk.bf16.mxu1 %vm318_vm1, %v6721_v52  ;;  %v546_v61 = vsel %vm6997_vm4, %v541_v53, %v545_v34  ;;  %v590_v9 = vshrl.u32 %v510_v63, 16  ;;  %v513_v11 = vld [vmem:[%s6955_s23 + $0x34] sm:$0x1]  ;;  %v514_v17 = vld [vmem:[%s6955_s23 + $0x38] sm:$0xf]  ;;  %s6845_s17 = smov [#allocation4]  }
  0x27   : > { %6667 = vmatprep.subr.msk.bf16.mxu1 %vm331_vm0, %v6993_v38  ;;  %v555_v62 = vrot.slane %v554_v54, 4  ;;  %v5845_v2 = vcombine.low %v532_v56, %v546_v61  ;;  %v578_v8 = vrot.slane %v576_v1, 4  ;;  %v593_v10 = vshll.u32 %v510_v63, 16  ;;  %v5920_v18 = vld [vmem:[%s8515_s1 + $0xc] sm:$0x3]  ;;  %s6785_s18 = sshll.u32 %s6845_s17, 4  ;;  %s6786_s18 = int_to_ptr.vmem [resolvable:$false] %s6785_s18 }
  0x28   : > { %v569_v3 = vrot.slane %v568_v57, 4  ;;  %v581_v13 = vrot.slane %v579_v4, 5  ;;  %v587_v15 = vrot.slane %v585_v5, 5  ;;  %v599_v16 = vshll.u32 %v511_v0, 16  ;;  %v515_v22 = vld [vmem:[%s6955_s23 + $0x3c] sm:$0x1] }
  0x29   : > { %v560_v7 = vsel %vm6997_vm4, %v555_v62, %v559_v49  ;;  %6411 = vmatprep.mubr.msk.bf16.mxu0 %vm318_vm1, %v5845_v2  ;;  %v592_v20 = vrot.slane %v590_v9, 4  ;;  %v595_v21 = vrot.slane %v593_v10, 5  ;;  %v604_v23 = vshrl.u32 %v512_v6, 16  ;;  %v6723_v35 = vld [vmem:[%s6955_s23 + $0x90] ss:$8 sps:$4 sm:$0xff]   ;;  %s6787_s19 = scalar_lea.vmem %s6786_s18, 512 }
  0x2a   : > { %v574_v12 = vsel %vm6997_vm4, %v569_v3, %v573_v55  ;;  %v582_v24 = vor.u32 %v581_v13, %v578_v8  ;;  %v601_v25 = vrot.slane %v599_v16, 5  ;;  %v607_v26 = vshll.u32 %v512_v6, 16  ;;  %v6724_v44 = vld [vmem:[%s6955_s23 + $0xa0] ss:$8 sps:$4 sm:$0xff]   ;;  %v5937_v51 = vld [vmem:[%s8515_s1 + $0xe] sm:$0x3] }
  0x2b   : > { %v5846_v19 = vcombine.low %v560_v7, %v574_v12  ;;  %v613_v27 = vshll.u32 %v513_v11, 16  ;;  %v596_v28 = vor.u32 %v595_v21, %v592_v20  ;;  %v606_v29 = vrot.slane %v604_v23, 4  ;;  %v6727_v53 = vld [vmem:[%s6955_s23 + $0xb0] ss:$8 sps:$4 sm:$0xff]   ;;  %v6728_v57 = vld [vmem:[%s6955_s23 + $0xc0] ss:$8 sps:$4 sm:$0xff]  }
  0x2c   : > { %v618_v30 = vshrl.u32 %v514_v17, 16  ;;  %v621_v31 = vshll.u32 %v514_v17, 16  ;;  %v583_v32 = vrot.slane %v582_v24, 4  ;;  %v609_v33 = vrot.slane %v607_v26, 5  ;;  %v5888_v59 = vld [vmem:[%s6955_s23 + $0x94] sm:$0x1] }
  0x2d   : > { %6406 = vmatmul.mubr.msk.bf16.gmra.mxu1 %vm318_vm1, %v6722_v58  ;;  %6412 = vmatmul.mubr.msk.bf16.vlgmr.msra.gmra.mxu0 %vm318_vm1, %v5846_v19  ;;  %v627_v34 = vshll.u32 %v515_v22, 16  ;;  %v597_v36 = vrot.slane %v596_v28, 4  ;;  %v615_v42 = vrot.slane %v613_v27, 5  ;;  %v1126_v49 = vsel %vm331_vm0, %v6993_v38, 0  ;;  %v6725_v38 = vld [vmem:[%s6955_s23 + $0xd8] ss:$8 sps:$4 sm:$0xff]  }
  0x2e   : > { %6430 = vmatpush3.bf16.msra.mxu0 %v6976_v14  ;;  %v620_v37 = vrot.slane %v618_v30, 4  ;;  %v623_v39 = vrot.slane %v621_v31, 5  ;;  %v588_v40 = vsel %vm6997_vm4, %v583_v32, %v587_v15  ;;  %v610_v41 = vor.u32 %v609_v33, %v606_v29  ;;  %6421 = vmatprep.mubr.msk.bf16.mxu1 %vm318_vm1, %v6723_v35  ;;  %v5887_v58 = vld [vmem:[%s6955_s23 + $0x90] sm:$0xf]  ;;  %v5889_v60 = vld [vmem:[%s6955_s23 + $0x98] sm:$0xf] }
  0x2f   : > { %6668 = vmatprep.subr.msk.bf16.mxu0 %vm331_vm0, %v5920_v18  ;;  %v602_v14 = vsel %vm6997_vm4, %v597_v36, %v601_v25  ;;  %v629_v46 = vrot.slane %v627_v34, 5  ;;  %v1245_v56 = vsel %vm331_vm0, %v5920_v18, 0  ;;  %v5890_v61 = vld [vmem:[%s6955_s23 + $0x9c] sm:$0x1]  ;;  %v988_v62 = vshrl.u32 %v5887_v58, 16 }
  0x30   : > { %v624_v45 = vor.u32 %v623_v39, %v620_v37  ;;  %v5847_v47 = vcombine.low %v588_v40, %v602_v14  ;;  %v611_v48 = vrot.slane %v610_v41, 4  ;;  %v991_v63 = vshll.u32 %v5887_v58, 16  ;;  %v5891_v2 = vld [vmem:[%s6955_s23 + $0xa0] sm:$0xf]  ;;  %v6726_v3 = vld [vmem:[%s6955_s23 + $0xe8] ss:$8 sps:$4 sm:$0xff]  }
  0x31   : > { %v997_v0 = vshll.u32 %v5888_v59, 16  ;;  %v1002_v1 = vshrl.u32 %v5889_v60, 16  ;;  %v1005_v4 = vshll.u32 %v5889_v60, 16  ;;  %v1011_v5 = vshll.u32 %v5890_v61, 16  ;;  %v5892_v6 = vld [vmem:[%s6955_s23 + $0xa4] sm:$0x1] }
  0x32   : > { %v625_v50 = vrot.slane %v624_v45, 4  ;;  %6415 = vmatprep.mubr.msk.bf16.mxu0 %vm318_vm1, %v5847_v47  ;;  %v616_v52 = vsel %vm6997_vm4, %v611_v48, %v615_v42  ;;  %v5893_v7 = vld [vmem:[%s6955_s23 + $0xa8] sm:$0xf]  ;;  %v6729_v8 = vld [vmem:[%s6955_s23 + $0xf8] ss:$8 sps:$4 sm:$0xff]   ;;  %v990_v9 = vrot.slane %v988_v62, 4 }
  0x33   : > { %v993_v10 = vrot.slane %v991_v63, 5  ;;  %v999_v11 = vrot.slane %v997_v0, 5  ;;  %v1004_v12 = vrot.slane %v1002_v1, 4  ;;  %v5894_v13 = vld [vmem:[%s6955_s23 + $0xac] sm:$0x1]  ;;  %v1007_v15 = vrot.slane %v1005_v4, 5 }
  0x34   : > { %v630_v54 = vsel %vm6997_vm4, %v625_v50, %v629_v46  ;;  %v1013_v16 = vrot.slane %v1011_v5, 5  ;;  %v1016_v17 = vshrl.u32 %v5891_v2, 16  ;;  %v1019_v18 = vshll.u32 %v5891_v2, 16  ;;  %v7071_v27 = vld [vmem:[%s8515_s1 + $0x10] sm:$0x3] }
  0x35   : > { %6422 = vmatmul.mubr.msk.bf16.vlgmr.msra.gmra.mxu1 %vm318_vm1, %v6724_v44  ;;  %v5848_v55 = vcombine.low %v616_v52, %v630_v54  ;;  %v994_v19 = vor.u32 %v993_v10, %v990_v9  ;;  %v1025_v20 = vshll.u32 %v5892_v6, 16  ;;  %v1030_v21 = vshrl.u32 %v5893_v7, 16  ;;  %v5895_v39 = vld [vmem:[%s6955_s23 + $0xb0] sm:$0xf]  ;;  %v5896_v40 = vld [vmem:[%s6955_s23 + $0xb4] sm:$0x1] }
  0x36   : > { %6440 = vmatpush3.bf16.msra.mxu1 %v1126_v49  ;;  %6425 = vmatprep.mubr.msk.bf16.mxu1 %vm318_vm1, %v6727_v53  ;;  %v1033_v22 = vshll.u32 %v5893_v7, 16  ;;  %v1008_v23 = vor.u32 %v1007_v15, %v1004_v12  ;;  %v1018_v24 = vrot.slane %v1016_v17, 4  ;;  %v1021_v25 = vrot.slane %v1019_v18, 5  ;;  %v5897_v41 = vld [vmem:[%s6955_s23 + $0xb8] sm:$0xf] }
  0x37   : > { %6669 = vmatprep.subr.msk.bf16.mxu1 %vm331_vm0, %v5937_v51  ;;  %6416 = vmatmul.mubr.msk.bf16.gmra.mxu0 %vm318_vm1, %v5848_v55  ;;  %v1039_v26 = vshll.u32 %v5894_v13, 16  ;;  %v995_v28 = vrot.slane %v994_v19, 4  ;;  %v1032_v29 = vrot.slane %v1030_v21, 4  ;;  %v1364_v31 = vsel %vm331_vm0, %v5937_v51, 0  ;;  %v6730_v42 = vld [vmem:[%s6955_s23 + $0x108] ss:$8 sps:$4 sm:$0xff]  }
  0x38   : > { %6431 = vmatprep.mubr.msk.bf16.mxu0 %vm318_vm1, %v6725_v38  ;;  %v1035_v30 = vrot.slane %v1033_v22, 5  ;;  %v1009_v32 = vrot.slane %v1008_v23, 4  ;;  %v1022_v33 = vor.u32 %v1021_v25, %v1018_v24  ;;  %v1027_v34 = vrot.slane %v1025_v20, 5  ;;  %v5898_v45 = vld [vmem:[%s6955_s23 + $0xbc] sm:$0x1] }
  0x39   : > { %v1041_v35 = vrot.slane %v1039_v26, 5  ;;  %v1000_v36 = vsel %vm6997_vm4, %v995_v28, %v999_v11  ;;  %v1044_v46 = vshrl.u32 %v5895_v39, 16  ;;  %v1047_v47 = vshll.u32 %v5895_v39, 16  ;;  %v6731_v50 = vld [vmem:[%s6955_s23 + $0x8] ss:$8 sps:$4 sm:$0xff]  }
  0x3a   : > { %v1036_v37 = vor.u32 %v1035_v30, %v1032_v29  ;;  %v1014_v44 = vsel %vm6997_vm4, %v1009_v32, %v1013_v16  ;;  %v1023_v14 = vrot.slane %v1022_v33, 4  ;;  %v1053_v51 = vshll.u32 %v5896_v40, 16  ;;  %v5899_v53 = vld [vmem:[%s6955_s23 + $0xc0] sm:$0xf]  ;;  %v5901_v62 = vld [vmem:[%s6955_s23 + $0xc8] sm:$0xf] }
  0x3b   : > { %v5904_v48 = vcombine.low %v1000_v36, %v1014_v44  ;;  %v1058_v52 = vshrl.u32 %v5897_v41, 16  ;;  %v1046_v38 = vrot.slane %v1044_v46, 4  ;;  %v1049_v55 = vrot.slane %v1047_v47, 5  ;;  %v5902_v2 = vld [vmem:[%s6955_s23 + $0xcc] sm:$0x1] }
  0x3c   : > { %v1037_v49 = vrot.slane %v1036_v37, 4  ;;  %v1028_v54 = vsel %vm6997_vm4, %v1023_v14, %v1027_v34  ;;  %v1055_v59 = vrot.slane %v1053_v51, 5  ;;  %v1067_v61 = vshll.u32 %v5898_v45, 16  ;;  %v6732_v16 = vld [vmem:[%s6955_s23 + $0x18] ss:$8 sps:$4 sm:$0xff]  }
  0x3d   : > { %6426 = vmatmul.mubr.msk.bf16.gmra.mxu1 %vm318_vm1, %v6728_v57  ;;  %v5900_v57 = vld [vmem:[%s6955_s23 + $0xc4] sm:$0x1]  ;;  %v1060_v60 = vrot.slane %v1058_v52, 4  ;;  %v1050_v0 = vor.u32 %v1049_v55, %v1046_v38  ;;  %v1075_v5 = vshll.u32 %v5899_v53, 16  ;;  %v1086_v7 = vshrl.u32 %v5901_v62, 16 }
  0x3e   : > { %6441 = vmatprep.mubr.msk.bf16.mxu1 %vm318_vm1, %v5904_v48  ;;  %v1042_v58 = vsel %vm6997_vm4, %v1037_v49, %v1041_v35  ;;  %v1069_v4 = vrot.slane %v1067_v61, 5  ;;  %v1081_v6 = vshll.u32 %v5900_v57, 16  ;;  %v1089_v11 = vshll.u32 %v5901_v62, 16  ;;  %v6733_v29 = vld [vmem:[%s6955_s23 + $0x28] ss:$8 sps:$4 sm:$0xff]  }
  0x3f   : > { %6432 = vmatmul.mubr.msk.bf16.vlgmr.msra.gmra.mxu0 %vm318_vm1, %v6726_v3  ;;  %v5905_v63 = vcombine.low %v1028_v54, %v1042_v58  ;;  %v1072_v3 = vshrl.u32 %v5899_v53, 16  ;;  %v1077_v12 = vrot.slane %v1075_v5, 5  ;;  %v1088_v13 = vrot.slane %v1086_v7, 4  ;;  %v5946_v30 = vld [vmem:[%s6955_s23 + $0x8] sm:$0xf] }
  0x40   : > { %6450 = vmatpush3.bf16.msra.mxu0 %v1245_v56  ;;  %6435 = vmatprep.mubr.msk.bf16.mxu0 %vm318_vm1, %v6729_v8  ;;  %v1061_v56 = vshll.u32 %v5897_v41, 16  ;;  %v1051_v8 = vrot.slane %v1050_v0, 4  ;;  %v1095_v15 = vshll.u32 %v5902_v2, 16  ;;  %v1091_v19 = vrot.slane %v1089_v11, 5  ;;  %v6735_v32 = vld [vmem:[%s6955_s23 + $0x50] ss:$8 sps:$4 sm:$0xff]  }
  0x41   : > { %6670 = vmatprep.subr.msk.bf16.mxu0 %vm331_vm0, %v7071_v27  ;;  %v1074_v10 = vrot.slane %v1072_v3, 4  ;;  %v1083_v21 = vrot.slane %v1081_v6, 5  ;;  %v1594_v25 = vsel %vm331_vm0, %v7071_v27, 0  ;;  %v5947_v33 = vld [vmem:[%s6955_s23 + $0xc] sm:$0x1]  ;;  %v1456_v35 = vshrl.u32 %v5946_v30, 16 }
  0x42   : > { %v1063_v1 = vrot.slane %v1061_v56, 5  ;;  %v1056_v17 = vsel %vm6997_vm4, %v1051_v8, %v1055_v59  ;;  %v1092_v23 = vor.u32 %v1091_v19, %v1088_v13  ;;  %v1097_v24 = vrot.slane %v1095_v15, 5  ;;  %v5948_v34 = vld [vmem:[%s6955_s23 + $0x10] sm:$0xf]  ;;  %v5949_v37 = vld [vmem:[%s6955_s23 + $0x14] sm:$0x1] }
  0x43   : > { %v1078_v20 = vor.u32 %v1077_v12, %v1074_v10  ;;  %v1459_v39 = vshll.u32 %v5946_v30, 16  ;;  %v1465_v27 = vshll.u32 %v5947_v33, 16  ;;  %v1470_v40 = vshrl.u32 %v5948_v34, 16  ;;  %v5950_v45 = vld [vmem:[%s6955_s23 + $0x18] sm:$0xf] }
  0x44   : > { %v1064_v9 = vor.u32 %v1063_v1, %v1060_v60  ;;  %v1473_v44 = vshll.u32 %v5948_v34, 16  ;;  %v1479_v14 = vshll.u32 %v5949_v37, 16  ;;  %v6734_v51 = vld [vmem:[%s6955_s23 + $0x38] ss:$8 sps:$4 sm:$0xff]   ;;  %v5953_v38 = vld [vmem:[%s6955_s23 + $0x24] sm:$0x1] }
  0x45   : > { %6442 = vmatmul.mubr.msk.bf16.vlgmr.msra.gmra.mxu1 %vm318_vm1, %v5905_v63  ;;  %v1079_v28 = vrot.slane %v1078_v20, 4  ;;  %v1461_v47 = vrot.slane %v1459_v39, 5  ;;  %v1467_v48 = vrot.slane %v1465_v27, 5  ;;  %v1472_v49 = vrot.slane %v1470_v40, 4  ;;  %v5952_v54 = vld [vmem:[%s6955_s23 + $0x20] sm:$0xf] }
  0x46   : > { %6460 = vmatpush3.bf16.msra.mxu1 %v1364_v31  ;;  %v1065_v18 = vrot.slane %v1064_v9, 4  ;;  %v1093_v31 = vrot.slane %v1092_v23, 4  ;;  %v1475_v52 = vrot.slane %v1473_v44, 5  ;;  %v1481_v53 = vrot.slane %v1479_v14, 5  ;;  %v6736_v63 = vld [vmem:[%s6955_s23 + $0x60] ss:$8 sps:$4 sm:$0xff]  }
  0x47   : > { %6436 = vmatmul.mubr.msk.bf16.gmra.mxu0 %vm318_vm1, %v6730_v42  ;;  %v1084_v36 = vsel %vm6997_vm4, %v1079_v28, %v1083_v21  ;;  %v1458_v42 = vrot.slane %v1456_v35, 4  ;;  %v1484_v56 = vshrl.u32 %v5950_v45, 16  ;;  %v1487_v57 = vshll.u32 %v5950_v45, 16  ;;  %v6737_v6 = vld [vmem:[%s6955_s23 + $0x70] ss:$8 sps:$4 sm:$0xff]  }
  0x48   : > { %6451 = vmatprep.mubr.msk.bf16.mxu0 %vm318_vm1, %v6731_v50  ;;  %v1070_v22 = vsel %vm6997_vm4, %v1065_v18, %v1069_v4  ;;  %v1098_v41 = vsel %vm6997_vm4, %v1093_v31, %v1097_v24  ;;  %v5951_v50 = vld [vmem:[%s6955_s23 + $0x1c] sm:$0x1]  ;;  %v1476_v59 = vor.u32 %v1475_v52, %v1472_v49  ;;  %v1498_v60 = vshrl.u32 %v5952_v54, 16  ;;  %v5954_v11 = vld [vmem:[%s6955_s23 + $0x28] sm:$0xf] }
  0x49   : > { %v5906_v26 = vcombine.low %v1056_v17, %v1070_v22  ;;  %v5907_v46 = vcombine.low %v1084_v36, %v1098_v41  ;;  %v1462_v55 = vor.u32 %v1461_v47, %v1458_v42  ;;  %v1493_v58 = vshll.u32 %v5951_v50, 16  ;;  %v5955_v15 = vld [vmem:[%s6955_s23 + $0x2c] sm:$0x1]  ;;  %v5957_v17 = vld [vmem:[%s6955_s23 + $0x34] sm:$0x1] }
  0x4a   : > { %v1501_v61 = vshll.u32 %v5952_v54, 16  ;;  %v1507_v62 = vshll.u32 %v5953_v38, 16  ;;  %v1486_v1 = vrot.slane %v1484_v56, 4  ;;  %v1489_v2 = vrot.slane %v1487_v57, 5  ;;  %v5958_v22 = vld [vmem:[%s6955_s23 + $0x38] sm:$0xf] }
  0x4b   : > { %6445 = vmatprep.mubr.msk.bf16.mxu1 %vm318_vm1, %v5906_v26  ;;  %v1463_v0 = vrot.slane %v1462_v55, 4  ;;  %v1477_v3 = vrot.slane %v1476_v59, 4  ;;  %v1500_v4 = vrot.slane %v1498_v60, 4  ;;  %v1495_v9 = vrot.slane %v1493_v58, 5  ;;  %v5959_v28 = vld [vmem:[%s6955_s23 + $0x3c] sm:$0x1] }
  0x4c   : > { %v1503_v5 = vrot.slane %v1501_v61, 5  ;;  %v1490_v8 = vor.u32 %v1489_v2, %v1486_v1  ;;  %v1509_v10 = vrot.slane %v1507_v62, 5  ;;  %v1512_v20 = vshrl.u32 %v5954_v11, 16  ;;  %v5960_v33 = vld [vmem:[%s6955_s23 + $0x40] sm:$0xf] }
  0x4d   : > { %6446 = vmatmul.mubr.msk.bf16.gmra.mxu1 %vm318_vm1, %v5907_v46  ;;  %v1468_v7 = vsel %vm6997_vm4, %v1463_v0, %v1467_v48  ;;  %v1482_v12 = vsel %vm6997_vm4, %v1477_v3, %v1481_v53  ;;  %v1515_v21 = vshll.u32 %v5954_v11, 16  ;;  %v1521_v24 = vshll.u32 %v5955_v15, 16  ;;  %v5961_v39 = vld [vmem:[%s6955_s23 + $0x44] sm:$0x1]  ;;  %v6738_v40 = vld [vmem:[%s6955_s23 + $0x80] ss:$8 sps:$4 sm:$0xff]  }
  0x4e   : > { %6461 = vmatprep.mubr.msk.bf16.mxu1 %vm318_vm1, %v6735_v32  ;;  %v1504_v13 = vor.u32 %v1503_v5, %v1500_v4  ;;  %v5963_v18 = vcombine.low %v1468_v7, %v1482_v12  ;;  %v1491_v19 = vrot.slane %v1490_v8, 4  ;;  %v1514_v30 = vrot.slane %v1512_v20, 4  ;;  %v1711_v3 = vld [vmem:[#allocation2 + $0x18] sm:$0x1]  ;;  %v1743_v5 = vld [vmem:[#allocation2 + $0x1c] sm:$0x1] }
  0x4f   : > { %6452 = vmatmul.mubr.msk.bf16.vlgmr.msra.gmra.mxu0 %vm318_vm1, %v6732_v16  ;;  %v5956_v16 = vld [vmem:[%s6955_s23 + $0x30] sm:$0xf]  ;;  %v1517_v31 = vrot.slane %v1515_v21, 5  ;;  %v1535_v32 = vshll.u32 %v5957_v17, 16  ;;  %v1523_v35 = vrot.slane %v1521_v24, 5  ;;  %v1540_v44 = vshrl.u32 %v5958_v22, 16 }
  0x50   : > { %6470 = vmatpush3.bf16.msra.mxu0 %v1594_v25  ;;  %6455 = vmatprep.mubr.msk.bf16.mxu0 %vm318_vm1, %v6733_v29  ;;  %v1505_v23 = vrot.slane %v1504_v13, 4  ;;  %v1526_v25 = vshrl.u32 %v5956_v16, 16  ;;  %v1529_v26 = vshll.u32 %v5956_v16, 16  ;;  %v1496_v29 = vsel %vm6997_vm4, %v1491_v19, %v1495_v9  ;;  %v1705_v9 = vld [vmem:[#allocation2 + $0x8] sm:$0x1]  ;;  %s5817_s23 = sshll.u32 %s269_s22, 4 }
  0x51   : > { %v1518_v41 = vor.u32 %v1517_v31, %v1514_v30  ;;  %v1537_v42 = vrot.slane %v1535_v32, 5  ;;  %v1543_v45 = vshll.u32 %v5958_v22, 16  ;;  %v1549_v46 = vshll.u32 %v5959_v28, 16  ;;  %v1714_v13 = vld [vmem:[#allocation2 + $0x20] sm:$0x1]  ;;  %s8412_s29 = scalar_lea.vmem [#allocation4], %s5817_s23 }
  0x52   : > { %v1510_v34 = vsel %vm6997_vm4, %v1505_v23, %v1509_v10  ;;  %v1528_v36 = vrot.slane %v1526_v25, 4  ;;  %v1531_v37 = vrot.slane %v1529_v26, 5  ;;  %v1554_v47 = vshrl.u32 %v5960_v33, 16  ;;  %v1737_v10 = vld [vmem:[#allocation2 + $0xc] sm:$0x1]  ;;  %s5751_s9 = sshll.u32 %s8412_s29, 4  ;;  %s8467_s9 = int_to_ptr.vmem [resolvable:$true] %s5751_s9 }
  0x53   : > { %v5964_v27 = vcombine.low %v1496_v29, %v1510_v34  ;;  %v1519_v48 = vrot.slane %v1518_v41, 4  ;;  %v1542_v49 = vrot.slane %v1540_v44, 4  ;;  %v1557_v50 = vshll.u32 %v5960_v33, 16  ;;  %v1746_v15 = vld [vmem:[#allocation2 + $0x24] sm:$0x1]  ;;  %s6781_s16 = scalar_lea.vmem %s8467_s9, 256  ;;  %p6788_p0 = scmp.lt.s32.totalorder %s8467_s9, %s6786_s18 }
  0x54   : > { %v1532_v14 = vor.u32 %v1531_v37, %v1528_v36  ;;  %v1545_v53 = vrot.slane %v1543_v45, 5  ;;  %v1551_v54 = vrot.slane %v1549_v46, 5  ;;  %v1556_v38 = vrot.slane %v1554_v47, 4  ;;  %v1708_v19 = vld [vmem:[#allocation2 + $0x10] sm:$0x1]  ;;  %v6740_v45 = vld [vmem:[%s8517_s3] sm:$0xff]   ;;  %p6782_p11 = scmp.ne.s32.totalorder %s8467_s9, %s6781_s16  ;;  %p6789_p1 = scmp.lt.s32.totalorder %s6787_s19, %s6781_s16 }
  0x55   : > { %6462 = vmatmul.mubr.msk.bf16.vlgmr.msra.gmra.mxu1 %vm318_vm1, %v6736_v63  ;;  %v1524_v55 = vsel %vm6997_vm4, %v1519_v48, %v1523_v35  ;;  %v1559_v56 = vrot.slane %v1557_v50, 5  ;;  %v8539_v4 = vmov 0  ;;  %v8542_v7 = vmov 0  ;;  %v1740_v20 = vld [vmem:[#allocation2 + $0x14] sm:$0x1]  ;;  %6489 = vmatprep.subr.bf16.mxu0 %v6740_v45  ;;  %v6739_v46 = vld [vmem:[%s8517_s3 + $0x8] sm:$0xff]  }
  0x56   : > { %6465 = vmatprep.mubr.msk.bf16.mxu1 %vm318_vm1, %v6737_v6  ;;  %v1533_v52 = vrot.slane %v1532_v14, 4  ;;  %v1546_v59 = vor.u32 %v1545_v53, %v1542_v49  ;;  %v8540_v4 = vsel %vm7163_vm7, 4294967295, %v8539_v4  ;;  %v1712_v6 = vsel %vm7163_vm7, 0, %v1711_v3  ;;  %v1723_v24 = vld [vmem:[#allocation2 + $0x38] sm:$0x1]  ;;  %6479 = vmatprep.subr.bf16.mxu1 %v6739_v46  ;;  %v7232_v47 = vld [vmem:[%s8517_s3 + $0x10] sm:$0xff]   ;;  %p6783_p12 = pnand %p6782_p11, %p6926_p5  ;;  %p6790_p2 = por %p6789_p1, %p6788_p0 }
  0x57   : > { %6456 = vmatmul.mubr.msk.bf16.gmra.mxu0 %vm318_vm1, %v6734_v51  ;;  %v1563_v51 = vshll.u32 %v5961_v39, 16  ;;  %v1560_v61 = vor.u32 %v1559_v56, %v1556_v38  ;;  %8541 = vst [vmem:[#allocation8_spill] sm:$0xff] %v8540_v4  ;;  %v8543_v7 = vsel %vm7171_vm9, 4294967295, %v8542_v7  ;;  %1713 = vst [vmem:[#allocation2 + $0x18] sm:$0x1] %v1712_v6  ;;  %v1744_v8 = vsel %vm7171_vm9, 0, %v1743_v5  ;;  %6480 = vmatpush3.bf16.msra.mxu1 %v6739_v46 }
  0x58   : > { %6471 = vmatprep.mubr.msk.bf16.mxu0 %vm318_vm1, %v5963_v18  ;;  %v1538_v58 = vsel %vm6997_vm4, %v1533_v52, %v1537_v42  ;;  %v1547_v62 = vrot.slane %v1546_v59, 4  ;;  %8544 = vst [vmem:[#allocation9_spill] sm:$0xff] %v8543_v7  ;;  %1745 = vst [vmem:[#allocation2 + $0x1c] sm:$0x1] %v1744_v8  ;;  %v1706_v11 = vsel %vm7163_vm7, 0, %v1705_v9  ;;  %v1738_v12 = vsel %vm7171_vm9, 0, %v1737_v10  ;;  %6499 = vmatprep.subr.bf16.mxu1 %v7232_v47  ;;  %p6784_p13 = pneg %p6783_p12 }
  0x59   : > { %v1565_v57 = vrot.slane %v1563_v51, 5  ;;  %v5965_v60 = vcombine.low %v1524_v55, %v1538_v58  ;;  %v1561_v63 = vrot.slane %v1560_v61, 4  ;;  %1707 = vst [vmem:[#allocation2 + $0x8] sm:$0x1] %v1706_v11  ;;  %1739 = vst [vmem:[#allocation2 + $0xc] sm:$0x1] %v1738_v12 }
  0x5a   : > { %v1552_v0 = vsel %vm6997_vm4, %v1547_v62, %v1551_v54  ;;  %v1715_v16 = vsel %vm7163_vm7, 0, %v1714_v13  ;;  %v1747_v17 = vsel %vm7171_vm9, 0, %v1746_v15  ;;  %v8545_v18 = vmov 0  ;;  %v1755_v25 = vld [vmem:[#allocation2 + $0x3c] sm:$0x1]  ;;  %p6791_p3 = pnand %p6790_p2, %p6784_p13 }
  0x5b   : > { %v1566_v1 = vsel %vm6997_vm4, %v1561_v63, %v1565_v57  ;;  %v8546_v18 = vsel %vm7187_vm11, 4294967295, %v8545_v18  ;;  %1716 = vst [vmem:[#allocation2 + $0x20] sm:$0x1] %v1715_v16  ;;  %1748 = vst [vmem:[#allocation2 + $0x24] sm:$0x1] %v1747_v17  ;;  %v1709_v21 = vsel %vm7163_vm7, 0, %v1708_v19 }
  0x5c   : > { %v5966_v2 = vcombine.low %v1552_v0, %v1566_v1  ;;  %8547 = vst [vmem:[#allocation10_spill] sm:$0xff] %v8546_v18  ;;  %v1741_v22 = vsel %vm7171_vm9, 0, %v1740_v20  ;;  %v6843_v23 = vmov 0   ;;  %1710 = vst [vmem:[#allocation2 + $0x10] sm:$0x1] %v1709_v21  ;;  %v1724_v26 = vsel %vm7163_vm7, 0, %v1723_v24 }
  0x5d   : > { %6466 = vmatmul.mubr.msk.bf16.gmra.mxu1 %vm318_vm1, %v6738_v40  ;;  %1693 = vst.msk [vmem:[#allocation2] sm:$0xf] %vm1692_vm10, %v6843_v23  ;;  %1697 = vst.msk [vmem:[#allocation2 + $0x48] sm:$0xf] %vm1692_vm10, %v6843_v23  ;;  %v1756_v28 = vsel %vm7171_vm9, 0, %v1755_v25  ;;  %v7237_v48 = vld [vmem:[%s8517_s3 + $0x18] sm:$0xff]  }
  0x5e   : > { %1695 = vst.msk [vmem:[#allocation2 + $0x4] sm:$0x1] %vm1694_vm5, %v6843_v23  ;;  %1698 = vst.msk [vmem:[#allocation2 + $0x4c] sm:$0x1] %vm1694_vm5, %v6843_v23  ;;  %v1717_v29 = vld [vmem:[#allocation2 + $0x28] sm:$0x1] }
  0x5f   : > { %6472 = vmatmul.mubr.msk.bf16.vlgmr.msra.gmra.mxu0 %vm318_vm1, %v5964_v27  ;;  %3476 = vst.msk [vmem:[#allocation3] sm:$0xf] %vm1692_vm10, %v6843_v23  ;;  %3479 = vst.msk [vmem:[#allocation3 + $0x48] sm:$0xf] %vm1692_vm10, %v6843_v23  ;;  %v1749_v30 = vld [vmem:[#allocation2 + $0x2c] sm:$0x1] }
  0x60   : > { %6475 = vmatprep.mubr.msk.bf16.mxu0 %vm318_vm1, %v5965_v60  ;;  %3477 = vst.msk [vmem:[#allocation3 + $0x4] sm:$0x1] %vm1694_vm5, %v6843_v23  ;;  %3480 = vst.msk [vmem:[#allocation3 + $0x4c] sm:$0x1] %vm1694_vm5, %v6843_v23  ;;  %v1718_v31 = vsel %vm7163_vm7, 0, %v1717_v29  ;;  %v1750_v32 = vsel %vm7171_vm9, 0, %v1749_v30  ;;  %6490 = vmatpush3.bf16.msra.mxu0 %v6740_v45 }
  0x61   : > { %1742 = vst [vmem:[#allocation2 + $0x14] sm:$0x1] %v1741_v22  ;;  %1725 = vst [vmem:[#allocation2 + $0x38] sm:$0x1] %v1724_v26  ;;  %v1726_v33 = vld [vmem:[#allocation2 + $0x40] sm:$0x1]  ;;  %6509 = vmatprep.subr.bf16.mxu0 %v7237_v48 }
  0x62   : > { %1757 = vst [vmem:[#allocation2 + $0x3c] sm:$0x1] %v1756_v28  ;;  %1719 = vst [vmem:[#allocation2 + $0x28] sm:$0x1] %v1718_v31  ;;  %v1758_v34 = vld [vmem:[#allocation2 + $0x44] sm:$0x1] }
  0x63   : > { %1751 = vst [vmem:[#allocation2 + $0x2c] sm:$0x1] %v1750_v32  ;;  %v1727_v36 = vsel %vm7163_vm7, 0, %v1726_v33  ;;  %v1759_v37 = vsel %vm7171_vm9, 0, %v1758_v34  ;;  %v1720_v40 = vld [vmem:[#allocation2 + $0x30] sm:$0x1] }
  0x64   : > { %v1702_v35 = vld [vmem:[#allocation2] sm:$0x1]  ;;  %1728 = vst [vmem:[#allocation2 + $0x40] sm:$0x1] %v1727_v36  ;;  %1760 = vst [vmem:[#allocation2 + $0x44] sm:$0x1] %v1759_v37 }
  0x65   : > { %v1703_v39 = vsel %vm7163_vm7, 0, %v1702_v35  ;;  %v1734_v27 = vld [vmem:[#allocation2 + $0x4] sm:$0x1]  ;;  %v1752_v41 = vld [vmem:[#allocation2 + $0x34] sm:$0x1]  ;;  %v1721_v44 = vsel %vm7163_vm7, 0, %v1720_v40 }
  0x66   : > { %1704 = vst [vmem:[#allocation2] sm:$0x1] %v1703_v39  ;;  %v1735_v42 = vsel %vm7171_vm9, 0, %v1734_v27  ;;  %v1753_v14 = vsel %vm7171_vm9, 0, %v1752_v41  ;;  %1722 = vst [vmem:[#allocation2 + $0x30] sm:$0x1] %v1721_v44 }
  0x67   : > { %6476 = vmatmul.mubr.msk.bf16.gmra.mxu0 %vm318_vm1, %v5966_v2  ;;  %1736 = vst [vmem:[#allocation2 + $0x4] sm:$0x1] %v1735_v42  ;;  %1754 = vst [vmem:[#allocation2 + $0x34] sm:$0x1] %v1753_v14  ;;  %v1729_v6 = vld [vmem:[#allocation2 + $0x48] sm:$0x1] }
  0x68   : > { %v1761_v8 = vld [vmem:[#allocation2 + $0x4c] sm:$0x1]  ;;  %v1730_v10 = vsel %vm7163_vm7, 0, %v1729_v6  ;;  %vm5423_vm0 = vcmask 254976   ;;  %vm5648_vm1 = vcmask 261120   ;;  %vm5732_vm5 = vcmask 257024  }
  0x69   : > { %v1762_v11 = vsel %vm7171_vm9, 0, %v1761_v8  ;;  %1731 = vst [vmem:[#allocation2 + $0x48] sm:$0x1] %v1730_v10 }
  0x6a   : > { %1763 = vst [vmem:[#allocation2 + $0x4c] sm:$0x1] %v1762_v11 }
  0x6d   : > { %v7271_v45 = vld [vmem:[#allocation2] sm:$0xf] }
  0xdc   : > { %v6393_v51 = vpop.f32.mrf.mxu0 }
  0xdd   : > { %v7241_v49 = vpop.f32.mrf.mxu1 }
  0xde   : > { %v369_v54 = vpop.f32.mrf.mxu0 }
  0xdf   : > { %v7243_v50 = vpop.f32.mrf.mxu1 }
  0xe0   : > { %v6394_v56 = vpop.f32.mrf.mxu0 }
  0xe1   : > { %v7245_v52 = vpop.f32.mrf.mxu1 }
  0xe2   : > { %v372_v59 = vpop.f32.mrf.mxu0 }
  0xe3   : > { %v7247_v53 = vpop.f32.mrf.mxu1 }
  0xe5   : > { %v6403_v38 = vpop.f32.mrf.mxu1 }
  0xe6   : > { %v478_v33 = vadd.f32 %v6403_v38, %v6393_v51  ;;  %v1938_v38 = vshrl.u32 %v7271_v45, 16 }
  0xe7   : > { %v469_v55 = vpop.f32.mrf.mxu1 }
  0xe8   : > { %v470_v36 = vadd.f32 %v469_v55, %v369_v54 }
  0xe9   : > { %v6404_v57 = vpop.f32.mrf.mxu1 }
  0xea   : > { %v481_v27 = vadd.f32 %v6404_v57, %v6394_v56  ;;  %v1941_v56 = vshll.u32 %v7271_v45, 16 }
  0xeb   : > { %v472_v58 = vpop.f32.mrf.mxu1 }
  0xec   : > { %v473_v44 = vadd.f32 %v472_v58, %v372_v59 }
  0xed   : > { %v6407_v60 = vpop.f32.mrf.mxu1  ;;  %v6413_v61 = vpop.f32.mrf.mxu0 }
  0xee   : > { %v727_v39 = vadd.f32 %v6413_v61, %v478_v33  ;;  %v494_v57 = vadd.f32 %v6407_v60, %v7241_v49 }
  0xef   : > { %v485_v62 = vpop.f32.mrf.mxu1  ;;  %v694_v63 = vpop.f32.mrf.mxu0 }
  0xf0   : > { %v725_v42 = vadd.f32 %v694_v63, %v470_v36 }
  0xf1   : > { %v6408_v0 = vpop.f32.mrf.mxu1  ;;  %v6414_v1 = vpop.f32.mrf.mxu0 }
  0xf2   : > { %v728_v6 = vadd.f32 %v6414_v1, %v481_v27  ;;  %v486_v1 = vadd.f32 %v485_v62, %v7243_v50 }
  0xf3   : > { %v7249_v2 = vpop.f32.mrf.mxu1  ;;  %v697_v3 = vpop.f32.mrf.mxu0 }
  0xf4   : > { %v726_v11 = vadd.f32 %v697_v3, %v473_v44  ;;  %v7282_v44 = vld [vmem:[#allocation2 + $0x4] sm:$0x1] }
  0xf5   : > { %v6423_v5 = vpop.f32.mrf.mxu1 }
  0xf6   : > { %v846_v14 = vadd.f32 %v6423_v5, %v727_v39 }
  0xf7   : > { %v813_v9 = vpop.f32.mrf.mxu1  ;;  %v6417_v12 = vpop.f32.mrf.mxu0 }
  0xf8   : > { %v844_v8 = vadd.f32 %v813_v9, %v725_v42  ;;  %v497_v9 = vadd.f32 %v6408_v0, %v7245_v52  ;;  %v731_v27 = vadd.f32 %v6417_v12, %v494_v57  ;;  %v489_v42 = vadd.f32 %v7249_v2, %v7247_v53 }
  0xf9   : > { %v6424_v13 = vpop.f32.mrf.mxu1  ;;  %v710_v15 = vpop.f32.mrf.mxu0 }
  0xfa   : > { %v847_v55 = vadd.f32 %v6424_v13, %v728_v6  ;;  %v1943_v13 = vrot.slane %v1941_v56, 5  ;;  %v729_v50 = vadd.f32 %v710_v15, %v486_v1  ;;  %v7302_v1 = vld [vmem:[#allocation2] sm:$0xe] }
  0xfb   : > { %v816_v16 = vpop.f32.mrf.mxu1  ;;  %v6418_v17 = vpop.f32.mrf.mxu0 }
  0xfc   : > { %v845_v59 = vadd.f32 %v816_v16, %v726_v11  ;;  %v732_v52 = vadd.f32 %v6418_v17, %v497_v9 }
  0xfd   : > { %v6427_v19 = vpop.f32.mrf.mxu1  ;;  %v7255_v20 = vpop.f32.mrf.mxu0 }
  0xfe   : > { %v850_v62 = vadd.f32 %v6427_v19, %v731_v27  ;;  %v730_v53 = vadd.f32 %v7255_v20, %v489_v42 }
  0xff   : > { %v7257_v21 = vpop.f32.mrf.mxu1  ;;  %v6433_v22 = vpop.f32.mrf.mxu0 }
 0x100   : > { %v965_v54 = vadd.f32 %v6433_v22, %v846_v14  ;;  %v1940_v22 = vrot.slane %v1938_v38, 4  ;;  %v848_v2 = vadd.f32 %v7257_v21, %v729_v50 }
 0x101   : > { %v7259_v23 = vpop.f32.mrf.mxu1  ;;  %v932_v24 = vpop.f32.mrf.mxu0 }
 0x102   : > { %v963_v58 = vadd.f32 %v932_v24, %v844_v8  ;;  %v1944_v8 = vor.u32 %v1943_v13, %v1940_v22 }
 0x103   : > { %v6434_v25 = vpop.f32.mrf.mxu0  ;;  %v7261_v26 = vpop.f32.mrf.mxu1 }
 0x104   : > { %v966_v36 = vadd.f32 %v6434_v25, %v847_v55  ;;  %v1947_v25 = vshll.u32 %v7282_v44, 16  ;;  %v849_v19 = vadd.f32 %v7261_v26, %v730_v53  ;;  %v7297_v55 = vrot.slane %v1944_v8, 4 }
 0x105   : > { %v935_v28 = vpop.f32.mrf.mxu0  ;;  %v6443_v30 = vpop.f32.mrf.mxu1 }
 0x106   : > { %v1195_v63 = vadd.f32 %v6443_v30, %v965_v54  ;;  %v964_v60 = vadd.f32 %v935_v28, %v845_v59  ;;  %v851_v28 = vadd.f32 %v7259_v23, %v732_v52 }
 0x107   : > { %v7263_v29 = vpop.f32.mrf.mxu0  ;;  %v1162_v32 = vpop.f32.mrf.mxu1 }
 0x108   : > { %v1193_v39 = vadd.f32 %v1162_v32, %v963_v58  ;;  %v969_v17 = vadd.f32 %v7263_v29, %v850_v62 }
 0x109   : > { %v7265_v31 = vpop.f32.mrf.mxu0  ;;  %v6444_v35 = vpop.f32.mrf.mxu1 }
 0x10a   : > { %v1196_v24 = vadd.f32 %v6444_v35, %v966_v36 }
 0x10b   : > { %v7267_v34 = vpop.f32.mrf.mxu0  ;;  %v1165_v40 = vpop.f32.mrf.mxu1 }
 0x10c   : > { %v1194_v14 = vadd.f32 %v1165_v40, %v964_v60  ;;  %v7293_v40 = vld [vmem:[%s8516_s2] ss:$0 sm:$0xff]  ;;  %v970_v29 = vadd.f32 %v7267_v34, %v851_v28 }
 0x10d   : > { %v7269_v37 = vpop.f32.mrf.mxu0  ;;  %v6447_v10 = vpop.f32.mrf.mxu1 }
 0x10e   : > { %v1199_v56 = vadd.f32 %v6447_v10, %v969_v17  ;;  %v7310_v10 = vld [vmem:[#allocation2 + $0x48] sm:$0xf] }
 0x10f   : > { %v6453_v41 = vpop.f32.mrf.mxu0  ;;  %v1178_v7 = vpop.f32.mrf.mxu1  ;;  %v3175_v8 = vshll.u32 %v7310_v10, 16 }
 0x110   : > { %v1314_v16 = vadd.f32 %v6453_v41, %v1195_v63 }
 0x111   : > { %v1281_v46 = vpop.f32.mrf.mxu0  ;;  %v6448_v5 = vpop.f32.mrf.mxu1 }
 0x112   : > { %v1312_v32 = vadd.f32 %v1281_v46, %v1193_v39  ;;  %v7295_v46 = vrot.slane %v1947_v25, 5  ;;  %v1200_v36 = vadd.f32 %v6448_v5, %v970_v29 }
 0x113   : > { %v6454_v51 = vpop.f32.mrf.mxu0  ;;  %v1181_v3 = vpop.f32.mrf.mxu1 }
 0x114   : > { %v1315_v41 = vadd.f32 %v6454_v51, %v1196_v24  ;;  %v967_v51 = vadd.f32 %v7265_v31, %v848_v2  ;;  %v1950_v34 = vsel %vm6997_vm4, %v7297_v55, %v7295_v46 }
 0x115   : > { %v1284_v61 = vpop.f32.mrf.mxu0  ;;  %v6463_v30 = vpop.f32.mrf.mxu1 }
 0x116   : > { %v1433_v12 = vadd.f32 %v6463_v30, %v1314_v16  ;;  %v1313_v20 = vadd.f32 %v1284_v61, %v1194_v14  ;;  %v968_v61 = vadd.f32 %v7269_v37, %v849_v19  ;;  %v1197_v9 = vadd.f32 %v1178_v7, %v967_v51 }
 0x117   : > { %v6457_v33 = vpop.f32.mrf.mxu0  ;;  %v1400_v6 = vpop.f32.mrf.mxu1  ;;  %v6000_v37 = vrot.slane %v7302_v1, 9  ;;  %v2280_v7 = vrot.slane %v7282_v44, 5 }
 0x118   : > { %v1431_v38 = vadd.f32 %v1400_v6, %v1312_v32  ;;  %v1318_v42 = vadd.f32 %v6457_v33, %v1199_v56  ;;  %v1198_v60 = vadd.f32 %v1181_v3, %v968_v61  ;;  %v3172_v33 = vshrl.u32 %v7310_v10, 16  ;;  %v1898_v10 = vld [vmem:[#allocation2 + $0x2c] sm:$0x1] }
 0x119   : > { %v7280_v49 = vpop.f32.mrf.mxu0  ;;  %v6464_v15 = vpop.f32.mrf.mxu1 }
 0x11a   : > { %v1434_v54 = vadd.f32 %v6464_v15, %v1315_v41  ;;  %v1316_v62 = vadd.f32 %v7280_v49, %v1197_v9  ;;  %v7350_v1 = vrot.slane %v3172_v33, 4 }
 0x11b   : > { %v6458_v0 = vpop.f32.mrf.mxu0  ;;  %v1403_v23 = vpop.f32.mrf.mxu1 }
 0x11c   : > { %v1432_v59 = vadd.f32 %v1403_v23, %v1313_v20  ;;  %v1319_v25 = vadd.f32 %v6458_v0, %v1200_v36  ;;  %v1883_v0 = vld [vmem:[#allocation2 + $0x18] sm:$0xf] }
 0x11d   : > { %v1300_v35 = vpop.f32.mrf.mxu0  ;;  %v6467_v63 = vpop.f32.mrf.mxu1 }
 0x11e   : > { %v1437_v32 = vadd.f32 %v6467_v63, %v1318_v42  ;;  %v1317_v53 = vadd.f32 %v1300_v35, %v1198_v60 }
 0x11f   : > { %v6473_v11 = vpop.f32.mrf.mxu0  ;;  %v1416_v27 = vpop.f32.mrf.mxu1 }
 0x120   : > { %v1663_v21 = vadd.f32 %v6473_v11, %v1433_v12  ;;  %v1435_v41 = vadd.f32 %v1416_v27, %v1316_v62  ;;  %v1886_v11 = vld [vmem:[#allocation2 + $0x1c] sm:$0x1] }
 0x121   : > { %v1630_v26 = vpop.f32.mrf.mxu0  ;;  %v6468_v52 = vpop.f32.mrf.mxu1 }
 0x122   : > { %v1678_v57 = vadd.f32 %v7293_v40, %v1663_v21  ;;  %v1661_v58 = vadd.f32 %v1630_v26, %v1431_v38  ;;  %v1438_v38 = vadd.f32 %v6468_v52, %v1319_v25  ;;  %v1892_v52 = vld [vmem:[#allocation2 + $0x24] sm:$0x1] }
 0x123   : > { %v6474_v39 = vpop.f32.mrf.mxu0  ;;  %v1419_v6 = vpop.f32.mrf.mxu1 }
 0x124   : > { %v1686_v22 = vmax.f32 %v1678_v57, 0.0  ;;  %v1676_v13 = vadd.f32 %v7293_v40, %v1661_v58  ;;  %v1664_v31 = vadd.f32 %v6474_v39, %v1434_v54  ;;  %v1436_v51 = vadd.f32 %v1419_v6, %v1317_v53  ;;  %v1871_v57 = vld [vmem:[#allocation2 + $0x8] sm:$0xf]  ;;  %v1874_v58 = vld [vmem:[#allocation2 + $0xc] sm:$0x1] }
 0x125   : > { %v1633_v16 = vpop.f32.mrf.mxu0  ;;  %v8548_v6 = vmov 0  ;;  %v1877_v53 = vld [vmem:[#allocation2 + $0x10] sm:$0xf] }
 0x126   : > { %v6239_v5 = vpack.c.bf16 %v1686_v22, %v1686_v22  ;;  %v1684_v24 = vmax.f32 %v1676_v13, 0.0  ;;  %v1679_v30 = vadd.f32 %v7293_v40, %v1664_v31  ;;  %v1662_v50 = vadd.f32 %v1633_v16, %v1432_v59 }
 0x127   : > { %v6477_v28 = vpop.f32.mrf.mxu0  ;;  %v8549_v6 = vsel %vm7331_vm14, 4294967295, %v8548_v6 }
 0x128   : > { %v1805_v3 = vshrl.u32 %v6239_v5, 16  ;;  %v6237_v14 = vpack.c.bf16 %v1684_v24, %v1684_v24  ;;  %v1687_v12 = vmax.f32 %v1679_v30, 0.0  ;;  %v1677_v2 = vadd.f32 %v7293_v40, %v1662_v50  ;;  %v1889_v50 = vld [vmem:[#allocation2 + $0x20] sm:$0xf]  ;;  %8550 = vst [vmem:[#allocation11_spill] sm:$0xff] %v8549_v6 }
 0x129   : > { %v1808_v17 = vshll.u32 %v6239_v5, 16  ;;  %v1667_v54 = vadd.f32 %v6477_v28, %v1437_v32  ;;  %v1646_v23 = vpop.f32.mrf.mxu0 }
 0x12a   : > { %v1807_v15 = vrot.slane %v1805_v3, 7  ;;  %v1789_v19 = vshrl.u32 %v6237_v14, 16  ;;  %v6240_v49 = vpack.c.bf16 %v1687_v12, %v1687_v12  ;;  %v1792_v20 = vshll.u32 %v6237_v14, 16 }
 0x12b   : > { %v1685_v21 = vmax.f32 %v1677_v2, 0.0  ;;  %v1682_v61 = vadd.f32 %v7293_v40, %v1667_v54  ;;  %v1665_v9 = vadd.f32 %v1646_v23, %v1435_v41  ;;  %v6478_v36 = vpop.f32.mrf.mxu0  ;;  %v1880_v2 = vld [vmem:[#allocation2 + $0x14] sm:$0x1]  ;;  %v1910_v54 = vld [vmem:[#allocation2 + $0x3c] sm:$0x1] }
 0x12c   : > { %v1810_v29 = vor.u32 %v1808_v17, %v1807_v15  ;;  %v1811_v56 = vrot.slane %v1807_v15, 4  ;;  %v1791_v26 = vrot.slane %v1789_v19, 7  ;;  %v1813_v35 = vshrl.u32 %v6240_v49, 16 }
 0x12d   : > { %v1816_v59 = vshll.u32 %v6240_v49, 16  ;;  %v6238_v63 = vpack.c.bf16 %v1685_v21, %v1685_v21  ;;  %v1690_v16 = vmax.f32 %v1682_v61, 0.0  ;;  %v1649_v5 = vpop.f32.mrf.mxu0  ;;  %v1680_v62 = vadd.f32 %v7293_v40, %v1665_v9  ;;  %v1907_v21 = vld [vmem:[#allocation2 + $0x38] sm:$0xf] }
 0x12e   : > { %v1884_v39 = vsel %vm7187_vm11, %v1810_v29, %v1883_v0  ;;  %v1887_v22 = vsel %vm7163_vm7, %v1811_v56, %v1886_v11  ;;  %v1794_v13 = vor.u32 %v1792_v20, %v1791_v26  ;;  %v1795_v31 = vrot.slane %v1791_v26, 4 }
 0x12f   : > { %1885 = vst [vmem:[#allocation2 + $0x18] sm:$0xf] %v1884_v39  ;;  %1888 = vst [vmem:[#allocation2 + $0x1c] sm:$0x1] %v1887_v22  ;;  %v1815_v27 = vrot.slane %v1813_v35, 7  ;;  %v1797_v42 = vshrl.u32 %v6238_v63, 16  ;;  %v1668_v25 = vadd.f32 %v6478_v36, %v1438_v38  ;;  %v6243_v12 = vpack.c.bf16 %v1690_v16, %v1690_v16 }
 0x130   : > { %v1800_v60 = vshll.u32 %v6238_v63, 16  ;;  %v1872_v24 = vsel %vm7187_vm11, %v1794_v13, %v1871_v57  ;;  %v1875_v30 = vsel %vm7163_vm7, %v1795_v31, %v1874_v58  ;;  %v1688_v28 = vmax.f32 %v1680_v62, 0.0  ;;  %v1895_v58 = vld [vmem:[#allocation2 + $0x28] sm:$0xf] }
 0x131   : > { %1873 = vst [vmem:[#allocation2 + $0x8] sm:$0xf] %v1872_v24  ;;  %1876 = vst [vmem:[#allocation2 + $0xc] sm:$0x1] %v1875_v30  ;;  %v1818_v32 = vor.u32 %v1816_v59, %v1815_v27  ;;  %v1819_v3 = vrot.slane %v1815_v27, 4  ;;  %v1799_v14 = vrot.slane %v1797_v42, 7  ;;  %v1683_v41 = vadd.f32 %v7293_v40, %v1668_v25 }
 0x132   : > { %v1666_v15 = vadd.f32 %v1649_v5, %v1436_v51  ;;  %v7342_v38 = vsel %vm7331_vm14, %v6000_v37, %v2280_v7  ;;  %v1837_v11 = vshrl.u32 %v6243_v12, 16  ;;  %v6241_v20 = vpack.c.bf16 %v1688_v28, %v1688_v28  ;;  %v1913_v24 = vld [vmem:[#allocation2 + $0x40] sm:$0xf] }
 0x133   : > { %v1890_v17 = vsel %vm7187_vm11, %v1818_v32, %v1889_v50  ;;  %v1893_v19 = vsel %vm7163_vm7, %v1819_v3, %v1892_v52  ;;  %v1802_v49 = vor.u32 %v1800_v60, %v1799_v14  ;;  %v1803_v0 = vrot.slane %v1799_v14, 4  ;;  %v1916_v50 = vld [vmem:[#allocation2 + $0x44] sm:$0x1]  ;;  %v1901_v14 = vld [vmem:[#allocation2 + $0x30] sm:$0xf] }
 0x134   : > { %1891 = vst [vmem:[#allocation2 + $0x20] sm:$0xf] %v1890_v17  ;;  %1894 = vst [vmem:[#allocation2 + $0x24] sm:$0x1] %v1893_v19  ;;  %v1691_v44 = vmax.f32 %v1683_v41, 0.0  ;;  %v1681_v23 = vadd.f32 %v7293_v40, %v1666_v15  ;;  %v7359_v51 = vrot.slane %v3175_v8, 5 }
 0x135   : > { %v1878_v37 = vsel %vm7187_vm11, %v1802_v49, %v1877_v53  ;;  %v1881_v7 = vsel %vm7163_vm7, %v1803_v0, %v1880_v2  ;;  %v1839_v29 = vrot.slane %v1837_v11, 7  ;;  %v1840_v56 = vshll.u32 %v6243_v12, 16  ;;  %v1904_v12 = vld [vmem:[#allocation2 + $0x34] sm:$0x1] }
 0x136   : > { %1879 = vst [vmem:[#allocation2 + $0x10] sm:$0xf] %v1878_v37  ;;  %1882 = vst [vmem:[#allocation2 + $0x14] sm:$0x1] %v1881_v7  ;;  %v1821_v33 = vshrl.u32 %v6241_v20, 16  ;;  %v6244_v26 = vpack.c.bf16 %v1691_v44, %v1691_v44  ;;  %v1824_v57 = vshll.u32 %v6241_v20, 16 }
 0x137   : > { %v1922_v35 = vld [vmem:[#allocation2 + $0x18] sm:$0xf]  ;;  %v1689_v59 = vmax.f32 %v1681_v23, 0.0  ;;  %v1842_v9 = vor.u32 %v1840_v56, %v1839_v29  ;;  %v1843_v36 = vrot.slane %v1839_v29, 4 }
 0x138   : > { %v1980_v63 = vshrl.u32 %v1922_v35, 16  ;;  %v1983_v61 = vshll.u32 %v1922_v35, 16  ;;  %v1823_v39 = vrot.slane %v1821_v33, 7  ;;  %v1845_v40 = vshrl.u32 %v6244_v26, 16  ;;  %v1920_v22 = vld [vmem:[#allocation2 + $0x8] sm:$0xf] }
 0x139   : > { %v1848_v8 = vshll.u32 %v6244_v26, 16  ;;  %v6242_v13 = vpack.c.bf16 %v1689_v59, %v1689_v59  ;;  %v1952_v31 = vshrl.u32 %v1920_v22, 16  ;;  %v1955_v27 = vshll.u32 %v1920_v22, 16  ;;  %v7373_v37 = vld [vmem:[#allocation2 + $0xc] sm:$0x1] }
 0x13a   : > { %v1908_v42 = vsel %vm7187_vm11, %v1842_v9, %v1907_v21  ;;  %v1911_v60 = vsel %vm7163_vm7, %v1843_v36, %v1910_v54  ;;  %v1826_v16 = vor.u32 %v1824_v57, %v1823_v39  ;;  %v1827_v5 = vrot.slane %v1823_v39, 4 }
 0x13b   : > { %1909 = vst [vmem:[#allocation2 + $0x38] sm:$0xf] %v1908_v42  ;;  %1912 = vst [vmem:[#allocation2 + $0x3c] sm:$0x1] %v1911_v60  ;;  %v1847_v30 = vrot.slane %v1845_v40, 7  ;;  %v1829_v52 = vshrl.u32 %v6242_v13, 16  ;;  %v5991_v2 = vcombine.low %v7271_v45, %v1920_v22 }
 0x13c   : > { %v1832_v62 = vshll.u32 %v6242_v13, 16  ;;  %v1954_v25 = vrot.slane %v1952_v31, 4  ;;  %v1896_v32 = vsel %vm7187_vm11, %v1826_v16, %v1895_v58  ;;  %v1899_v3 = vsel %vm7163_vm7, %v1827_v5, %v1898_v10  ;;  %v7370_v28 = vld [vmem:[#allocation2 + $0x20] sm:$0xf]  ;;  %v7378_v45 = vld [vmem:[%s8517_s3 + $0x28] sm:$0xff]  }
 0x13d   : > { %v1957_v53 = vrot.slane %v1955_v27, 5  ;;  %1897 = vst [vmem:[#allocation2 + $0x28] sm:$0xf] %v1896_v32  ;;  %1900 = vst [vmem:[#allocation2 + $0x2c] sm:$0x1] %v1899_v3  ;;  %v1850_v41 = vor.u32 %v1848_v8, %v1847_v30  ;;  %v1851_v15 = vrot.slane %v1847_v30, 4  ;;  %6491 = vmatprep.mubr.msk.bf16.mxu0 %vm2070_vm15, %v5991_v2 }
 0x13e   : > { %v1831_v17 = vrot.slane %v1829_v52, 7  ;;  %v1921_v19 = vld [vmem:[#allocation2 + $0x10] sm:$0xf]  ;;  %v1982_v49 = vrot.slane %v1980_v63, 4  ;;  %v1985_v20 = vrot.slane %v1983_v61, 5  ;;  %v1994_v26 = vshrl.u32 %v7370_v28, 16 }
 0x13f   : > { %v1966_v0 = vshrl.u32 %v1921_v19, 16  ;;  %v1969_v11 = vshll.u32 %v1921_v19, 16  ;;  %v5992_v44 = vcombine.low %v1921_v19, %v1922_v35  ;;  %v1914_v7 = vsel %vm7187_vm11, %v1850_v41, %v1913_v24  ;;  %v7384_v29 = vld [vmem:[#allocation2 + $0x14] sm:$0x1]  ;;  %v7394_v61 = vld [vmem:[#allocation2 + $0x1c] sm:$0x1] }
 0x140   : > { %v1917_v21 = vsel %vm7163_vm7, %v1851_v15, %v1916_v50  ;;  %v1834_v54 = vor.u32 %v1832_v62, %v1831_v17  ;;  %v1835_v23 = vrot.slane %v1831_v17, 4  ;;  %1915 = vst [vmem:[#allocation2 + $0x40] sm:$0xf] %v1914_v7  ;;  %v1997_v35 = vshll.u32 %v7370_v28, 16  ;;  %v7399_v27 = vld [vmem:[#allocation2 + $0x24] sm:$0x1] }
 0x141   : > { %1918 = vst [vmem:[#allocation2 + $0x44] sm:$0x1] %v1917_v21  ;;  %v1968_v56 = vrot.slane %v1966_v0, 4  ;;  %v1971_v33 = vrot.slane %v1969_v11, 5  ;;  %6492 = vmatmul.mubr.msk.bf16.vlgmr.msra.gmra.mxu0 %vm2070_vm15, %v5992_v44  ;;  %v1958_v59 = vor.u32 %v1957_v53, %v1954_v25  ;;  %v1961_v63 = vshll.u32 %v7373_v37, 16 }
 0x142   : > { %v1902_v57 = vsel %vm7187_vm11, %v1834_v54, %v1901_v14  ;;  %v1905_v58 = vsel %vm7163_vm7, %v1835_v23, %v1904_v12  ;;  %6510 = vmatpush3.bf16.msra.mxu0 %v7237_v48  ;;  %v1996_v9 = vrot.slane %v1994_v26, 4  ;;  %v1999_v36 = vrot.slane %v1997_v35, 5  ;;  %v1926_v39 = vld [vmem:[#allocation2 + $0x38] sm:$0xf]  ;;  %v7402_v24 = vld [vmem:[#allocation2 + $0x8] sm:$0xe] }
 0x143   : > { %1903 = vst [vmem:[#allocation2 + $0x30] sm:$0xf] %v1902_v57  ;;  %1906 = vst [vmem:[#allocation2 + $0x34] sm:$0x1] %v1905_v58  ;;  %v1972_v40 = vor.u32 %v1971_v33, %v1968_v56  ;;  %v1975_v22 = vshll.u32 %v7384_v29, 16  ;;  %6529 = vmatprep.subr.bf16.mxu0 %v7378_v45  ;;  %v1959_v10 = vrot.slane %v1958_v59, 4  ;;  %v1986_v48 = vor.u32 %v1985_v20, %v1982_v49 }
 0x144   : > { %v1963_v8 = vrot.slane %v1961_v63, 5  ;;  %v2036_v13 = vshrl.u32 %v1926_v39, 16  ;;  %v2039_v31 = vshll.u32 %v1926_v39, 16  ;;  %v1924_v42 = vld [vmem:[#allocation2 + $0x28] sm:$0xf]  ;;  %v1989_v5 = vshll.u32 %v7394_v61, 16 }
 0x145   : > { %v1973_v60 = vrot.slane %v1972_v40, 4  ;;  %v1977_v16 = vrot.slane %v1975_v22, 5  ;;  %v2008_v30 = vshrl.u32 %v1924_v42, 16  ;;  %v2011_v50 = vshll.u32 %v1924_v42, 16  ;;  %v7407_v25 = vld [vmem:[#allocation2 + $0x2c] sm:$0x1] }
 0x146   : > { %v5993_v52 = vcombine.low %v7370_v28, %v1924_v42  ;;  %v1964_v62 = vsel %vm6997_vm4, %v1959_v10, %v1963_v8  ;;  %v2038_v3 = vrot.slane %v2036_v13, 4  ;;  %v2041_v14 = vrot.slane %v2039_v31, 5  ;;  %v7416_v53 = vld [vmem:[#allocation2 + $0x3c] sm:$0x1]  ;;  %v6746_v11 = vld [vmem:[#allocation2 + $0x8] ss:$8 sps:$4 sm:$0xff]  }
 0x147   : > { %v5982_v32 = vcombine.low %v1950_v34, %v1964_v62  ;;  %v1978_v12 = vsel %vm6997_vm4, %v1973_v60, %v1977_v16  ;;  %v2010_v2 = vrot.slane %v2008_v30, 4  ;;  %v2013_v28 = vrot.slane %v2011_v50, 5  ;;  %v7425_v34 = vld [vmem:[%s8517_s3 + $0x20] sm:$0xff]   ;;  %v2253_v26 = vld [vmem:[#allocation2 + $0x10] sm:$0xe] }
 0x148   : > { %6495 = vmatprep.mubr.msk.bf16.mxu0 %vm2070_vm15, %v5993_v52  ;;  %v1987_v41 = vrot.slane %v1986_v48, 4  ;;  %v1991_v15 = vrot.slane %v1989_v5, 5  ;;  %v2000_v17 = vor.u32 %v1999_v36, %v1996_v9  ;;  %v2003_v19 = vshll.u32 %v7399_v27, 16  ;;  %v2254_v63 = vld [vmem:[#allocation2 + $0x18] sm:$0xe] }
 0x149   : > { %6481 = vmatprep.mubr.msk.bf16.mxu1 %vm2070_vm15, %v5982_v32  ;;  %v2017_v46 = vshll.u32 %v7407_v25, 16  ;;  %v2042_v55 = vor.u32 %v2041_v14, %v2038_v3  ;;  %v2014_v20 = vor.u32 %v2013_v28, %v2010_v2  ;;  %v2045_v7 = vshll.u32 %v7416_v53, 16  ;;  %v7436_v10 = vld [vmem:[#allocation2 + $0xc] sm:$0x1]  ;;  %v7445_v31 = vld [vmem:[#allocation2 + $0x14] sm:$0x1] }
 0x14a   : > { %v1925_v49 = vld [vmem:[#allocation2 + $0x30] sm:$0xf]  ;;  %v1992_v0 = vsel %vm6997_vm4, %v1987_v41, %v1991_v15  ;;  %v7429_v44 = vld [vmem:[#allocation2 + $0x34] sm:$0x1]  ;;  %v6001_v21 = vrot.slane %v7402_v24, 9  ;;  %v2001_v35 = vrot.slane %v2000_v17, 4  ;;  %v3178_v60 = vor.u32 %v7359_v51, %v7350_v1 }
 0x14b   : > { %v2022_v54 = vshrl.u32 %v1925_v49, 16  ;;  %v2025_v23 = vshll.u32 %v1925_v49, 16  ;;  %v5994_v56 = vcombine.low %v1925_v49, %v1926_v39  ;;  %v5983_v33 = vcombine.low %v1978_v12, %v1992_v0  ;;  %v2772_v42 = vld [vmem:[#allocation2 + $0x8] sm:$0xe]  ;;  %v2773_v24 = vld [vmem:[#allocation2 + $0x10] sm:$0xe] }
 0x14c   : > { %v2005_v57 = vrot.slane %v2003_v19, 5  ;;  %v2015_v58 = vrot.slane %v2014_v20, 4  ;;  %v2019_v59 = vrot.slane %v2017_v46, 5  ;;  %v2031_v40 = vshll.u32 %v7429_v44, 16  ;;  %v2255_v30 = vld [vmem:[#allocation2 + $0x20] sm:$0xe] }
 0x14d   : > { %v2024_v9 = vrot.slane %v2022_v54, 4  ;;  %v2027_v36 = vrot.slane %v2025_v23, 5  ;;  %6496 = vmatmul.mubr.msk.bf16.gmra.mxu0 %vm2070_vm15, %v5994_v56  ;;  %6482 = vmatmul.mubr.msk.bf16.vlgmr.msra.gmra.mxu1 %vm2070_vm15, %v5983_v33  ;;  %v2043_v22 = vrot.slane %v2042_v55, 4  ;;  %v2284_v13 = vrot.slane %v7373_v37, 5  ;;  %v2256_v32 = vld [vmem:[#allocation2 + $0x28] sm:$0xe] }
 0x14e   : > { %6500 = vmatpush3.bf16.msra.mxu1 %v7232_v47  ;;  %6511 = vmatprep.mubr.msk.bf16.mxu0 %vm2070_vm15, %v6746_v11  ;;  %v2006_v39 = vsel %vm6997_vm4, %v2001_v35, %v2005_v57  ;;  %v2020_v8 = vsel %vm6997_vm4, %v2015_v58, %v2019_v59  ;;  %v2047_v5 = vrot.slane %v2045_v7, 5  ;;  %v6002_v47 = vrot.slane %v2253_v26, 9  ;;  %v6748_v3 = vld [vmem:[#allocation2 + $0x18] ss:$8 sps:$4 sm:$0xff]   ;;  %v7457_v41 = vld [vmem:[#allocation2 + $0x1c] sm:$0x1] }
 0x14f   : > { %v5984_v16 = vcombine.low %v2006_v39, %v2020_v8  ;;  %v2028_v48 = vor.u32 %v2027_v36, %v2024_v9  ;;  %6519 = vmatprep.subr.bf16.mxu1 %v7425_v34  ;;  %v2033_v50 = vrot.slane %v2031_v40, 5  ;;  %v2285_v52 = vsel %vm7331_vm14, %v6001_v21, %v2284_v13  ;;  %v7459_v15 = vld [vmem:[#allocation2 + $0x24] sm:$0x1]  ;;  %v6749_v17 = vld [vmem:[#allocation2 + $0x28] ss:$8 sps:$4 sm:$0xff]  }
 0x150   : > { %v2288_v37 = vrot.slane %v7384_v29, 5  ;;  %v6003_v62 = vrot.slane %v2254_v63, 9  ;;  %v2048_v12 = vsel %vm6997_vm4, %v2043_v22, %v2047_v5  ;;  %v2292_v2 = vrot.slane %v7394_v61, 5  ;;  %v2774_v49 = vld [vmem:[#allocation2 + $0x18] sm:$0xe] }
 0x151   : > { %6485 = vmatprep.mubr.msk.bf16.mxu1 %vm2070_vm15, %v5984_v16  ;;  %v2029_v14 = vrot.slane %v2028_v48, 4  ;;  %v6041_v28 = vrot.slane %v2772_v42, 9  ;;  %v2798_v19 = vrot.slane %v7436_v10, 5  ;;  %v6042_v46 = vrot.slane %v2773_v24, 9  ;;  %v2775_v7 = vld [vmem:[#allocation2 + $0x20] sm:$0xe] }
 0x152   : > { %v7463_v29 = vsel %vm7331_vm14, %v6002_v47, %v2288_v37  ;;  %v2802_v55 = vrot.slane %v7445_v31, 5  ;;  %v6010_v61 = vcombine.low %v7342_v38, %v2285_v52  ;;  %v7472_v11 = vsel %vm7331_vm14, %v6003_v62, %v2292_v2  ;;  %v2257_v21 = vld [vmem:[#allocation2 + $0x30] sm:$0xe]  ;;  %v2258_v26 = vld [vmem:[#allocation2 + $0x38] sm:$0xe] }
 0x153   : > { %v2034_v0 = vsel %vm6997_vm4, %v2029_v14, %v2033_v50  ;;  %v6004_v20 = vrot.slane %v2255_v30, 9  ;;  %v7476_v23 = vsel %vm7331_vm14, %v6041_v28, %v2798_v19  ;;  %v2296_v33 = vrot.slane %v7399_v27, 5  ;;  %v7481_v35 = vld [vmem:[#allocation2 + $0x2c] sm:$0x1]  ;;  %v7486_v38 = vld [vmem:[%s8517_s3 + $0x38] sm:$0xff]  }
 0x154   : > { %v5985_v54 = vcombine.low %v2034_v0, %v2048_v12  ;;  %v2803_v56 = vsel %vm7331_vm14, %v6042_v46, %v2802_v55  ;;  %v6011_v57 = vcombine.low %v7463_v29, %v7472_v11  ;;  %v6005_v59 = vrot.slane %v2256_v32, 9  ;;  %v7493_v9 = vld [vmem:[#allocation2 + $0x34] sm:$0x1]  ;;  %v2776_v27 = vld [vmem:[#allocation2 + $0x28] sm:$0xe] }
 0x155   : > { %6512 = vmatmul.mubr.msk.bf16.vlgmr.msra.gmra.mxu0 %vm2070_vm15, %v6748_v3  ;;  %v6051_v58 = vcombine.low %v7476_v23, %v2803_v56  ;;  %v2300_v63 = vrot.slane %v7407_v25, 5  ;;  %v6043_v36 = vrot.slane %v2774_v49, 9  ;;  %v2806_v40 = vrot.slane %v7457_v41, 5  ;;  %v2777_v8 = vld [vmem:[#allocation2 + $0x30] sm:$0xe] }
 0x156   : > { %6486 = vmatmul.mubr.msk.bf16.gmra.mxu1 %vm2070_vm15, %v5985_v54  ;;  %6515 = vmatprep.mubr.msk.bf16.mxu0 %vm2070_vm15, %v6749_v17  ;;  %v6044_v22 = vrot.slane %v2775_v7, 9  ;;  %v2810_v39 = vrot.slane %v7459_v15, 5  ;;  %v6006_v25 = vrot.slane %v2257_v21, 9  ;;  %v2304_v42 = vrot.slane %v7429_v44, 5  ;;  %v2538_v48 = vld [vmem:[#allocation2 + $0x8] sm:$0xf] }
 0x157   : > { %6501 = vmatprep.mubr.msk.bf16.mxu1 %vm2070_vm15, %v6010_v61  ;;  %v2301_v13 = vsel %vm7331_vm14, %v6005_v59, %v2300_v63  ;;  %6530 = vmatpush3.bf16.msra.mxu0 %v7378_v45  ;;  %v6007_v16 = vrot.slane %v2258_v26, 9  ;;  %v2297_v5 = vsel %vm7331_vm14, %v6004_v20, %v2296_v33  ;;  %v7508_v47 = vsel %vm7331_vm14, %v6043_v36, %v2806_v40  ;;  %v6750_v45 = vld [vmem:[#allocation2 + $0x38] ss:$8 sps:$4 sm:$0xff]   ;;  %v2540_v62 = vld [vmem:[#allocation2 + $0x10] sm:$0xf] }
 0x158   : > { %v7512_v24 = vsel %vm7331_vm14, %v6044_v22, %v2810_v39  ;;  %v2308_v30 = vrot.slane %v7416_v53, 5  ;;  %6549 = vmatprep.subr.bf16.mxu0 %v7486_v38  ;;  %v6012_v50 = vcombine.low %v2297_v5, %v2301_v13  ;;  %v6045_v52 = vrot.slane %v2776_v27, 9  ;;  %v7524_v53 = vld [vmem:[#allocation2 + $0x3c] sm:$0x1]  ;;  %v7535_v19 = vld [vmem:[#allocation2 + $0x44] sm:$0x1] }
 0x159   : > { %v6052_v44 = vcombine.low %v7508_v47, %v7512_v24  ;;  %v2814_v37 = vrot.slane %v7481_v35, 5  ;;  %v7521_v32 = vsel %vm7331_vm14, %v6006_v25, %v2304_v42  ;;  %v6046_v3 = vrot.slane %v2777_v8, 9  ;;  %v2778_v46 = vld [vmem:[#allocation2 + $0x38] sm:$0xe]  ;;  %v2779_v11 = vld [vmem:[#allocation2 + $0x40] sm:$0xe] }
 0x15a   : > { %v2818_v14 = vrot.slane %v7493_v9, 5  ;;  %v2555_v12 = vshrl.u32 %v2538_v48, 16  ;;  %v7528_v2 = vsel %vm7331_vm14, %v6007_v16, %v2308_v30  ;;  %v2558_v17 = vshll.u32 %v2538_v48, 16  ;;  %v7542_v20 = vld [vmem:[%s8517_s3 + $0x30] sm:$0xff]   ;;  %v2542_v23 = vld [vmem:[#allocation2 + $0x18] sm:$0xf] }
 0x15b   : > { %v7532_v28 = vsel %vm7331_vm14, %v6045_v52, %v2814_v37  ;;  %v2564_v29 = vshll.u32 %v7436_v10, 16  ;;  %v2569_v0 = vshrl.u32 %v2540_v62, 16  ;;  %v2572_v61 = vshll.u32 %v2540_v62, 16  ;;  %v2544_v63 = vld [vmem:[#allocation2 + $0x20] sm:$0xf] }
 0x15c   : > { %v2819_v55 = vsel %vm7331_vm14, %v6046_v3, %v2818_v14  ;;  %v2557_v49 = vrot.slane %v2555_v12, 4  ;;  %v6013_v10 = vcombine.low %v7521_v32, %v7528_v2  ;;  %v2560_v21 = vrot.slane %v2558_v17, 5  ;;  %v3057_v42 = vld [vmem:[#allocation2 + $0x10] sm:$0xf]  ;;  %v3059_v32 = vld [vmem:[#allocation2 + $0x18] sm:$0xf] }
 0x15d   : > { %6516 = vmatmul.mubr.msk.bf16.gmra.mxu0 %vm2070_vm15, %v6750_v45  ;;  %v6053_v7 = vcombine.low %v7532_v28, %v2819_v55  ;;  %v2578_v54 = vshll.u32 %v7445_v31, 16  ;;  %v2571_v56 = vrot.slane %v2569_v0, 4  ;;  %v2574_v33 = vrot.slane %v2572_v61, 5  ;;  %v7565_v45 = vld [vmem:[#allocation2 + $0x14] sm:$0x1] }
 0x15e   : > { %6502 = vmatmul.mubr.msk.bf16.vlgmr.msra.gmra.mxu1 %vm2070_vm15, %v6011_v57  ;;  %6531 = vmatprep.mubr.msk.bf16.mxu0 %vm2070_vm15, %v6051_v58  ;;  %v6047_v26 = vrot.slane %v2778_v46, 9  ;;  %v2822_v59 = vrot.slane %v7524_v53, 5  ;;  %v2561_v27 = vor.u32 %v2560_v21, %v2557_v49  ;;  %v2566_v36 = vrot.slane %v2564_v29, 5  ;;  %v7574_v2 = vld [vmem:[#allocation2 + $0x1c] sm:$0x1] }
 0x15f   : > { %6520 = vmatpush3.bf16.msra.mxu1 %v7425_v34  ;;  %6505 = vmatprep.mubr.msk.bf16.mxu1 %vm2070_vm15, %v6012_v50  ;;  %v6048_v40 = vrot.slane %v2779_v11, 9  ;;  %v2826_v31 = vrot.slane %v7535_v19, 5  ;;  %v2575_v22 = vor.u32 %v2574_v33, %v2571_v56  ;;  %v2580_v39 = vrot.slane %v2578_v54, 5  ;;  %v2546_v55 = vld [vmem:[#allocation2 + $0x28] sm:$0xf] }
 0x160   : > { %6539 = vmatprep.subr.bf16.mxu1 %v7542_v20  ;;  %v2583_v57 = vshrl.u32 %v2542_v23, 16  ;;  %v2586_v58 = vshll.u32 %v2542_v23, 16  ;;  %v2562_v8 = vrot.slane %v2561_v27, 4  ;;  %v7558_v13 = vsel %vm7331_vm14, %v6047_v26, %v2822_v59  ;;  %v2548_v11 = vld [vmem:[#allocation2 + $0x30] sm:$0xf] }
 0x161   : > { %v7562_v34 = vsel %vm7331_vm14, %v6048_v40, %v2826_v31  ;;  %v2597_v25 = vshrl.u32 %v2544_v63, 16  ;;  %v2576_v16 = vrot.slane %v2575_v22, 4  ;;  %v2592_v30 = vshll.u32 %v7457_v41, 16  ;;  %v3061_v31 = vld [vmem:[#allocation2 + $0x20] sm:$0xf] }
 0x162   : > { %v2585_v48 = vrot.slane %v2583_v57, 4  ;;  %v2588_v5 = vrot.slane %v2586_v58, 5  ;;  %v2567_v50 = vsel %vm6997_vm4, %v2562_v8, %v2566_v36  ;;  %v6054_v52 = vcombine.low %v7558_v13, %v7562_v34  ;;  %v3063_v58 = vld [vmem:[#allocation2 + $0x28] sm:$0xf]  ;;  %v7591_v8 = vld [vmem:[#allocation2 + $0x4c] sm:$0x1] }
 0x163   : > { %v2599_v37 = vrot.slane %v2597_v25, 4  ;;  %v2600_v62 = vshll.u32 %v2544_v63, 16  ;;  %v2581_v3 = vsel %vm6997_vm4, %v2576_v16, %v2580_v39  ;;  %v2606_v12 = vshll.u32 %v7459_v15, 16  ;;  %v7593_v16 = vld [vmem:[#allocation2 + $0x24] sm:$0x1] }
 0x164   : > { %v2589_v14 = vor.u32 %v2588_v5, %v2585_v48  ;;  %v3074_v41 = vshrl.u32 %v3057_v42, 16  ;;  %v6032_v28 = vcombine.low %v2567_v50, %v2581_v3  ;;  %v3077_v29 = vshll.u32 %v3057_v42, 16 }
 0x165   : > { %6532 = vmatmul.mubr.msk.bf16.vlgmr.msra.gmra.mxu0 %vm2070_vm15, %v6052_v44  ;;  %v2602_v17 = vrot.slane %v2600_v62, 5  ;;  %v3083_v46 = vshll.u32 %v7565_v45, 16  ;;  %v2594_v15 = vrot.slane %v2592_v30, 5  ;;  %v3088_v61 = vshrl.u32 %v3059_v32, 16 }
 0x166   : > { %6506 = vmatmul.mubr.msk.bf16.gmra.mxu1 %vm2070_vm15, %v6013_v10  ;;  %6535 = vmatprep.mubr.msk.bf16.mxu0 %vm2070_vm15, %v6053_v7  ;;  %v2590_v49 = vrot.slane %v2589_v14, 4  ;;  %v3076_v0 = vrot.slane %v3074_v41, 4  ;;  %v2608_v24 = vrot.slane %v2606_v12, 5  ;;  %v3079_v44 = vrot.slane %v3077_v29, 5 }
 0x167   : > { %6521 = vmatprep.mubr.msk.bf16.mxu1 %vm2070_vm15, %v6032_v28  ;;  %v2603_v47 = vor.u32 %v2602_v17, %v2599_v37  ;;  %v3091_v21 = vshll.u32 %v3059_v32, 16  ;;  %6550 = vmatpush3.bf16.msra.mxu0 %v7486_v38  ;;  %v3085_v54 = vrot.slane %v3083_v46, 5  ;;  %v3090_v23 = vrot.slane %v3088_v61, 4  ;;  %v7604_v37 = vld [vmem:[#allocation2 + $0x2c] sm:$0x1] }
 0x168   : > { %v3097_v56 = vshll.u32 %v7574_v2, 16  ;;  %v2611_v10 = vshrl.u32 %v2546_v55, 16  ;;  %v3080_v7 = vor.u32 %v3079_v44, %v3076_v0  ;;  %v2614_v59 = vshll.u32 %v2546_v55, 16  ;;  %v2550_v17 = vld [vmem:[#allocation2 + $0x38] sm:$0xf] }
 0x169   : > { %v2604_v33 = vrot.slane %v2603_v47, 4  ;;  %v3093_v26 = vrot.slane %v3091_v21, 5  ;;  %v2595_v63 = vsel %vm6997_vm4, %v2590_v49, %v2594_v15  ;;  %v2620_v36 = vshll.u32 %v7481_v35, 16  ;;  %v7598_v35 = vld [vmem:[%s8517_s3 + $0x40] sm:$0xff]  }
 0x16a   : > { %v2613_v27 = vrot.slane %v2611_v10, 4  ;;  %v2625_v40 = vshrl.u32 %v2548_v11, 16  ;;  %v3081_v22 = vrot.slane %v3080_v7, 4  ;;  %v2616_v57 = vrot.slane %v2614_v59, 5  ;;  %v2552_v49 = vld [vmem:[#allocation2 + $0x40] sm:$0xf] }
 0x16b   : > { %v2609_v38 = vsel %vm6997_vm4, %v2604_v33, %v2608_v24  ;;  %v3094_v39 = vor.u32 %v3093_v26, %v3090_v23  ;;  %v3099_v34 = vrot.slane %v3097_v56, 5  ;;  %v2628_v42 = vshll.u32 %v2548_v11, 16  ;;  %v3065_v59 = vld [vmem:[#allocation2 + $0x30] sm:$0xf] }
 0x16c   : > { %v6033_v13 = vcombine.low %v2595_v63, %v2609_v38  ;;  %v2627_v25 = vrot.slane %v2625_v40, 4  ;;  %v3086_v48 = vsel %vm6997_vm4, %v3081_v22, %v3085_v54  ;;  %v2617_v30 = vor.u32 %v2616_v57, %v2613_v27 }
 0x16d   : > { %6536 = vmatmul.mubr.msk.bf16.gmra.mxu0 %vm2070_vm15, %v6054_v52  ;;  %v3095_v5 = vrot.slane %v3094_v39, 4  ;;  %v2634_v50 = vshll.u32 %v7493_v9, 16  ;;  %v2630_v62 = vrot.slane %v2628_v42, 5  ;;  %v3102_v32 = vshrl.u32 %v3061_v31, 16  ;;  %v7629_v42 = vld [vmem:[#allocation2 + $0x34] sm:$0x1] }
 0x16e   : > { %6522 = vmatmul.mubr.msk.bf16.vlgmr.msra.gmra.mxu1 %vm2070_vm15, %v6033_v13  ;;  %v3105_v3 = vshll.u32 %v3061_v31, 16  ;;  %v3181_v14 = vshll.u32 %v7591_v8, 16  ;;  %v2618_v12 = vrot.slane %v2617_v30, 4  ;;  %v2622_v41 = vrot.slane %v2620_v36, 5  ;;  %v3067_v31 = vld [vmem:[#allocation2 + $0x38] sm:$0xf] }
 0x16f   : > { %6540 = vmatpush3.bf16.msra.mxu1 %v7542_v20  ;;  %v3100_v52 = vsel %vm6997_vm4, %v3095_v5, %v3099_v34  ;;  %v3116_v28 = vshrl.u32 %v3063_v58, 16  ;;  %v2631_v9 = vor.u32 %v2630_v62, %v2627_v25  ;;  %v3104_v46 = vrot.slane %v3102_v32, 4  ;;  %v3069_v62 = vld [vmem:[#allocation2 + $0x40] sm:$0xf] }
 0x170   : > { %v6073_v29 = vcombine.low %v3086_v48, %v3100_v52  ;;  %v3107_v55 = vrot.slane %v3105_v3, 5  ;;  %6559 = vmatprep.subr.bf16.mxu1 %v7598_v35  ;;  %v2636_v15 = vrot.slane %v2634_v50, 5  ;;  %v3111_v0 = vshll.u32 %v7593_v16, 16 }
 0x171   : > { %v3118_v61 = vrot.slane %v3116_v28, 4  ;;  %v3119_v11 = vshll.u32 %v3063_v58, 16  ;;  %v2632_v20 = vrot.slane %v2631_v9, 4  ;;  %v3125_v24 = vshll.u32 %v7604_v37, 16  ;;  %v7636_v9 = vld [vmem:[#allocation2 + $0x44] sm:$0x1] }
 0x172   : > { %6551 = vmatprep.mubr.msk.bf16.mxu0 %vm2070_vm15, %v6073_v29  ;;  %v3108_v47 = vor.u32 %v3107_v55, %v3104_v46  ;;  %v2639_v44 = vshrl.u32 %v2550_v17, 16  ;;  %v2642_v54 = vshll.u32 %v2550_v17, 16  ;;  %v2653_v23 = vshrl.u32 %v2552_v49, 16 }
 0x173   : > { %v3121_v21 = vrot.slane %v3119_v11, 5  ;;  %v7618_v56 = vrot.slane %v3178_v60, 4  ;;  %v2623_v10 = vsel %vm6997_vm4, %v2618_v12, %v2622_v41  ;;  %v2637_v33 = vsel %vm6997_vm4, %v2632_v20, %v2636_v15  ;;  %v7633_v12 = vld [vmem:[#allocation2 + $0x3c] sm:$0x1] }
 0x174   : > { %v3109_v7 = vrot.slane %v3108_v47, 4  ;;  %v2641_v26 = vrot.slane %v2639_v44, 4  ;;  %v6034_v63 = vcombine.low %v2623_v10, %v2637_v33  ;;  %v3113_v27 = vrot.slane %v3111_v0, 5  ;;  %v6755_v10 = vld [vmem:[#allocation2 + $0x10] ss:$8 sps:$4 sm:$0xff]  }
 0x175   : > { %v3122_v36 = vor.u32 %v3121_v21, %v3118_v61  ;;  %v2644_v40 = vrot.slane %v2642_v54, 5  ;;  %v3127_v38 = vrot.slane %v3125_v24, 5  ;;  %v2648_v22 = vshll.u32 %v7524_v53, 16 }
 0x176   : > { %v2655_v1 = vrot.slane %v2653_v23, 4  ;;  %v2656_v51 = vshll.u32 %v2552_v49, 16  ;;  %6525 = vmatprep.mubr.msk.bf16.mxu1 %vm2070_vm15, %v6034_v63  ;;  %v3130_v57 = vshrl.u32 %v3065_v59, 16  ;;  %v3133_v58 = vshll.u32 %v3065_v59, 16 }
 0x177   : > { %v3123_v60 = vrot.slane %v3122_v36, 4  ;;  %v2645_v39 = vor.u32 %v2644_v40, %v2641_v26  ;;  %v3114_v13 = vsel %vm6997_vm4, %v3109_v7, %v3113_v27  ;;  %v2662_v25 = vshll.u32 %v7535_v19, 16 }
 0x178   : > { %v2658_v34 = vrot.slane %v2656_v51, 5  ;;  %v3144_v48 = vshrl.u32 %v3067_v31, 16  ;;  %v3132_v30 = vrot.slane %v3130_v57, 4  ;;  %v3135_v50 = vrot.slane %v3133_v58, 5  ;;  %v6757_v51 = vld [vmem:[#allocation2 + $0x20] ss:$8 sps:$4 sm:$0xff]  }
 0x179   : > { %v3128_v53 = vsel %vm6997_vm4, %v3123_v60, %v3127_v38  ;;  %v2646_v5 = vrot.slane %v2645_v39, 4  ;;  %v2650_v3 = vrot.slane %v2648_v22, 5  ;;  %v3183_v41 = vrot.slane %v3181_v14, 5  ;;  %v6758_v60 = vld [vmem:[#allocation2 + $0x30] ss:$8 sps:$4 sm:$0xff]  }
 0x17a   : > { %v6074_v32 = vcombine.low %v3114_v13, %v3128_v53  ;;  %v2659_v52 = vor.u32 %v2658_v34, %v2655_v1  ;;  %v3136_v28 = vor.u32 %v3135_v50, %v3132_v30  ;;  %v3139_v17 = vshll.u32 %v7629_v42, 16  ;;  %v3291_v1 = vld [vmem:[#allocation2 + $0x10] sm:$0xe]  ;;  %v3292_v39 = vld [vmem:[#allocation2 + $0x18] sm:$0xe] }
 0x17b   : > { %v3146_v19 = vrot.slane %v3144_v48, 4  ;;  %v3147_v29 = vshll.u32 %v3067_v31, 16  ;;  %v2664_v55 = vrot.slane %v2662_v25, 5  ;;  %v3158_v49 = vshrl.u32 %v3069_v62, 16  ;;  %v3294_v25 = vld [vmem:[#allocation2 + $0x28] sm:$0xe] }
 0x17c   : > { %6552 = vmatmul.mubr.msk.bf16.vlgmr.msra.gmra.mxu0 %vm2070_vm15, %v6074_v32  ;;  %v2660_v46 = vrot.slane %v2659_v52, 4  ;;  %v3161_v15 = vshll.u32 %v3069_v62, 16  ;;  %v2651_v0 = vsel %vm6997_vm4, %v2646_v5, %v2650_v3  ;;  %v3137_v61 = vrot.slane %v3136_v28, 4  ;;  %v3295_v48 = vld [vmem:[#allocation2 + $0x30] sm:$0xe] }
 0x17d   : > { %v3149_v11 = vrot.slane %v3147_v29, 5  ;;  %v3153_v14 = vshll.u32 %v7633_v12, 16  ;;  %v3160_v47 = vrot.slane %v3158_v49, 4  ;;  %v3167_v44 = vshll.u32 %v7636_v9, 16  ;;  %v6759_v53 = vld [vmem:[#allocation2 + $0x40] ss:$8 sps:$4 sm:$0xff]  }
 0x17e   : > { %v2665_v20 = vsel %vm6997_vm4, %v2660_v46, %v2664_v55  ;;  %v3163_v24 = vrot.slane %v3161_v15, 5  ;;  %v3141_v54 = vrot.slane %v3139_v17, 5  ;;  %v3184_v36 = vsel %vm6997_vm4, %v7618_v56, %v3183_v41  ;;  %v3293_v30 = vld [vmem:[#allocation2 + $0x20] sm:$0xe] }
 0x17f   : > { %v6035_v21 = vcombine.low %v2651_v0, %v2665_v20  ;;  %v3150_v23 = vor.u32 %v3149_v11, %v3146_v19  ;;  %v3155_v59 = vrot.slane %v3153_v14, 5  ;;  %v3169_v27 = vrot.slane %v3167_v44, 5  ;;  %v3298_v19 = vld [vmem:[#allocation2 + $0x48] sm:$0xe]  ;;  %v3297_v29 = vld [vmem:[#allocation2 + $0x40] sm:$0xe] }
 0x180   : > { %v3164_v33 = vor.u32 %v3163_v24, %v3160_v47  ;;  %v3142_v7 = vsel %vm6997_vm4, %v3137_v61, %v3141_v54  ;;  %v6082_v57 = vrot.slane %v3291_v1, 9  ;;  %v3317_v56 = vrot.slane %v7565_v45, 5  ;;  %v3490_v20 = vld [vmem:[#allocation3 + $0x18] sm:$0x1]  ;;  %v3520_v47 = vld [vmem:[#allocation3 + $0x1c] sm:$0x1] }
 0x181   : > { %6526 = vmatmul.mubr.msk.bf16.gmra.mxu1 %vm2070_vm15, %v6035_v21  ;;  %v3151_v26 = vrot.slane %v3150_v23, 4  ;;  %v6083_v58 = vrot.slane %v3292_v39, 9  ;;  %v3321_v13 = vrot.slane %v7574_v2, 5  ;;  %v6085_v62 = vrot.slane %v3294_v25, 9  ;;  %v3484_v44 = vld [vmem:[#allocation3 + $0x8] sm:$0x1] }
 0x182   : > { %6541 = vmatprep.mubr.msk.bf16.mxu1 %vm2070_vm15, %v6755_v10  ;;  %v3165_v63 = vrot.slane %v3164_v33, 4  ;;  %v3318_v34 = vsel %vm7331_vm14, %v6082_v57, %v3317_v56  ;;  %v3329_v45 = vrot.slane %v7604_v37, 5  ;;  %v6086_v32 = vrot.slane %v3295_v48, 9  ;;  %v3514_v21 = vld [vmem:[#allocation3 + $0xc] sm:$0x1] }
 0x183   : > { %v3156_v40 = vsel %vm6997_vm4, %v3151_v26, %v3155_v59  ;;  %v3322_v5 = vsel %vm7331_vm14, %v6083_v58, %v3321_v13  ;;  %v3333_v2 = vrot.slane %v7629_v42, 5  ;;  %v6084_v3 = vrot.slane %v3293_v30, 9  ;;  %v3493_v10 = vld [vmem:[#allocation3 + $0x20] sm:$0x1]  ;;  %v3523_v33 = vld [vmem:[#allocation3 + $0x24] sm:$0x1] }
 0x184   : > { %v6075_v31 = vcombine.low %v3142_v7, %v3156_v40  ;;  %v3170_v38 = vsel %vm6997_vm4, %v3165_v63, %v3169_v27  ;;  %v6092_v50 = vcombine.low %v3318_v34, %v3322_v5  ;;  %v3325_v52 = vrot.slane %v7593_v16, 5  ;;  %v3487_v59 = vld [vmem:[#allocation3 + $0x10] sm:$0x1]  ;;  %v3517_v63 = vld [vmem:[#allocation3 + $0x14] sm:$0x1]  ;;  %v6760_v5 = vld [vmem:[%s8519_s5 + $0x8] sm:$0xff]  }
 0x185   : > { %v6076_v22 = vcombine.low %v3170_v38, %v3184_v36  ;;  %v3337_v28 = vrot.slane %v7633_v12, 5  ;;  %v3330_v17 = vsel %vm7331_vm14, %v6085_v62, %v3329_v45  ;;  %v3334_v37 = vsel %vm7331_vm14, %v6086_v32, %v3333_v2  ;;  %v3502_v40 = vld [vmem:[#allocation3 + $0x38] sm:$0x1]  ;;  %v3496_v1 = vld [vmem:[#allocation3 + $0x28] sm:$0x1]  ;;  %v6761_v30 = vld [vmem:[%s8519_s5] sm:$0xff]   ;;  %6569 = vmatprep.subr.bf16.mxu0 %v6760_v5 }
 0x186   : > { %6555 = vmatprep.mubr.msk.bf16.mxu0 %vm2070_vm15, %v6075_v31  ;;  %v3326_v46 = vsel %vm7331_vm14, %v6084_v3, %v3325_v52  ;;  %v6089_v49 = vrot.slane %v3298_v19, 9  ;;  %v6088_v15 = vrot.slane %v3297_v29, 9  ;;  %v3341_v12 = vrot.slane %v7636_v9, 5  ;;  %v3532_v31 = vld [vmem:[#allocation3 + $0x3c] sm:$0x1]  ;;  %6570 = vmatpush3.bf16.msra.mxu0 %v6760_v5  ;;  %v7735_v52 = vld [vmem:[%s8519_s5 + $0x10] sm:$0xff]  }
 0x187   : > { %6556 = vmatmul.mubr.msk.bf16.gmra.mxu0 %vm2070_vm15, %v6076_v22  ;;  %v6093_v42 = vcombine.low %v3326_v46, %v3330_v17  ;;  %v3345_v0 = vrot.slane %v7591_v8, 5  ;;  %v3491_v9 = vsel %vm7163_vm7, 0, %v3490_v20  ;;  %v3521_v8 = vsel %vm7171_vm9, 0, %v3520_v47  ;;  %v3505_v57 = vld [vmem:[#allocation3 + $0x40] sm:$0x1]  ;;  %8552 = vst [vmem:[#allocation9_spill] sm:$0xff] %v7735_v52  ;;  %6589 = vmatprep.subr.bf16.mxu0 %v7735_v52 }
 0x188   : > { %v3342_v61 = vsel %vm7331_vm14, %v6088_v15, %v3341_v12  ;;  %3492 = vst [vmem:[#allocation3 + $0x18] sm:$0x1] %v3491_v9  ;;  %3522 = vst [vmem:[#allocation3 + $0x1c] sm:$0x1] %v3521_v8  ;;  %v3485_v54 = vsel %vm7163_vm7, 0, %v3484_v44  ;;  %v3515_v23 = vsel %vm7171_vm9, 0, %v3514_v21 }
 0x189   : > { %6542 = vmatmul.mubr.msk.bf16.vlgmr.msra.gmra.mxu1 %vm2070_vm15, %v6757_v51  ;;  %v3346_v11 = vsel %vm7331_vm14, %v6089_v49, %v3345_v0  ;;  %3486 = vst [vmem:[#allocation3 + $0x8] sm:$0x1] %v3485_v54  ;;  %3516 = vst [vmem:[#allocation3 + $0xc] sm:$0x1] %v3515_v23  ;;  %v3494_v7 = vsel %vm7163_vm7, 0, %v3493_v10  ;;  %v3524_v26 = vsel %vm7171_vm9, 0, %v3523_v33 }
 0x18a   : > { %6560 = vmatpush3.bf16.msra.mxu1 %v7598_v35  ;;  %6545 = vmatprep.mubr.msk.bf16.mxu1 %vm2070_vm15, %v6758_v60  ;;  %v3296_v35 = vld [vmem:[#allocation2 + $0x38] sm:$0xe]  ;;  %v6095_v14 = vcombine.low %v3342_v61, %v3346_v11  ;;  %3495 = vst [vmem:[#allocation3 + $0x20] sm:$0x1] %v3494_v7  ;;  %3525 = vst [vmem:[#allocation3 + $0x24] sm:$0x1] %v3524_v26 }
 0x18b   : > { %v6087_v41 = vrot.slane %v3296_v35, 9  ;;  %v3488_v27 = vsel %vm7163_vm7, 0, %v3487_v59  ;;  %v3518_v36 = vsel %vm7171_vm9, 0, %v3517_v63  ;;  %v3503_v38 = vsel %vm7163_vm7, 0, %v3502_v40  ;;  %v3526_v51 = vld [vmem:[#allocation3 + $0x2c] sm:$0x1]  ;;  %6579 = vmatprep.subr.bf16.mxu1 %v6761_v30 }
 0x18c   : > { %3489 = vst [vmem:[#allocation3 + $0x10] sm:$0x1] %v3488_v27  ;;  %3519 = vst [vmem:[#allocation3 + $0x14] sm:$0x1] %v3518_v36  ;;  %v3533_v22 = vsel %vm7171_vm9, 0, %v3532_v31  ;;  %v3497_v60 = vsel %vm7163_vm7, 0, %v3496_v1 }
 0x18d   : > { %v3338_v55 = vsel %vm7331_vm14, %v6087_v41, %v3337_v28  ;;  %3504 = vst [vmem:[#allocation3 + $0x38] sm:$0x1] %v3503_v38  ;;  %3534 = vst [vmem:[#allocation3 + $0x3c] sm:$0x1] %v3533_v22  ;;  %v3527_v39 = vsel %vm7171_vm9, 0, %v3526_v51  ;;  %v3506_v58 = vsel %vm7163_vm7, 0, %v3505_v57 }
 0x18e   : > { %v6094_v16 = vcombine.low %v3334_v37, %v3338_v55  ;;  %3498 = vst [vmem:[#allocation3 + $0x28] sm:$0x1] %v3497_v60  ;;  %3528 = vst [vmem:[#allocation3 + $0x2c] sm:$0x1] %v3527_v39  ;;  %v3535_v56 = vld [vmem:[#allocation3 + $0x44] sm:$0x1] }
 0x18f   : > { %v3536_v13 = vsel %vm7171_vm9, 0, %v3535_v56  ;;  %3507 = vst [vmem:[#allocation3 + $0x40] sm:$0x1] %v3506_v58  ;;  %v3499_v34 = vld [vmem:[#allocation3 + $0x30] sm:$0x1]  ;;  %v7740_v41 = vld [vmem:[%s8519_s5 + $0x18] sm:$0xff]  }
 0x190   : > { %3537 = vst [vmem:[#allocation3 + $0x44] sm:$0x1] %v3536_v13  ;;  %v3529_v25 = vld [vmem:[#allocation3 + $0x34] sm:$0x1]  ;;  %v3500_v48 = vsel %vm7163_vm7, 0, %v3499_v34  ;;  %8553 = vst [vmem:[#allocation12_spill] sm:$0xff] %v7740_v41 }
 0x191   : > { %6546 = vmatmul.mubr.msk.bf16.gmra.mxu1 %vm2070_vm15, %v6759_v53  ;;  %v3530_v53 = vsel %vm7171_vm9, 0, %v3529_v25  ;;  %3501 = vst [vmem:[#allocation3 + $0x30] sm:$0x1] %v3500_v48  ;;  %v3511_v45 = vld [vmem:[#allocation3 + $0x4] sm:$0x1] }
 0x192   : > { %6561 = vmatprep.mubr.msk.bf16.mxu1 %vm2070_vm15, %v6092_v50  ;;  %3531 = vst [vmem:[#allocation3 + $0x34] sm:$0x1] %v3530_v53  ;;  %v3481_v50 = vld [vmem:[#allocation3] sm:$0x1]  ;;  %v3512_v35 = vsel %vm7171_vm9, 0, %v3511_v45 }
 0x193   : > { %v3482_v62 = vsel %vm7163_vm7, 0, %v3481_v50  ;;  %3513 = vst [vmem:[#allocation3 + $0x4] sm:$0x1] %v3512_v35  ;;  %v3508_v36 = vld [vmem:[#allocation3 + $0x48] sm:$0x1] }
 0x194   : > { %3483 = vst [vmem:[#allocation3] sm:$0x1] %v3482_v62  ;;  %v3538_v40 = vld [vmem:[#allocation3 + $0x4c] sm:$0x1]  ;;  %v3509_v38 = vsel %vm7163_vm7, 0, %v3508_v36 }
 0x195   : > { %v3539_v22 = vsel %vm7171_vm9, 0, %v3538_v40  ;;  %3510 = vst [vmem:[#allocation3 + $0x48] sm:$0x1] %v3509_v38 }
 0x196   : > { %3540 = vst [vmem:[#allocation3 + $0x4c] sm:$0x1] %v3539_v22 }
 0x199   : > { %6562 = vmatmul.mubr.msk.bf16.vlgmr.msra.gmra.mxu1 %vm2070_vm15, %v6093_v42 }
 0x19a   : > { %6565 = vmatprep.mubr.msk.bf16.mxu1 %vm2070_vm15, %v6094_v16  ;;  %6580 = vmatpush3.bf16.msra.mxu1 %v6761_v30 }
 0x19b   : > { %6599 = vmatprep.subr.bf16.mxu1 %v7740_v41  ;;  %v7782_v35 = vld [vmem:[#allocation3] sm:$0xf] }
 0x19c   : > { %v3713_v4 = vshrl.u32 %v7782_v35, 16 }
 0x1a1   : > { %6566 = vmatmul.mubr.msk.bf16.gmra.mxu1 %vm2070_vm15, %v6095_v14 }
 0x201   : > { %v6493_v32 = vpop.f32.mrf.mxu0 }
 0x203   : > { %v2220_v2 = vpop.f32.mrf.mxu0 }
 0x205   : > { %v6494_v3 = vpop.f32.mrf.mxu0 }
 0x207   : > { %v2223_v28 = vpop.f32.mrf.mxu0 }
 0x20d   : > { %v7744_v17 = vpop.f32.mrf.mxu0  ;;  %v6483_v19 = vpop.f32.mrf.mxu1 }
 0x20e   : > { %v2229_v53 = vadd.f32 %v6493_v32, %v6483_v19 }
 0x20f   : > { %v7746_v37 = vpop.f32.mrf.mxu0  ;;  %v2117_v29 = vpop.f32.mrf.mxu1 }
 0x210   : > { %v2221_v50 = vadd.f32 %v2220_v2, %v2117_v29  ;;  %v3716_v2 = vshll.u32 %v7782_v35, 16 }
 0x211   : > { %v7748_v46 = vpop.f32.mrf.mxu0  ;;  %v6484_v42 = vpop.f32.mrf.mxu1 }
 0x212   : > { %v2232_v36 = vadd.f32 %v6494_v3, %v6484_v42 }
 0x213   : > { %v7750_v55 = vpop.f32.mrf.mxu0  ;;  %v2120_v49 = vpop.f32.mrf.mxu1 }
 0x214   : > { %v2224_v22 = vadd.f32 %v2223_v28, %v2120_v49  ;;  %v3715_v28 = vrot.slane %v3713_v4, 4 }
 0x215   : > { %v6513_v16 = vpop.f32.mrf.mxu0 }
 0x216   : > { %v6487_v15 = vpop.f32.mrf.mxu1 }
 0x217   : > { %v2499_v12 = vpop.f32.mrf.mxu0  ;;  %v2245_v29 = vadd.f32 %v7744_v17, %v6487_v15  ;;  %v3718_v17 = vrot.slane %v3716_v2, 5 }
 0x218   : > { %v2133_v0 = vpop.f32.mrf.mxu1 }
 0x219   : > { %v6514_v61 = vpop.f32.mrf.mxu0  ;;  %v2237_v3 = vadd.f32 %v7746_v37, %v2133_v0 }
 0x21a   : > { %v7752_v11 = vpop.f32.mrf.mxu1 }
 0x21b   : > { %v7754_v14 = vpop.f32.mrf.mxu0  ;;  %v2248_v49 = vadd.f32 %v7748_v46, %v7752_v11 }
 0x21c   : > { %v2136_v20 = vpop.f32.mrf.mxu1 }
 0x21d   : > { %v7756_v47 = vpop.f32.mrf.mxu0 }
 0x21e   : > { %v6503_v9 = vpop.f32.mrf.mxu1 }
 0x21f   : > { %v7758_v8 = vpop.f32.mrf.mxu0  ;;  %v2410_v62 = vadd.f32 %v6503_v9, %v2229_v53 }
 0x220   : > { %v2377_v44 = vpop.f32.mrf.mxu1 }
 0x221   : > { %v7760_v21 = vpop.f32.mrf.mxu0  ;;  %v2408_v40 = vadd.f32 %v2377_v44, %v2221_v50  ;;  %v2532_v41 = vadd.f32 %v6513_v16, %v2410_v62  ;;  %v2240_v16 = vadd.f32 %v7750_v55, %v2136_v20 }
 0x222   : > { %v6504_v54 = vpop.f32.mrf.mxu1 }
 0x223   : > { %v7762_v23 = vpop.f32.mrf.mxu0  ;;  %v2411_v6 = vadd.f32 %v6504_v54, %v2232_v36  ;;  %v2530_v32 = vadd.f32 %v2499_v12, %v2408_v40 }
 0x224   : > { %v2380_v10 = vpop.f32.mrf.mxu1 }
 0x225   : > { %v6533_v33 = vpop.f32.mrf.mxu0  ;;  %v2409_v18 = vadd.f32 %v2380_v10, %v2224_v22  ;;  %v2533_v44 = vadd.f32 %v6514_v61, %v2411_v6  ;;  %v7793_v61 = vld [vmem:[#allocation3 + $0x4] sm:$0x1] }
 0x226   : > { %v6507_v7 = vpop.f32.mrf.mxu1 }
 0x227   : > { %v7764_v59 = vpop.f32.mrf.mxu0  ;;  %v2414_v54 = vadd.f32 %v6507_v7, %v2245_v29  ;;  %v3719_v7 = vor.u32 %v3718_v17, %v3715_v28 }
 0x228   : > { %v2393_v26 = vpop.f32.mrf.mxu1 }
 0x229   : > { %v7766_v31 = vpop.f32.mrf.mxu0  ;;  %v2412_v10 = vadd.f32 %v2393_v26, %v2237_v3  ;;  %v2536_v46 = vadd.f32 %v7756_v47, %v2414_v54 }
 0x22a   : > { %v6508_v63 = vpop.f32.mrf.mxu1 }
 0x22b   : > { %v7772_v51 = vpop.f32.mrf.mxu0  ;;  %v2415_v15 = vadd.f32 %v6508_v63, %v2248_v49  ;;  %v2534_v11 = vadd.f32 %v7758_v8, %v2412_v10 }
 0x22c   : > { %v2396_v27 = vpop.f32.mrf.mxu1 }
 0x22d   : > { %v7774_v39 = vpop.f32.mrf.mxu0  ;;  %v2413_v62 = vadd.f32 %v2396_v27, %v2240_v16  ;;  %v2537_v63 = vadd.f32 %v7760_v21, %v2415_v15 }
 0x22e   : > { %v6523_v1 = vpop.f32.mrf.mxu1 }
 0x22f   : > { %v7776_v56 = vpop.f32.mrf.mxu0  ;;  %v2535_v27 = vadd.f32 %v7762_v23, %v2413_v62 }
 0x230   : > { %v2733_v60 = vpop.f32.mrf.mxu1 }
 0x231   : > { %v7778_v13 = vpop.f32.mrf.mxu0  ;;  %v2764_v42 = vadd.f32 %v2733_v60, %v2530_v32 }
 0x232   : > { %v6524_v57 = vpop.f32.mrf.mxu1 }
 0x233   : > { %v7780_v25 = vpop.f32.mrf.mxu0  ;;  %v2926_v4 = vadd.f32 %v7764_v59, %v2764_v42 }
 0x234   : > { %v2736_v58 = vpop.f32.mrf.mxu1  ;;  %8554 = vst [vmem:[#allocation13_spill] sm:$0xff] %v7780_v25  ;;  %v2766_v25 = vadd.f32 %v6523_v1, %v2532_v41  ;;  %v2531_v41 = vadd.f32 %v7754_v14, %v2409_v18  ;;  %v2767_v1 = vadd.f32 %v6524_v57, %v2533_v44  ;;  %v3722_v18 = vshll.u32 %v7793_v61, 16 }
 0x236   : > { %v2928_v50 = vadd.f32 %v6533_v33, %v2766_v25  ;;  %v2765_v37 = vadd.f32 %v2736_v58, %v2531_v41  ;;  %v2929_v33 = vadd.f32 %v7766_v31, %v2767_v1  ;;  %v4842_v25 = vld [vmem:[#allocation3 + $0x48] sm:$0xf]  ;;  %v7807_v23 = vrot.slane %v3722_v18, 5  ;;  %v7817_v41 = vld [vmem:[#allocation3] sm:$0xe] }
 0x238   : > { %v2927_v59 = vadd.f32 %v7772_v51, %v2765_v37 }
 0x23b   : > { %v8555_v3 = vld [vmem:[#allocation13_spill] sm:$0xff] }
 0x23c   : > { %v6553_v5 = vpop.f32.mrf.mxu0 }
 0x23e   : > { %v3252_v38 = vpop.f32.mrf.mxu0 }
 0x240   : > { %v6554_v19 = vpop.f32.mrf.mxu0 }
 0x241   : > { %v6527_v34 = vpop.f32.mrf.mxu1 }
 0x242   : > { %v3255_v53 = vpop.f32.mrf.mxu0  ;;  %v2770_v26 = vadd.f32 %v6527_v34, %v2536_v46 }
 0x243   : > { %v2749_v48 = vpop.f32.mrf.mxu1 }
 0x244   : > { %v2768_v57 = vadd.f32 %v2749_v48, %v2534_v11  ;;  %v2932_v51 = vadd.f32 %v7774_v39, %v2770_v26 }
 0x245   : > { %v6528_v24 = vpop.f32.mrf.mxu1 }
 0x247   : > { %v2752_v30 = vpop.f32.mrf.mxu1  ;;  %v6557_v14 = vpop.f32.mrf.mxu0 }
 0x248   : > { %v2769_v36 = vadd.f32 %v2752_v30, %v2535_v27  ;;  %v2930_v30 = vadd.f32 %v7776_v56, %v2768_v57 }
 0x249   : > { %v6543_v45 = vpop.f32.mrf.mxu1  ;;  %v3268_v31 = vpop.f32.mrf.mxu0 }
 0x24a   : > { %v3051_v6 = vadd.f32 %v6543_v45, %v2928_v50  ;;  %v2771_v45 = vadd.f32 %v6528_v24, %v2537_v63  ;;  %v4946_v24 = vshll.u32 %v4842_v25, 16 }
 0x24b   : > { %v3018_v52 = vpop.f32.mrf.mxu1  ;;  %v6558_v28 = vpop.f32.mrf.mxu0 }
 0x24c   : > { %v3049_v20 = vadd.f32 %v3018_v52, %v2926_v4  ;;  %v3285_v58 = vadd.f32 %v6553_v5, %v3051_v6  ;;  %v7805_v52 = vld [vmem:[%s8518_s4] ss:$0 sm:$0xff]  ;;  %v4943_v5 = vshrl.u32 %v4842_v25, 16  ;;  %v7828_v4 = vrot.slane %v4946_v24, 5 }
 0x24d   : > { %v6544_v43 = vpop.f32.mrf.mxu1  ;;  %v3271_v46 = vpop.f32.mrf.mxu0 }
 0x24e   : > { %v3052_v47 = vadd.f32 %v6544_v43, %v2929_v33  ;;  %v3283_v34 = vadd.f32 %v3252_v38, %v3049_v20  ;;  %v7810_v43 = vrot.slane %v3719_v7, 4  ;;  %v2931_v38 = vadd.f32 %v8555_v3, %v2769_v36 }
 0x24f   : > { %v3021_v9 = vpop.f32.mrf.mxu1  ;;  %v7826_v6 = vrot.slane %v4943_v5, 4  ;;  %v3649_v5 = vld [vmem:[#allocation3 + $0xc] sm:$0x1] }
 0x250   : > { %v3050_v8 = vadd.f32 %v3021_v9, %v2927_v59  ;;  %v3286_v2 = vadd.f32 %v6554_v19, %v3052_v47  ;;  %v2933_v9 = vadd.f32 %v7778_v13, %v2771_v45  ;;  %v3725_v13 = vsel %vm6997_vm4, %v7810_v43, %v7807_v23  ;;  %v3658_v47 = vld [vmem:[#allocation3 + $0x18] sm:$0xf] }
 0x251   : > { %v6547_v12 = vpop.f32.mrf.mxu1 }
 0x252   : > { %v3055_v29 = vadd.f32 %v6547_v12, %v2932_v51  ;;  %v3284_v44 = vadd.f32 %v3255_v53, %v3050_v8  ;;  %v4051_v12 = vrot.slane %v7793_v61, 5 }
 0x253   : > { %v3034_v0 = vpop.f32.mrf.mxu1 }
 0x254   : > { %v3053_v39 = vadd.f32 %v3034_v0, %v2930_v30  ;;  %v3289_v62 = vadd.f32 %v6557_v14, %v3055_v29  ;;  %v6130_v0 = vrot.slane %v7817_v41, 9 }
 0x255   : > { %v6548_v55 = vpop.f32.mrf.mxu1 }
 0x256   : > { %v3056_v56 = vadd.f32 %v6548_v55, %v2933_v9  ;;  %v3287_v20 = vadd.f32 %v3268_v31, %v3053_v39 }
 0x257   : > { %v3037_v60 = vpop.f32.mrf.mxu1 }
 0x258   : > { %v3054_v10 = vadd.f32 %v3037_v60, %v2931_v38  ;;  %v3290_v63 = vadd.f32 %v6558_v28, %v3056_v56 }
 0x259   : > { %v6563_v40 = vpop.f32.mrf.mxu1 }
 0x25a   : > { %v3447_v21 = vadd.f32 %v6563_v40, %v3285_v58  ;;  %v3288_v27 = vadd.f32 %v3271_v46, %v3054_v10  ;;  %v3661_v58 = vld [vmem:[#allocation3 + $0x1c] sm:$0x1]  ;;  %v3664_v10 = vld [vmem:[#allocation3 + $0x20] sm:$0xf]  ;;  %v7841_v46 = vld [vmem:[#allocation3 + $0x4c] sm:$0x1] }
 0x25b   : > { %v3414_v48 = vpop.f32.mrf.mxu1 }
 0x25c   : > { %v3462_v22 = vadd.f32 %v7805_v52, %v3447_v21  ;;  %v3445_v32 = vadd.f32 %v3414_v48, %v3283_v34  ;;  %v3646_v48 = vld [vmem:[#allocation3 + $0x8] sm:$0xf] }
 0x25d   : > { %v6564_v42 = vpop.f32.mrf.mxu1 }
 0x25e   : > { %v3470_v49 = vmax.f32 %v3462_v22, 0.0  ;;  %v3460_v16 = vadd.f32 %v7805_v52, %v3445_v32  ;;  %v3448_v54 = vadd.f32 %v6564_v42, %v3286_v2 }
 0x25f   : > { %v3417_v1 = vpop.f32.mrf.mxu1 }
 0x260   : > { %v6247_v50 = vpack.c.bf16 %v3470_v49, %v3470_v49  ;;  %v3468_v53 = vmax.f32 %v3460_v16, 0.0  ;;  %v3463_v17 = vadd.f32 %v7805_v52, %v3448_v54  ;;  %v3446_v15 = vadd.f32 %v3417_v1, %v3284_v44  ;;  %v3667_v1 = vld [vmem:[#allocation3 + $0x24] sm:$0x1] }
 0x261   : > { %v6567_v37 = vpop.f32.mrf.mxu1 }
 0x262   : > { %v3582_v55 = vshrl.u32 %v6247_v50, 16  ;;  %v6245_v18 = vpack.c.bf16 %v3468_v53, %v3468_v53  ;;  %v3471_v11 = vmax.f32 %v3463_v17, 0.0  ;;  %v3461_v33 = vadd.f32 %v7805_v52, %v3446_v15 }
 0x263   : > { %v3451_v7 = vadd.f32 %v6567_v37, %v3289_v62  ;;  %v3430_v26 = vpop.f32.mrf.mxu1  ;;  %v3585_v14 = vshll.u32 %v6247_v50, 16 }
 0x264   : > { %v3584_v59 = vrot.slane %v3582_v55, 7  ;;  %v3566_v60 = vshrl.u32 %v6245_v18, 16  ;;  %v6248_v57 = vpack.c.bf16 %v3471_v11, %v3471_v11  ;;  %v3569_v25 = vshll.u32 %v6245_v18, 16  ;;  %v3652_v55 = vld [vmem:[#allocation3 + $0x10] sm:$0xf] }
 0x265   : > { %v3469_v45 = vmax.f32 %v3461_v33, 0.0  ;;  %v3466_v36 = vadd.f32 %v7805_v52, %v3451_v7  ;;  %v3449_v8 = vadd.f32 %v3430_v26, %v3287_v20  ;;  %v6568_v40 = vpop.f32.mrf.mxu1  ;;  %v3655_v18 = vld [vmem:[#allocation3 + $0x14] sm:$0x1]  ;;  %v4952_v7 = vshll.u32 %v7841_v46, 16 }
 0x266   : > { %v3587_v21 = vor.u32 %v3585_v14, %v3584_v59  ;;  %v3588_v31 = vrot.slane %v3584_v59, 4  ;;  %v3568_v34 = vrot.slane %v3566_v60, 7  ;;  %v3590_v51 = vshrl.u32 %v6248_v57, 16  ;;  %v3682_v60 = vld [vmem:[#allocation3 + $0x38] sm:$0xf] }
 0x267   : > { %v3593_v24 = vshll.u32 %v6248_v57, 16  ;;  %v6246_v30 = vpack.c.bf16 %v3469_v45, %v3469_v45  ;;  %v3474_v22 = vmax.f32 %v3466_v36, 0.0  ;;  %v3464_v32 = vadd.f32 %v7805_v52, %v3449_v8  ;;  %v3433_v16 = vpop.f32.mrf.mxu1 }
 0x268   : > { %v3659_v29 = vsel %vm7187_vm11, %v3587_v21, %v3658_v47  ;;  %v3662_v3 = vsel %vm7163_vm7, %v3588_v31, %v3661_v58  ;;  %v3571_v38 = vor.u32 %v3569_v25, %v3568_v34  ;;  %v3572_v42 = vrot.slane %v3568_v34, 4  ;;  %v3685_v58 = vld [vmem:[#allocation3 + $0x3c] sm:$0x1]  ;;  %v3673_v21 = vld [vmem:[#allocation3 + $0x2c] sm:$0x1] }
 0x269   : > { %3660 = vst [vmem:[#allocation3 + $0x18] sm:$0xf] %v3659_v29  ;;  %3663 = vst [vmem:[#allocation3 + $0x1c] sm:$0x1] %v3662_v3  ;;  %v3592_v44 = vrot.slane %v3590_v51, 7  ;;  %v3574_v28 = vshrl.u32 %v6246_v30, 16  ;;  %v6251_v49 = vpack.c.bf16 %v3474_v22, %v3474_v22  ;;  %v3452_v53 = vadd.f32 %v6568_v40, %v3290_v63 }
 0x26a   : > { %v3577_v39 = vshll.u32 %v6246_v30, 16  ;;  %v3647_v54 = vsel %vm7187_vm11, %v3571_v38, %v3646_v48  ;;  %v3650_v56 = vsel %vm7163_vm7, %v3572_v42, %v3649_v5  ;;  %v3472_v50 = vmax.f32 %v3464_v32, 0.0  ;;  %v3670_v40 = vld [vmem:[#allocation3 + $0x28] sm:$0xf] }
 0x26b   : > { %3648 = vst [vmem:[#allocation3 + $0x8] sm:$0xf] %v3647_v54  ;;  %3651 = vst [vmem:[#allocation3 + $0xc] sm:$0x1] %v3650_v56  ;;  %v3595_v17 = vor.u32 %v3593_v24, %v3592_v44  ;;  %v3596_v15 = vrot.slane %v3592_v44, 4  ;;  %v3576_v62 = vrot.slane %v3574_v28, 7  ;;  %v3467_v20 = vadd.f32 %v7805_v52, %v3452_v53 }
 0x26c   : > { %v3614_v37 = vshrl.u32 %v6251_v49, 16  ;;  %v6249_v11 = vpack.c.bf16 %v3472_v50, %v3472_v50  ;;  %v3450_v33 = vadd.f32 %v3433_v16, %v3288_v27  ;;  %v3617_v47 = vshll.u32 %v6251_v49, 16  ;;  %v3691_v50 = vld [vmem:[#allocation3 + $0x44] sm:$0x1] }
 0x26d   : > { %v3665_v26 = vsel %vm7187_vm11, %v3595_v17, %v3664_v10  ;;  %v3668_v63 = vsel %vm7163_vm7, %v3596_v15, %v3667_v1  ;;  %v3579_v59 = vor.u32 %v3577_v39, %v3576_v62  ;;  %v3580_v14 = vrot.slane %v3576_v62, 4  ;;  %v3688_v1 = vld [vmem:[#allocation3 + $0x40] sm:$0xf] }
 0x26e   : > { %3666 = vst [vmem:[#allocation3 + $0x20] sm:$0xf] %v3665_v26  ;;  %3669 = vst [vmem:[#allocation3 + $0x24] sm:$0x1] %v3668_v63  ;;  %v3616_v57 = vrot.slane %v3614_v37, 7  ;;  %v3598_v25 = vshrl.u32 %v6249_v11, 16  ;;  %v3465_v31 = vadd.f32 %v7805_v52, %v3450_v33 }
 0x26f   : > { %v3475_v45 = vmax.f32 %v3467_v20, 0.0  ;;  %v3653_v27 = vsel %vm7187_vm11, %v3579_v59, %v3652_v55  ;;  %v3656_v36 = vsel %vm7163_vm7, %v3580_v14, %v3655_v18  ;;  %v3601_v8 = vshll.u32 %v6249_v11, 16  ;;  %v3676_v11 = vld [vmem:[#allocation3 + $0x30] sm:$0xf]  ;;  %v3679_v20 = vld [vmem:[#allocation3 + $0x34] sm:$0x1] }
 0x270   : > { %3654 = vst [vmem:[#allocation3 + $0x10] sm:$0xf] %v3653_v27  ;;  %3657 = vst [vmem:[#allocation3 + $0x14] sm:$0x1] %v3656_v36  ;;  %v3619_v34 = vor.u32 %v3617_v47, %v3616_v57  ;;  %v3620_v51 = vrot.slane %v3616_v57, 4  ;;  %v3600_v48 = vrot.slane %v3598_v25, 7 }
 0x271   : > { %v6252_v5 = vpack.c.bf16 %v3475_v45, %v3475_v45  ;;  %v3697_v24 = vld [vmem:[#allocation3 + $0x18] sm:$0xf]  ;;  %v7854_v30 = vld [vmem:[#allocation3 + $0x1c] sm:$0x1]  ;;  %v3473_v22 = vmax.f32 %v3465_v31, 0.0 }
 0x272   : > { %v3755_v32 = vshrl.u32 %v3697_v24, 16  ;;  %v3758_v29 = vshll.u32 %v3697_v24, 16  ;;  %v3764_v3 = vshll.u32 %v7854_v30, 16  ;;  %v3683_v38 = vsel %vm7187_vm11, %v3619_v34, %v3682_v60  ;;  %v3695_v28 = vld [vmem:[#allocation3 + $0x8] sm:$0xf] }
 0x273   : > { %v3686_v52 = vsel %vm7163_vm7, %v3620_v51, %v3685_v58  ;;  %v3603_v42 = vor.u32 %v3601_v8, %v3600_v48  ;;  %v3604_v44 = vrot.slane %v3600_v48, 4  ;;  %3684 = vst [vmem:[#allocation3 + $0x38] sm:$0xf] %v3683_v38  ;;  %v3622_v39 = vshrl.u32 %v6252_v5, 16  ;;  %v7867_v36 = vld [vmem:[#allocation3 + $0xc] sm:$0x1] }
 0x274   : > { %3687 = vst [vmem:[#allocation3 + $0x3c] sm:$0x1] %v3686_v52  ;;  %v3625_v49 = vshll.u32 %v6252_v5, 16  ;;  %v6250_v16 = vpack.c.bf16 %v3473_v22, %v3473_v22  ;;  %v3727_v54 = vshrl.u32 %v3695_v28, 16  ;;  %v3730_v53 = vshll.u32 %v3695_v28, 16  ;;  %v7872_v8 = vld [vmem:[%s8519_s5 + $0x28] sm:$0xff]  }
 0x275   : > { %v3671_v56 = vsel %vm7187_vm11, %v3603_v42, %v3670_v40  ;;  %v3674_v10 = vsel %vm7163_vm7, %v3604_v44, %v3673_v21  ;;  %v6121_v17 = vcombine.low %v7782_v35, %v3695_v28  ;;  %v3624_v15 = vrot.slane %v3622_v39, 7  ;;  %v3698_v18 = vld [vmem:[#allocation3 + $0x20] sm:$0xf]  ;;  %v8559_v44 = vld [vmem:[#allocation12_spill] sm:$0xff]  ;;  %v7892_v2 = vld [vmem:[#allocation3 + $0x24] sm:$0x1] }
 0x276   : > { %3672 = vst [vmem:[#allocation3 + $0x28] sm:$0xf] %v3671_v56  ;;  %3675 = vst [vmem:[#allocation3 + $0x2c] sm:$0x1] %v3674_v10  ;;  %v3606_v62 = vshrl.u32 %v6250_v16, 16  ;;  %v3609_v37 = vshll.u32 %v6250_v16, 16 }
 0x277   : > { %v3729_v55 = vrot.slane %v3727_v54, 4  ;;  %v3732_v33 = vrot.slane %v3730_v53, 5  ;;  %6581 = vmatprep.mubr.msk.bf16.mxu1 %vm2070_vm15, %v6121_v17  ;;  %v3757_v26 = vrot.slane %v3755_v32, 4  ;;  %v3760_v63 = vrot.slane %v3758_v29, 5  ;;  %v3696_v47 = vld [vmem:[#allocation3 + $0x10] sm:$0xf] }
 0x278   : > { %v3769_v59 = vshrl.u32 %v3698_v18, 16  ;;  %v3627_v14 = vor.u32 %v3625_v49, %v3624_v15  ;;  %v3628_v60 = vrot.slane %v3624_v15, 4  ;;  %v3608_v57 = vrot.slane %v3606_v62, 7  ;;  %v7878_v51 = vld [vmem:[#allocation3 + $0x14] sm:$0x1] }
 0x279   : > { %v3772_v35 = vshll.u32 %v3698_v18, 16  ;;  %v3741_v58 = vshrl.u32 %v3696_v47, 16  ;;  %v3744_v25 = vshll.u32 %v3696_v47, 16  ;;  %v6122_v45 = vcombine.low %v3696_v47, %v3697_v24  ;;  %v4026_v43 = vld [vmem:[#allocation3 + $0x8] sm:$0xe] }
 0x27a   : > { %v3771_v27 = vrot.slane %v3769_v59, 4  ;;  %v3689_v40 = vsel %vm7187_vm11, %v3627_v14, %v3688_v1  ;;  %v3692_v21 = vsel %vm7163_vm7, %v3628_v60, %v3691_v50  ;;  %v3611_v31 = vor.u32 %v3609_v37, %v3608_v57  ;;  %v7881_v32 = vld [vmem:[#allocation3 + $0x38] sm:$0xf] }
 0x27b   : > { %v3612_v34 = vrot.slane %v3608_v57, 4  ;;  %3690 = vst [vmem:[#allocation3 + $0x40] sm:$0xf] %v3689_v40  ;;  %3693 = vst [vmem:[#allocation3 + $0x44] sm:$0x1] %v3692_v21  ;;  %v3743_v48 = vrot.slane %v3741_v58, 4  ;;  %6582 = vmatmul.mubr.msk.bf16.vlgmr.msra.gmra.mxu1 %vm2070_vm15, %v6122_v45  ;;  %v3733_v22 = vor.u32 %v3732_v33, %v3729_v55  ;;  %v3761_v33 = vor.u32 %v3760_v63, %v3757_v26 }
 0x27c   : > { %v3746_v5 = vrot.slane %v3744_v25, 5  ;;  %v3774_v24 = vrot.slane %v3772_v35, 5  ;;  %v3677_v29 = vsel %vm7187_vm11, %v3611_v31, %v3676_v11  ;;  %v3736_v52 = vshll.u32 %v7867_v36, 16  ;;  %6600 = vmatpush3.bf16.msra.mxu1 %v8559_v44  ;;  %v7897_v37 = vld [vmem:[#allocation3 + $0x3c] sm:$0x1] }
 0x27d   : > { %v3680_v38 = vsel %vm7163_vm7, %v3612_v34, %v3679_v20  ;;  %v3811_v42 = vshrl.u32 %v7881_v32, 16  ;;  %3678 = vst [vmem:[#allocation3 + $0x30] sm:$0xf] %v3677_v29  ;;  %v3699_v28 = vld [vmem:[#allocation3 + $0x28] sm:$0xf]  ;;  %v3734_v39 = vrot.slane %v3733_v22, 4  ;;  %6619 = vmatprep.subr.bf16.mxu1 %v7872_v8 }
 0x27e   : > { %3681 = vst [vmem:[#allocation3 + $0x34] sm:$0x1] %v3680_v38  ;;  %v3814_v49 = vshll.u32 %v7881_v32, 16  ;;  %v3747_v16 = vor.u32 %v3746_v5, %v3743_v48  ;;  %v3750_v54 = vshll.u32 %v7878_v51, 16  ;;  %v3783_v9 = vshrl.u32 %v3699_v28, 16  ;;  %v7928_v34 = vld [vmem:[%s8519_s5 + $0x20] sm:$0xff]  }
 0x27f   : > { %v3786_v56 = vshll.u32 %v3699_v28, 16  ;;  %v6123_v10 = vcombine.low %v3698_v18, %v3699_v28  ;;  %v3738_v1 = vrot.slane %v3736_v52, 5  ;;  %v7895_v50 = vld [vmem:[#allocation3 + $0x2c] sm:$0x1]  ;;  %v3813_v53 = vrot.slane %v3811_v42, 4 }
 0x280   : > { %v3816_v17 = vrot.slane %v3814_v49, 5  ;;  %v3748_v15 = vrot.slane %v3747_v16, 4  ;;  %v3752_v62 = vrot.slane %v3750_v54, 5  ;;  %v3785_v55 = vrot.slane %v3783_v9, 4  ;;  %v4027_v25 = vld [vmem:[#allocation3 + $0x10] sm:$0xe] }
 0x281   : > { %v3788_v11 = vrot.slane %v3786_v56, 5  ;;  %6585 = vmatprep.mubr.msk.bf16.mxu1 %vm2070_vm15, %v6123_v10  ;;  %v3739_v20 = vsel %vm6997_vm4, %v3734_v39, %v3738_v1  ;;  %v3766_v14 = vrot.slane %v3764_v3, 5  ;;  %v3775_v60 = vor.u32 %v3774_v24, %v3771_v27  ;;  %v4028_v61 = vld [vmem:[#allocation3 + $0x18] sm:$0xe]  ;;  %v6767_v24 = vld [vmem:[#allocation3 + $0x8] ss:$8 sps:$4 sm:$0xff]  }
 0x282   : > { %v6112_v18 = vcombine.low %v3725_v13, %v3739_v20  ;;  %v3753_v59 = vsel %vm6997_vm4, %v3748_v15, %v3752_v62  ;;  %v3762_v57 = vrot.slane %v3761_v33, 4  ;;  %v3778_v47 = vshll.u32 %v7892_v2, 16  ;;  %v7938_v42 = vld [vmem:[#allocation3 + $0xc] sm:$0x1]  ;;  %v4543_v49 = vld [vmem:[#allocation3 + $0x8] sm:$0xe] }
 0x283   : > { %v3789_v35 = vor.u32 %v3788_v11, %v3785_v55  ;;  %v3792_v58 = vshll.u32 %v7895_v50, 16  ;;  %v3776_v26 = vrot.slane %v3775_v60, 4  ;;  %v3817_v63 = vor.u32 %v3816_v17, %v3813_v53  ;;  %v8561_v16 = vld [vmem:[#allocation9_spill] sm:$0xff]  ;;  %v4544_v1 = vld [vmem:[#allocation3 + $0x10] sm:$0xe] }
 0x284   : > { %6571 = vmatprep.mubr.msk.bf16.mxu0 %vm2070_vm15, %v6112_v18  ;;  %v3820_v23 = vshll.u32 %v7897_v37, 16  ;;  %v7921_v3 = vsel %vm7331_vm14, %v6130_v0, %v4051_v12  ;;  %v3700_v45 = vld [vmem:[#allocation3 + $0x30] sm:$0xf]  ;;  %v3767_v27 = vsel %vm6997_vm4, %v3762_v57, %v3766_v14  ;;  %v3780_v40 = vrot.slane %v3778_v47, 5  ;;  %v7949_v62 = vld [vmem:[#allocation3 + $0x14] sm:$0x1] }
 0x285   : > { %v3790_v21 = vrot.slane %v3789_v35, 4  ;;  %v3794_v31 = vrot.slane %v3792_v58, 5  ;;  %v3797_v48 = vshrl.u32 %v3700_v45, 16  ;;  %v3800_v41 = vshll.u32 %v3700_v45, 16  ;;  %v7931_v0 = vld [vmem:[#allocation3 + $0x34] sm:$0x1] }
 0x286   : > { %v6124_v5 = vcombine.low %v3700_v45, %v7881_v32  ;;  %v6113_v12 = vcombine.low %v3753_v59, %v3767_v27  ;;  %v3781_v22 = vsel %vm6997_vm4, %v3776_v26, %v3780_v40  ;;  %v3806_v38 = vshll.u32 %v7931_v0, 16  ;;  %v4029_v55 = vld [vmem:[#allocation3 + $0x20] sm:$0xe]  ;;  %v4030_v18 = vld [vmem:[#allocation3 + $0x28] sm:$0xe] }
 0x287   : > { %v3795_v29 = vsel %vm6997_vm4, %v3790_v21, %v3794_v31  ;;  %v3818_v52 = vrot.slane %v3817_v63, 4  ;;  %v3799_v44 = vrot.slane %v3797_v48, 4  ;;  %v3802_v28 = vrot.slane %v3800_v41, 5  ;;  %v6769_v59 = vld [vmem:[#allocation3 + $0x18] ss:$8 sps:$4 sm:$0xff]   ;;  %v7982_v48 = vld [vmem:[%s8519_s5 + $0x38] sm:$0xff]  }
 0x288   : > { %6586 = vmatmul.mubr.msk.bf16.gmra.mxu1 %vm2070_vm15, %v6124_v5  ;;  %6572 = vmatmul.mubr.msk.bf16.vlgmr.msra.gmra.mxu0 %vm2070_vm15, %v6113_v12  ;;  %v6114_v32 = vcombine.low %v3781_v22, %v3795_v29  ;;  %v6131_v39 = vrot.slane %v4026_v43, 9  ;;  %v3822_v54 = vrot.slane %v3820_v23, 5  ;;  %v4055_v9 = vrot.slane %v7867_v36, 5  ;;  %v7962_v47 = vld [vmem:[#allocation3 + $0x1c] sm:$0x1] }
 0x289   : > { %6590 = vmatpush3.bf16.msra.mxu0 %v8561_v16  ;;  %6601 = vmatprep.mubr.msk.bf16.mxu1 %vm2070_vm15, %v6767_v24  ;;  %v6132_v56 = vrot.slane %v4027_v25, 9  ;;  %v4059_v10 = vrot.slane %v7878_v51, 5  ;;  %v3803_v53 = vor.u32 %v3802_v28, %v3799_v44  ;;  %v6133_v17 = vrot.slane %v4028_v61, 9  ;;  %v4545_v35 = vld [vmem:[#allocation3 + $0x18] sm:$0xe] }
 0x28a   : > { %6575 = vmatprep.mubr.msk.bf16.mxu0 %vm2070_vm15, %v6114_v32  ;;  %6609 = vmatprep.subr.bf16.mxu0 %v7928_v34  ;;  %v4063_v15 = vrot.slane %v7854_v30, 5  ;;  %v4949_v11 = vor.u32 %v7828_v4, %v7826_v6  ;;  %v3808_v20 = vrot.slane %v3806_v38, 5  ;;  %v3823_v36 = vsel %vm6997_vm4, %v3818_v52, %v3822_v54  ;;  %v6770_v58 = vld [vmem:[#allocation3 + $0x28] ss:$8 sps:$4 sm:$0xff]   ;;  %v7973_v25 = vld [vmem:[#allocation3 + $0x24] sm:$0x1] }
 0x28b   : > { %v6171_v51 = vrot.slane %v4543_v49, 9  ;;  %v4569_v33 = vrot.slane %v7938_v42, 5  ;;  %v3804_v14 = vrot.slane %v3803_v53, 4  ;;  %v4056_v60 = vsel %vm7331_vm14, %v6131_v39, %v4055_v9  ;;  %v4546_v45 = vld [vmem:[#allocation3 + $0x20] sm:$0xe] }
 0x28c   : > { %v7960_v30 = vsel %vm7331_vm14, %v6132_v56, %v4059_v10  ;;  %v6172_v57 = vrot.slane %v4544_v1, 9  ;;  %v7966_v26 = vsel %vm7331_vm14, %v6133_v17, %v4063_v15  ;;  %v4573_v23 = vrot.slane %v7949_v62, 5  ;;  %v4031_v61 = vld [vmem:[#allocation3 + $0x30] sm:$0xe]  ;;  %v4032_v22 = vld [vmem:[#allocation3 + $0x38] sm:$0xe] }
 0x28d   : > { %v7970_v63 = vsel %vm7331_vm14, %v6171_v51, %v4569_v33  ;;  %v6134_v43 = vrot.slane %v4029_v55, 9  ;;  %v3809_v27 = vsel %vm6997_vm4, %v3804_v14, %v3808_v20  ;;  %v4067_v40 = vrot.slane %v7892_v2, 5  ;;  %v7989_v29 = vld [vmem:[#allocation3 + $0x34] sm:$0x1]  ;;  %v4547_v44 = vld [vmem:[#allocation3 + $0x28] sm:$0xe] }
 0x28e   : > { %v6135_v21 = vrot.slane %v4030_v18, 9  ;;  %v4071_v31 = vrot.slane %v7895_v50, 5  ;;  %v6115_v41 = vcombine.low %v3809_v27, %v3823_v36  ;;  %v7986_v5 = vsel %vm7331_vm14, %v6172_v57, %v4573_v23  ;;  %v4548_v28 = vld [vmem:[#allocation3 + $0x30] sm:$0xe]  ;;  %v8004_v16 = vld [vmem:[#allocation3 + $0x2c] sm:$0x1] }
 0x28f   : > { %v6173_v12 = vrot.slane %v4545_v35, 9  ;;  %v4577_v24 = vrot.slane %v7962_v47, 5  ;;  %v6140_v2 = vcombine.low %v7921_v3, %v4056_v60  ;;  %v6141_v50 = vcombine.low %v7960_v30, %v7966_v26  ;;  %v4309_v54 = vld [vmem:[#allocation3 + $0x8] sm:$0xf]  ;;  %v4311_v20 = vld [vmem:[#allocation3 + $0x10] sm:$0xf] }
 0x290   : > { %6602 = vmatmul.mubr.msk.bf16.vlgmr.msra.gmra.mxu1 %vm2070_vm15, %v6769_v59  ;;  %v6181_v38 = vcombine.low %v7970_v63, %v7986_v5  ;;  %v6174_v52 = vrot.slane %v4546_v45, 9  ;;  %6576 = vmatmul.mubr.msk.bf16.gmra.mxu0 %vm2070_vm15, %v6115_v41  ;;  %v4068_v32 = vsel %vm7331_vm14, %v6134_v43, %v4067_v40  ;;  %v4072_v39 = vsel %vm7331_vm14, %v6135_v21, %v4071_v31  ;;  %v4549_v33 = vld [vmem:[#allocation3 + $0x38] sm:$0xe]  ;;  %v8033_v30 = vld [vmem:[#allocation3 + $0x3c] sm:$0x1]  ;;  %v8043_v43 = vld [vmem:[%s8519_s5 + $0x30] sm:$0xff]  }
 0x291   : > { %6605 = vmatprep.mubr.msk.bf16.mxu1 %vm2070_vm15, %v6770_v58  ;;  %v4581_v3 = vrot.slane %v7973_v25, 5  ;;  %v6136_v49 = vrot.slane %v4031_v61, 9  ;;  %6591 = vmatprep.mubr.msk.bf16.mxu0 %vm2070_vm15, %v6140_v2  ;;  %v8010_v9 = vsel %vm7331_vm14, %v6173_v12, %v4577_v24  ;;  %v4075_v56 = vrot.slane %v7931_v0, 5  ;;  %v4550_v57 = vld [vmem:[#allocation3 + $0x40] sm:$0xe] }
 0x292   : > { %6620 = vmatpush3.bf16.msra.mxu1 %v7872_v8  ;;  %v6137_v10 = vrot.slane %v4032_v22, 9  ;;  %v4079_v1 = vrot.slane %v7897_v37, 5  ;;  %v6175_v17 = vrot.slane %v4547_v44, 9  ;;  %v6176_v15 = vrot.slane %v4548_v28, 9  ;;  %v6771_v8 = vld [vmem:[#allocation3 + $0x38] ss:$8 sps:$4 sm:$0xff]  }
 0x293   : > { %v8016_v53 = vsel %vm7331_vm14, %v6174_v52, %v4581_v3  ;;  %v4589_v55 = vrot.slane %v7989_v29, 5  ;;  %6639 = vmatprep.subr.bf16.mxu1 %v7982_v48  ;;  %v8022_v36 = vsel %vm7331_vm14, %v6136_v49, %v4075_v56  ;;  %v4585_v37 = vrot.slane %v8004_v16, 5  ;;  %v8038_v23 = vld [vmem:[#allocation3 + $0x44] sm:$0x1]  ;;  %v4313_v31 = vld [vmem:[#allocation3 + $0x18] sm:$0xf] }
 0x294   : > { %v8026_v0 = vsel %vm7331_vm14, %v6137_v10, %v4079_v1  ;;  %v4326_v51 = vshrl.u32 %v4309_v54, 16  ;;  %v6142_v18 = vcombine.low %v4068_v32, %v4072_v39  ;;  %v6182_v59 = vcombine.low %v8010_v9, %v8016_v53  ;;  %v4315_v12 = vld [vmem:[#allocation3 + $0x20] sm:$0xf]  ;;  %v4828_v49 = vld [vmem:[#allocation3 + $0x10] sm:$0xf] }
 0x295   : > { %v6143_v14 = vcombine.low %v8022_v36, %v8026_v0  ;;  %v4329_v60 = vshll.u32 %v4309_v54, 16  ;;  %v4590_v35 = vsel %vm7331_vm14, %v6176_v15, %v4589_v55  ;;  %v4335_v26 = vshll.u32 %v7938_v42, 16  ;;  %v8060_v54 = vld [vmem:[#allocation3 + $0x14] sm:$0x1]  ;;  %v4830_v1 = vld [vmem:[#allocation3 + $0x18] sm:$0xf] }
 0x296   : > { %v4328_v58 = vrot.slane %v4326_v51, 4  ;;  %v4340_v63 = vshrl.u32 %v4311_v20, 16  ;;  %v4343_v27 = vshll.u32 %v4311_v20, 16  ;;  %v4349_v40 = vshll.u32 %v7949_v62, 16 }
 0x297   : > { %v4331_v45 = vrot.slane %v4329_v60, 5  ;;  %v6177_v21 = vrot.slane %v4549_v33, 9  ;;  %v4586_v61 = vsel %vm7331_vm14, %v6175_v17, %v4585_v37  ;;  %v4593_v41 = vrot.slane %v8033_v30, 5  ;;  %v8070_v37 = vld [vmem:[#allocation3 + $0x1c] sm:$0x1] }
 0x298   : > { %6606 = vmatmul.mubr.msk.bf16.gmra.mxu1 %vm2070_vm15, %v6771_v8  ;;  %v4342_v42 = vrot.slane %v4340_v63, 4  ;;  %v6178_v5 = vrot.slane %v4550_v57, 9  ;;  %6592 = vmatmul.mubr.msk.bf16.vlgmr.msra.gmra.mxu0 %vm2070_vm15, %v6141_v50  ;;  %v6183_v24 = vcombine.low %v4586_v61, %v4590_v35  ;;  %v4345_v2 = vrot.slane %v4343_v27, 5  ;;  %v4317_v35 = vld [vmem:[#allocation3 + $0x28] sm:$0xf] }
 0x299   : > { %6621 = vmatprep.mubr.msk.bf16.mxu1 %vm2070_vm15, %v6181_v38  ;;  %v4332_v22 = vor.u32 %v4331_v45, %v4328_v58  ;;  %v4597_v62 = vrot.slane %v8038_v23, 5  ;;  %6610 = vmatpush3.bf16.msra.mxu0 %v7928_v34  ;;  %v4337_v52 = vrot.slane %v4335_v26, 5  ;;  %v4351_v44 = vrot.slane %v4349_v40, 5 }
 0x29a   : > { %6595 = vmatprep.mubr.msk.bf16.mxu0 %vm2070_vm15, %v6142_v18  ;;  %v4354_v28 = vshrl.u32 %v4313_v31, 16  ;;  %v4357_v32 = vshll.u32 %v4313_v31, 16  ;;  %v4346_v3 = vor.u32 %v4345_v2, %v4342_v42  ;;  %v8057_v50 = vsel %vm7331_vm14, %v6177_v21, %v4593_v41  ;;  %6629 = vmatprep.subr.bf16.mxu0 %v8043_v43  ;;  %v4319_v31 = vld [vmem:[#allocation3 + $0x30] sm:$0xf] }
 0x29b   : > { %v4333_v39 = vrot.slane %v4332_v22, 4  ;;  %v4368_v38 = vshrl.u32 %v4315_v12, 16  ;;  %v8064_v34 = vsel %vm7331_vm14, %v6178_v5, %v4597_v62  ;;  %v4363_v10 = vshll.u32 %v7962_v47, 16 }
 0x29c   : > { %v4356_v9 = vrot.slane %v4354_v28, 4  ;;  %v4359_v56 = vrot.slane %v4357_v32, 5  ;;  %v4347_v17 = vrot.slane %v4346_v3, 4  ;;  %v4371_v55 = vshll.u32 %v4315_v12, 16  ;;  %v4832_v12 = vld [vmem:[#allocation3 + $0x20] sm:$0xf] }
 0x29d   : > { %v4338_v53 = vsel %vm6997_vm4, %v4333_v39, %v4337_v52  ;;  %v4370_v15 = vrot.slane %v4368_v38, 4  ;;  %v4377_v8 = vshll.u32 %v7973_v25, 16  ;;  %v4845_v51 = vshrl.u32 %v4828_v49, 16  ;;  %v8088_v52 = vld [vmem:[#allocation3 + $0x24] sm:$0x1] }
 0x29e   : > { %v4360_v20 = vor.u32 %v4359_v56, %v4356_v9  ;;  %v4848_v33 = vshll.u32 %v4828_v49, 16  ;;  %v4352_v18 = vsel %vm6997_vm4, %v4347_v17, %v4351_v44  ;;  %v4373_v60 = vrot.slane %v4371_v55, 5  ;;  %v4834_v49 = vld [vmem:[#allocation3 + $0x28] sm:$0xf]  ;;  %v4321_v17 = vld [vmem:[#allocation3 + $0x38] sm:$0xf] }
 0x29f   : > { %v4854_v47 = vshll.u32 %v8060_v54, 16  ;;  %v4859_v57 = vshrl.u32 %v4830_v1, 16  ;;  %v6162_v58 = vcombine.low %v4338_v53, %v4352_v18  ;;  %v6184_v26 = vcombine.low %v8057_v50, %v8064_v34  ;;  %v8096_v34 = vld [vmem:[%s8519_s5 + $0x40] sm:$0xff]  }
 0x2a0   : > { %6622 = vmatmul.mubr.msk.bf16.vlgmr.msra.gmra.mxu1 %vm2070_vm15, %v6182_v59  ;;  %v4361_v63 = vrot.slane %v4360_v20, 4  ;;  %v4847_v25 = vrot.slane %v4845_v51, 4  ;;  %6596 = vmatmul.mubr.msk.bf16.gmra.mxu0 %vm2070_vm15, %v6143_v14  ;;  %v4365_v45 = vrot.slane %v4363_v10, 5  ;;  %v4374_v27 = vor.u32 %v4373_v60, %v4370_v15 }
 0x2a1   : > { %6625 = vmatprep.mubr.msk.bf16.mxu1 %vm2070_vm15, %v6183_v24  ;;  %v4379_v40 = vrot.slane %v4377_v8, 5  ;;  %v4850_v21 = vrot.slane %v4848_v33, 5  ;;  %6611 = vmatprep.mubr.msk.bf16.mxu0 %vm2070_vm15, %v6162_v58  ;;  %v4861_v59 = vrot.slane %v4859_v57, 4  ;;  %v4862_v61 = vshll.u32 %v4830_v1, 16  ;;  %v8099_v1 = vld [vmem:[#allocation3 + $0x2c] sm:$0x1] }
 0x2a2   : > { %v4868_v42 = vshll.u32 %v8070_v37, 16  ;;  %v4382_v41 = vshrl.u32 %v4317_v35, 16  ;;  %6640 = vmatpush3.bf16.msra.mxu1 %v7982_v48  ;;  %v4375_v5 = vrot.slane %v4374_v27, 4  ;;  %v4856_v0 = vrot.slane %v4854_v47, 5 }
 0x2a3   : > { %v4851_v36 = vor.u32 %v4850_v21, %v4847_v25  ;;  %v4385_v14 = vshll.u32 %v4317_v35, 16  ;;  %v4366_v24 = vsel %vm6997_vm4, %v4361_v63, %v4365_v45  ;;  %v4864_v22 = vrot.slane %v4862_v61, 5 }
 0x2a4   : > { %v4384_v2 = vrot.slane %v4382_v41, 4  ;;  %v4396_v62 = vshrl.u32 %v4319_v31, 16  ;;  %v4380_v44 = vsel %vm6997_vm4, %v4375_v5, %v4379_v40  ;;  %v4391_v48 = vshll.u32 %v8004_v16, 16 }
 0x2a5   : > { %v4852_v28 = vrot.slane %v4851_v36, 4  ;;  %v4387_v32 = vrot.slane %v4385_v14, 5  ;;  %v4865_v39 = vor.u32 %v4864_v22, %v4861_v59  ;;  %v4870_v3 = vrot.slane %v4868_v42, 5 }
 0x2a6   : > { %v4398_v50 = vrot.slane %v4396_v62, 4  ;;  %v4399_v38 = vshll.u32 %v4319_v31, 16  ;;  %v6163_v9 = vcombine.low %v4366_v24, %v4380_v44  ;;  %v4405_v10 = vshll.u32 %v7989_v29, 16  ;;  %v4323_v29 = vld [vmem:[#allocation3 + $0x40] sm:$0xf] }
 0x2a7   : > { %v4388_v56 = vor.u32 %v4387_v32, %v4384_v2  ;;  %v4873_v53 = vshrl.u32 %v4832_v12, 16  ;;  %v4857_v16 = vsel %vm6997_vm4, %v4852_v28, %v4856_v0  ;;  %v4866_v15 = vrot.slane %v4865_v39, 4  ;;  %v4836_v0 = vld [vmem:[#allocation3 + $0x30] sm:$0xf]  ;;  %v4838_v2 = vld [vmem:[#allocation3 + $0x38] sm:$0xf] }
 0x2a8   : > { %6626 = vmatmul.mubr.msk.bf16.gmra.mxu1 %vm2070_vm15, %v6184_v26  ;;  %v4401_v55 = vrot.slane %v4399_v38, 5  ;;  %v4876_v20 = vshll.u32 %v4832_v12, 16  ;;  %6612 = vmatmul.mubr.msk.bf16.vlgmr.msra.gmra.mxu0 %vm2070_vm15, %v6163_v9  ;;  %v4393_v8 = vrot.slane %v4391_v48, 5  ;;  %v4882_v33 = vshll.u32 %v8088_v52, 16  ;;  %v8126_v38 = vld [vmem:[#allocation3 + $0x34] sm:$0x1] }
 0x2a9   : > { %v4875_v51 = vrot.slane %v4873_v53, 4  ;;  %v4887_v18 = vshrl.u32 %v4834_v49, 16  ;;  %6630 = vmatpush3.bf16.msra.mxu0 %v8043_v43  ;;  %v4871_v60 = vsel %vm6997_vm4, %v4866_v15, %v4870_v3  ;;  %v4389_v47 = vrot.slane %v4388_v56, 4  ;;  %v4840_v53 = vld [vmem:[#allocation3 + $0x40] sm:$0xf] }
 0x2aa   : > { %v4402_v57 = vor.u32 %v4401_v55, %v4398_v50  ;;  %v4878_v35 = vrot.slane %v4876_v20, 5  ;;  %v6203_v58 = vcombine.low %v4857_v16, %v4871_v60  ;;  %v4407_v26 = vrot.slane %v4405_v10, 5  ;;  %6649 = vmatprep.subr.bf16.mxu0 %v8096_v34  ;;  %v8130_v55 = vld [vmem:[#allocation3 + $0x3c] sm:$0x1] }
 0x2ab   : > { %v4889_v63 = vrot.slane %v4887_v18, 4  ;;  %v4890_v25 = vshll.u32 %v4834_v49, 16  ;;  %v4896_v40 = vshll.u32 %v8099_v1, 16  ;;  %v4410_v21 = vshrl.u32 %v4321_v17, 16  ;;  %v8135_v18 = vld [vmem:[#allocation3 + $0x44] sm:$0x1] }
 0x2ac   : > { %v4403_v45 = vrot.slane %v4402_v57, 4  ;;  %v4879_v27 = vor.u32 %v4878_v35, %v4875_v51  ;;  %6641 = vmatprep.mubr.msk.bf16.mxu1 %vm2070_vm15, %v6203_v58  ;;  %v4413_v31 = vshll.u32 %v4321_v17, 16  ;;  %v4424_v59 = vshrl.u32 %v4323_v29, 16 }
 0x2ad   : > { %v4892_v43 = vrot.slane %v4890_v25, 5  ;;  %v8115_v61 = vrot.slane %v4949_v11, 4  ;;  %v4394_v42 = vsel %vm6997_vm4, %v4389_v47, %v4393_v8  ;;  %v4412_v36 = vrot.slane %v4410_v21, 4 }
 0x2ae   : > { %v4408_v41 = vsel %vm6997_vm4, %v4403_v45, %v4407_v26  ;;  %v4880_v5 = vrot.slane %v4879_v27, 4  ;;  %v4884_v12 = vrot.slane %v4882_v33, 5  ;;  %v4415_v22 = vrot.slane %v4413_v31, 5  ;;  %v6776_v31 = vld [vmem:[#allocation3 + $0x10] ss:$8 sps:$4 sm:$0xff]  }
 0x2af   : > { %v6164_v14 = vcombine.low %v4394_v42, %v4408_v41  ;;  %v4893_v24 = vor.u32 %v4892_v43, %v4889_v63  ;;  %v4898_v62 = vrot.slane %v4896_v40, 5  ;;  %v4419_v44 = vshll.u32 %v8033_v30, 16 }
 0x2b0   : > { %v4426_v6 = vrot.slane %v4424_v59, 4  ;;  %v4427_v4 = vshll.u32 %v4323_v29, 16  ;;  %v4416_v28 = vor.u32 %v4415_v22, %v4412_v36  ;;  %v4901_v32 = vshrl.u32 %v4836_v0, 16 }
 0x2b1   : > { %6615 = vmatprep.mubr.msk.bf16.mxu0 %vm2070_vm15, %v6164_v14  ;;  %v4894_v11 = vrot.slane %v4893_v24, 4  ;;  %v4904_v48 = vshll.u32 %v4836_v0, 16  ;;  %v4885_v39 = vsel %vm6997_vm4, %v4880_v5, %v4884_v12  ;;  %v4433_v50 = vshll.u32 %v8038_v23, 16 }
 0x2b2   : > { %v4429_v3 = vrot.slane %v4427_v4, 5  ;;  %v4915_v49 = vshrl.u32 %v4838_v2, 16  ;;  %v4417_v9 = vrot.slane %v4416_v28, 4  ;;  %v4903_v56 = vrot.slane %v4901_v32, 4  ;;  %v5063_v4 = vld [vmem:[#allocation3 + $0x18] sm:$0xe] }
 0x2b3   : > { %v4899_v30 = vsel %vm6997_vm4, %v4894_v11, %v4898_v62  ;;  %v4906_v10 = vrot.slane %v4904_v48, 5  ;;  %v4421_v16 = vrot.slane %v4419_v44, 5  ;;  %v4954_v20 = vrot.slane %v4952_v7, 5  ;;  %v5062_v62 = vld [vmem:[#allocation3 + $0x10] sm:$0xe] }
 0x2b4   : > { %v6204_v17 = vcombine.low %v4885_v39, %v4899_v30  ;;  %v4430_v15 = vor.u32 %v4429_v3, %v4426_v6  ;;  %v4910_v23 = vshll.u32 %v8126_v38, 16  ;;  %v4917_v51 = vrot.slane %v4915_v49, 4  ;;  %v6778_v44 = vld [vmem:[#allocation3 + $0x20] ss:$8 sps:$4 sm:$0xff]   ;;  %v6779_v6 = vld [vmem:[#allocation3 + $0x30] ss:$8 sps:$4 sm:$0xff]  }
 0x2b5   : > { %v4907_v8 = vor.u32 %v4906_v10, %v4903_v56  ;;  %v4918_v33 = vshll.u32 %v4838_v2, 16  ;;  %v4435_v60 = vrot.slane %v4433_v50, 5  ;;  %v4929_v47 = vshrl.u32 %v4840_v53, 16  ;;  %v5065_v48 = vld [vmem:[#allocation3 + $0x28] sm:$0xe] }
 0x2b6   : > { %6642 = vmatmul.mubr.msk.bf16.vlgmr.msra.gmra.mxu1 %vm2070_vm15, %v6204_v17  ;;  %v4431_v29 = vrot.slane %v4430_v15, 4  ;;  %v4932_v57 = vshll.u32 %v4840_v53, 16  ;;  %v4422_v35 = vsel %vm6997_vm4, %v4417_v9, %v4421_v16  ;;  %v4924_v7 = vshll.u32 %v8130_v55, 16  ;;  %v5066_v39 = vld [vmem:[#allocation3 + $0x30] sm:$0xe] }
 0x2b7   : > { %v4908_v58 = vrot.slane %v4907_v8, 4  ;;  %v4920_v26 = vrot.slane %v4918_v33, 5  ;;  %v4931_v25 = vrot.slane %v4929_v47, 4  ;;  %v4938_v27 = vshll.u32 %v8135_v18, 16  ;;  %v6780_v3 = vld [vmem:[#allocation3 + $0x40] ss:$8 sps:$4 sm:$0xff]  }
 0x2b8   : > { %v4436_v63 = vsel %vm6997_vm4, %v4431_v29, %v4435_v60  ;;  %v4934_v45 = vrot.slane %v4932_v57, 5  ;;  %v4912_v21 = vrot.slane %v4910_v23, 5  ;;  %v4926_v5 = vrot.slane %v4924_v7, 5  ;;  %v5064_v49 = vld [vmem:[#allocation3 + $0x20] sm:$0xe] }
 0x2b9   : > { %v6165_v40 = vcombine.low %v4422_v35, %v4436_v63  ;;  %v4921_v43 = vor.u32 %v4920_v26, %v4917_v51  ;;  %v4940_v0 = vrot.slane %v4938_v27, 5  ;;  %v4955_v14 = vsel %vm6997_vm4, %v8115_v61, %v4954_v20  ;;  %v5069_v20 = vld [vmem:[#allocation3 + $0x48] sm:$0xe]  ;;  %v5068_v8 = vld [vmem:[#allocation3 + $0x40] sm:$0xe] }
 0x2ba   : > { %v4935_v59 = vor.u32 %v4934_v45, %v4931_v25  ;;  %v4913_v42 = vsel %vm6997_vm4, %v4908_v58, %v4912_v21  ;;  %v6212_v11 = vrot.slane %v5062_v62, 9  ;;  %v5088_v61 = vrot.slane %v8060_v54, 5 }
 0x2bb   : > { %6616 = vmatmul.mubr.msk.bf16.gmra.mxu0 %vm2070_vm15, %v6165_v40  ;;  %v4922_v41 = vrot.slane %v4921_v43, 4  ;;  %v6213_v19 = vrot.slane %v5063_v4, 9  ;;  %v5092_v28 = vrot.slane %v8070_v37, 5  ;;  %v6215_v9 = vrot.slane %v5065_v48, 9 }
 0x2bc   : > { %6631 = vmatprep.mubr.msk.bf16.mxu0 %vm2070_vm15, %v6776_v31  ;;  %v4936_v36 = vrot.slane %v4935_v59, 4  ;;  %v5089_v32 = vsel %vm7331_vm14, %v6212_v11, %v5088_v61  ;;  %v5100_v54 = vrot.slane %v8099_v1, 5  ;;  %v6216_v56 = vrot.slane %v5066_v39, 9 }
 0x2bd   : > { %v4927_v12 = vsel %vm6997_vm4, %v4922_v41, %v4926_v5  ;;  %v5093_v50 = vsel %vm7331_vm14, %v6213_v19, %v5092_v28  ;;  %v5104_v37 = vrot.slane %v8126_v38, 5  ;;  %v6214_v10 = vrot.slane %v5064_v49, 9 }
 0x2be   : > { %v6205_v24 = vcombine.low %v4913_v42, %v4927_v12  ;;  %v4941_v22 = vsel %vm6997_vm4, %v4936_v36, %v4940_v0  ;;  %v6222_v30 = vcombine.low %v5089_v32, %v5093_v50  ;;  %v5096_v53 = vrot.slane %v8088_v52, 5 }
 0x2bf   : > { %v6206_v2 = vcombine.low %v4941_v22, %v4955_v14  ;;  %v5108_v16 = vrot.slane %v8130_v55, 5  ;;  %v5101_v15 = vsel %vm7331_vm14, %v6215_v9, %v5100_v54  ;;  %v5105_v1 = vsel %vm7331_vm14, %v6216_v56, %v5104_v37 }
 0x2c0   : > { %6645 = vmatprep.mubr.msk.bf16.mxu1 %vm2070_vm15, %v6205_v24  ;;  %v5097_v23 = vsel %vm7331_vm14, %v6214_v10, %v5096_v53  ;;  %v6219_v33 = vrot.slane %v5069_v20, 9  ;;  %v6218_v29 = vrot.slane %v5068_v8, 9  ;;  %v5112_v55 = vrot.slane %v8135_v18, 5 }
 0x2c1   : > { %6646 = vmatmul.mubr.msk.bf16.gmra.mxu1 %vm2070_vm15, %v6206_v2  ;;  %v6223_v38 = vcombine.low %v5097_v23, %v5101_v15  ;;  %v5116_v60 = vrot.slane %v7841_v46, 5  ;;  %vm5717_vm4 = vcmask 1043459  }
 0x2c2   : > { %v5113_v47 = vsel %vm7331_vm14, %v6218_v29, %v5112_v55 }
 0x2c3   : > { %6632 = vmatmul.mubr.msk.bf16.vlgmr.msra.gmra.mxu0 %vm2070_vm15, %v6778_v44  ;;  %v5117_v57 = vsel %vm7331_vm14, %v6219_v33, %v5116_v60 }
 0x2c4   : > { %6650 = vmatpush3.bf16.msra.mxu0 %v8096_v34  ;;  %6635 = vmatprep.mubr.msk.bf16.mxu0 %vm2070_vm15, %v6779_v6  ;;  %v5067_v34 = vld [vmem:[#allocation3 + $0x38] sm:$0xe]  ;;  %v6225_v35 = vcombine.low %v5113_v47, %v5117_v57 }
 0x2c5   : > { %v6217_v17 = vrot.slane %v5067_v34, 9 }
 0x2c7   : > { %v5109_v51 = vsel %vm7331_vm14, %v6217_v17, %v5108_v16 }
 0x2c8   : > { %v6224_v52 = vcombine.low %v5105_v1, %v5109_v51 }
 0x2cb   : > { %6636 = vmatmul.mubr.msk.bf16.gmra.mxu0 %vm2070_vm15, %v6780_v3 }
 0x2cc   : > { %6651 = vmatprep.mubr.msk.bf16.mxu0 %vm2070_vm15, %v6222_v30 }
 0x2d3   : > { %6652 = vmatmul.mubr.msk.bf16.vlgmr.msra.gmra.mxu0 %vm2070_vm15, %v6223_v38 }
 0x2d4   : > { %6655 = vmatprep.mubr.msk.bf16.mxu0 %vm2070_vm15, %v6224_v52 }
 0x2db   : > { %6656 = vmatmul.mubr.msk.bf16.gmra.mxu0 %vm2070_vm15, %v6225_v35 }
 0x33b   : > { %v6583_v58 = vpop.f32.mrf.mxu1 }
 0x33d   : > { %v3994_v26 = vpop.f32.mrf.mxu1 }
 0x33f   : > { %v6584_v7 = vpop.f32.mrf.mxu1 }
 0x341   : > { %v3997_v63 = vpop.f32.mrf.mxu1 }
 0x348   : > { %v8189_v18 = vpop.f32.mrf.mxu1  ;;  %v6573_v46 = vpop.f32.mrf.mxu0 }
 0x349   : > { %v4003_v37 = vadd.f32 %v6583_v58, %v6573_v46 }
 0x34a   : > { %v4010_v25 = vpop.f32.mrf.mxu1  ;;  %v3891_v45 = vpop.f32.mrf.mxu0 }
 0x34b   : > { %v3995_v53 = vadd.f32 %v3994_v26, %v3891_v45 }
 0x34c   : > { %v8191_v27 = vpop.f32.mrf.mxu1  ;;  %v6574_v40 = vpop.f32.mrf.mxu0 }
 0x34d   : > { %v4006_v1 = vadd.f32 %v6584_v7, %v6574_v40 }
 0x34e   : > { %v8193_v21 = vpop.f32.mrf.mxu1  ;;  %v3894_v43 = vpop.f32.mrf.mxu0 }
 0x34f   : > { %v3998_v55 = vadd.f32 %v3997_v63, %v3894_v43  ;;  %v6844_v63 = vmov 1983009808  }
 0x350   : > { %v6603_v13 = vpop.f32.mrf.mxu1  ;;  %v6577_v31 = vpop.f32.mrf.mxu0  ;;  %v5257_v43 = vunpack.c.l.s4 %v6844_v63 }
 0x351   : > { %v4019_v45 = vadd.f32 %v8189_v18, %v6577_v31 }
 0x352   : > { %v4270_v59 = vpop.f32.mrf.mxu1  ;;  %v3907_v42 = vpop.f32.mrf.mxu0 }
 0x353   : > { %v4011_v7 = vadd.f32 %v4010_v25, %v3907_v42 }
 0x354   : > { %v6578_v41 = vpop.f32.mrf.mxu0  ;;  %v6604_v5 = vpop.f32.mrf.mxu1 }
 0x356   : > { %v3910_v36 = vpop.f32.mrf.mxu0  ;;  %v4273_v14 = vpop.f32.mrf.mxu1 }
 0x358   : > { %v6593_v0 = vpop.f32.mrf.mxu0  ;;  %v8195_v22 = vpop.f32.mrf.mxu1 }
 0x359   : > { %v4181_v17 = vadd.f32 %v6593_v0, %v4003_v37  ;;  %v5259_v0 = vlaneseq }
 0x35a   : > { %v4148_v12 = vpop.f32.mrf.mxu0  ;;  %v8197_v44 = vpop.f32.mrf.mxu1 }
 0x35b   : > { %v4179_v20 = vadd.f32 %v4148_v12, %v3995_v53  ;;  %v4303_v23 = vadd.f32 %v6603_v13, %v4181_v17  ;;  %v4022_v12 = vadd.f32 %v8191_v27, %v6578_v41  ;;  %v5258_v17 = vunpack.c.0.s8 %v5257_v43 }
 0x35c   : > { %v6594_v24 = vpop.f32.mrf.mxu0  ;;  %v8199_v11 = vpop.f32.mrf.mxu1 }
 0x35d   : > { %v4182_v51 = vadd.f32 %v6594_v24, %v4006_v1  ;;  %v4301_v29 = vadd.f32 %v4270_v59, %v4179_v20 }
 0x35e   : > { %v4151_v2 = vpop.f32.mrf.mxu0  ;;  %v8201_v19 = vpop.f32.mrf.mxu1 }
 0x35f   : > { %v4180_v35 = vadd.f32 %v4151_v2, %v3998_v55  ;;  %v4304_v58 = vadd.f32 %v6604_v5, %v4182_v51 }
 0x360   : > { %v6597_v62 = vpop.f32.mrf.mxu0  ;;  %v6623_v32 = vpop.f32.mrf.mxu1 }
 0x361   : > { %v4185_v37 = vadd.f32 %v6597_v62, %v4019_v45  ;;  %v4302_v5 = vadd.f32 %v4273_v14, %v4180_v35  ;;  %v8229_v14 = vld [vmem:[%s8520_s6] ss:$0 sm:$0xff] }
 0x362   : > { %v4164_v6 = vpop.f32.mrf.mxu0  ;;  %v4666_v39 = vpop.f32.mrf.mxu1 }
 0x363   : > { %v4183_v2 = vadd.f32 %v4164_v6, %v4011_v7 }
 0x364   : > { %v6598_v4 = vpop.f32.mrf.mxu0  ;;  %v6624_v50 = vpop.f32.mrf.mxu1 }
 0x366   : > { %v4167_v61 = vpop.f32.mrf.mxu0  ;;  %v8203_v30 = vpop.f32.mrf.mxu1 }
 0x368   : > { %v6613_v28 = vpop.f32.mrf.mxu0  ;;  %v8205_v34 = vpop.f32.mrf.mxu1 }
 0x369   : > { %v4537_v52 = vadd.f32 %v6613_v28, %v4303_v23 }
 0x36a   : > { %v4504_v48 = vpop.f32.mrf.mxu0  ;;  %v8211_v16 = vpop.f32.mrf.mxu1 }
 0x36b   : > { %v4535_v47 = vadd.f32 %v4504_v48, %v4301_v29  ;;  %v4699_v46 = vadd.f32 %v6623_v32, %v4537_v52  ;;  %v4014_v48 = vadd.f32 %v8193_v21, %v3910_v36  ;;  %v4186_v32 = vadd.f32 %v6598_v4, %v4022_v12 }
 0x36c   : > { %v6614_v3 = vpop.f32.mrf.mxu0  ;;  %v8213_v38 = vpop.f32.mrf.mxu1  ;;  %v4305_v21 = vadd.f32 %v8197_v44, %v4183_v2 }
 0x36d   : > { %v4538_v40 = vadd.f32 %v6614_v3, %v4304_v58  ;;  %v4697_v59 = vadd.f32 %v4666_v39, %v4535_v47  ;;  %v4184_v25 = vadd.f32 %v4167_v61, %v4014_v48  ;;  %v5260_v39 = vshrl.u32 %v5259_v0, 7 }
 0x36e   : > { %v4507_v49 = vpop.f32.mrf.mxu0  ;;  %v8215_v57 = vpop.f32.mrf.mxu1  ;;  %v4308_v6 = vadd.f32 %v8199_v11, %v4186_v32 }
 0x36f   : > { %v4536_v31 = vadd.f32 %v4507_v49, %v4302_v5  ;;  %v4700_v42 = vadd.f32 %v6624_v50, %v4538_v40  ;;  %v4306_v20 = vadd.f32 %v8201_v19, %v4184_v25  ;;  %v8236_v51 = vsub.s32 %v5258_v17, %v5260_v39 }
 0x371   : > { %v4698_v1 = vadd.f32 %v8203_v30, %v4536_v31 }
 0x376   : > { %v6643_v24 = vpop.f32.mrf.mxu1 }
 0x378   : > { %v5023_v27 = vpop.f32.mrf.mxu1 }
 0x37b   : > { %v6617_v9 = vpop.f32.mrf.mxu0 }
 0x37d   : > { %v4520_v54 = vpop.f32.mrf.mxu0 }
 0x37e   : > { %v4539_v49 = vadd.f32 %v4520_v54, %v4305_v21 }
 0x37f   : > { %v8207_v56 = vpop.f32.mrf.mxu0 }
 0x380   : > { %v4542_v44 = vadd.f32 %v8207_v56, %v4308_v6  ;;  %v4701_v30 = vadd.f32 %v8211_v16, %v4539_v49 }
 0x381   : > { %v8209_v10 = vpop.f32.mrf.mxu0 }
 0x382   : > { %v4540_v52 = vadd.f32 %v8209_v10, %v4306_v20  ;;  %v4704_v35 = vadd.f32 %v8213_v38, %v4542_v44 }
 0x383   : > { %v6633_v15 = vpop.f32.mrf.mxu0 }
 0x384   : > { %v4822_v28 = vadd.f32 %v6633_v15, %v4699_v46  ;;  %v4307_v15 = vadd.f32 %v8195_v22, %v4185_v37  ;;  %v4702_v40 = vadd.f32 %v8215_v57, %v4540_v52 }
 0x385   : > { %v4789_v8 = vpop.f32.mrf.mxu0 }
 0x386   : > { %v4820_v18 = vadd.f32 %v4789_v8, %v4697_v59  ;;  %v5056_v41 = vadd.f32 %v6643_v24, %v4822_v28  ;;  %v4541_v50 = vadd.f32 %v6617_v9, %v4307_v15  ;;  %v6644_v8 = vpop.f32.mrf.mxu1 }
 0x387   : > { %v6634_v33 = vpop.f32.mrf.mxu0 }
 0x388   : > { %v4823_v36 = vadd.f32 %v6634_v33, %v4700_v42  ;;  %v5054_v61 = vadd.f32 %v5023_v27, %v4820_v18  ;;  %v4703_v19 = vadd.f32 %v8205_v34, %v4541_v50  ;;  %v5026_v56 = vpop.f32.mrf.mxu1 }
 0x389   : > { %v4792_v60 = vpop.f32.mrf.mxu0 }
 0x38a   : > { %v4821_v11 = vadd.f32 %v4792_v60, %v4698_v1  ;;  %v5057_v29 = vadd.f32 %v6644_v8, %v4823_v36  ;;  %v6647_v48 = vpop.f32.mrf.mxu1 }
 0x38b   : > { %v6637_v26 = vpop.f32.mrf.mxu0 }
 0x38c   : > { %v8244_v60 = vadd.f32 %v6637_v26, %v4703_v19  ;;  %v5055_v0 = vadd.f32 %v5026_v56, %v4821_v11  ;;  %v5039_v6 = vpop.f32.mrf.mxu1 }
 0x38d   : > { %v4805_v13 = vpop.f32.mrf.mxu0 }
 0x38e   : > { %v8246_v7 = vadd.f32 %v4805_v13, %v4701_v30 }
 0x38f   : > { %v8220_v53 = vpop.f32.mrf.mxu0 }
 0x390   : > { %v4827_v19 = vadd.f32 %v8220_v53, %v4704_v35  ;;  %v8267_v53 = vadd.f32 %v6647_v48, %v8244_v60  ;;  %v8270_v35 = vadd.f32 %v5039_v6, %v8246_v7 }
 0x391   : > { %v8222_v3 = vpop.f32.mrf.mxu0 }
 0x393   : > { %v6653_v62 = vpop.f32.mrf.mxu0 }
 0x394   : > { %v5218_v4 = vadd.f32 %v6653_v62, %v5056_v41 }
 0x395   : > { %v5185_v22 = vpop.f32.mrf.mxu0 }
 0x396   : > { %v5233_v23 = vadd.f32 %v8229_v14, %v5218_v4  ;;  %v5216_v33 = vadd.f32 %v5185_v22, %v5054_v61 }
 0x397   : > { %v6654_v55 = vpop.f32.mrf.mxu0 }
 0x398   : > { %v5241_v9 = vmax.f32 %v5233_v23, 0.0  ;;  %v5231_v54 = vadd.f32 %v8229_v14, %v5216_v33  ;;  %v5219_v47 = vadd.f32 %v6654_v55, %v5057_v29 }
 0x399   : > { %v5188_v10 = vpop.f32.mrf.mxu0 }
 0x39a   : > { %v5289_v58 = vcombine.high %v5241_v9, %v5241_v9  ;;  %v5296_v46 = vrot.slane %v5241_v9, %v8236_v51  ;;  %v5239_v45 = vmax.f32 %v5231_v54, 0.0  ;;  %v5234_v59 = vadd.f32 %v8229_v14, %v5219_v47  ;;  %v6648_v54 = vpop.f32.mrf.mxu1 }
 0x39b   : > { %v5217_v63 = vadd.f32 %v5188_v10, %v5055_v0 }
 0x39c   : > { %v5303_v34 = vrot.slane %v5289_v58, %v8236_v51  ;;  %v5304_v16 = vcombine.high %v5296_v46, %v5296_v46  ;;  %v5480_v12 = vsel %vm5423_vm0, %v5296_v46, -inf  ;;  %v5255_v24 = vcombine.high %v5239_v45, %v5239_v45 }
 0x39d   : > { %v5481_v28 = vrot.slane %v5480_v12, 4  ;;  %v5262_v38 = vrot.slane %v5239_v45, %v8236_v51  ;;  %v5242_v56 = vmax.f32 %v5234_v59, 0.0  ;;  %v4825_v58 = vadd.f32 %v8222_v3, %v4702_v40 }
 0x39e   : > { %v5305_v43 = vcombine.high %v5303_v34, %v5303_v34  ;;  %v5487_v26 = vsel %vm5423_vm0, %v5304_v16, -inf  ;;  %v5494_v13 = vsel %vm5423_vm0, %v5303_v34, -inf  ;;  %v5269_v57 = vrot.slane %v5255_v24, %v8236_v51 }
 0x39f   : > { %v5482_v37 = vmax.f32 %v5480_v12, %v5481_v28  ;;  %v5488_v2 = vrot.slane %v5487_v26, 4  ;;  %v5495_v5 = vrot.slane %v5494_v13, 4  ;;  %v5270_v32 = vcombine.high %v5262_v38, %v5262_v38 }
 0x3a0   : > { %v5501_v18 = vsel %vm5423_vm0, %v5305_v43, -inf  ;;  %v5271_v25 = vcombine.high %v5269_v57, %v5269_v57  ;;  %v5424_v31 = vsel %vm5423_vm0, %v5262_v38, -inf  ;;  %v5438_v42 = vsel %vm5423_vm0, %v5269_v57, -inf  ;;  %v5042_v38 = vpop.f32.mrf.mxu1 }
 0x3a1   : > { %v5483_v27 = vrot.slane %v5482_v37, 2  ;;  %v5489_v41 = vmax.f32 %v5487_v26, %v5488_v2  ;;  %v5496_v17 = vmax.f32 %v5494_v13, %v5495_v5  ;;  %v5502_v39 = vrot.slane %v5501_v18, 4 }
 0x3a2   : > { %v5425_v15 = vrot.slane %v5424_v31, 4  ;;  %v5431_v21 = vsel %vm5423_vm0, %v5270_v32, -inf  ;;  %v5439_v36 = vrot.slane %v5438_v42, 4  ;;  %v5445_v62 = vsel %vm5423_vm0, %v5271_v25, -inf }
 0x3a3   : > { %v5484_v4 = vmax.f32 %v5482_v37, %v5483_v27  ;;  %v5490_v61 = vrot.slane %v5489_v41, 2  ;;  %v5497_v50 = vrot.slane %v5496_v17, 2  ;;  %v5503_v49 = vmax.f32 %v5501_v18, %v5502_v39 }
 0x3a4   : > { %v5426_v20 = vmax.f32 %v5424_v31, %v5425_v15  ;;  %v5432_v1 = vrot.slane %v5431_v21, 4  ;;  %v5440_v22 = vmax.f32 %v5438_v42, %v5439_v36  ;;  %v5446_v8 = vrot.slane %v5445_v62, 4 }
 0x3a5   : > { %v5485_v44 = vrot.slane %v5484_v4, 1  ;;  %v5491_v23 = vmax.f32 %v5489_v41, %v5490_v61  ;;  %v5498_v33 = vmax.f32 %v5496_v17, %v5497_v50  ;;  %v5504_v52 = vrot.slane %v5503_v49, 2 }
 0x3a6   : > { %v5427_v11 = vrot.slane %v5426_v20, 2  ;;  %v5433_v29 = vmax.f32 %v5431_v21, %v5432_v1  ;;  %v5441_v55 = vrot.slane %v5440_v22, 2  ;;  %v5447_v9 = vmax.f32 %v5445_v62, %v5446_v8 }
 0x3a7   : > { %v5492_v30 = vrot.slane %v5491_v23, 1  ;;  %v5505_v47 = vmax.f32 %v5503_v49, %v5504_v52  ;;  %v5486_v46 = vmax.f32 %v5484_v4, %v5485_v44  ;;  %v5499_v45 = vrot.slane %v5498_v33, 1 }
 0x3a8   : > { %v5428_v10 = vmax.f32 %v5426_v20, %v5427_v11  ;;  %v5434_v0 = vrot.slane %v5433_v29, 2  ;;  %v5232_v34 = vadd.f32 %v8229_v14, %v5217_v63  ;;  %v8264_v24 = vmax.f32 %v5440_v22, %v5441_v55 }
 0x3a9   : > { %v5493_v16 = vmax.f32 %v5491_v23, %v5492_v30  ;;  %v5506_v12 = vrot.slane %v5505_v47, 1  ;;  %v5448_v28 = vrot.slane %v5447_v9, 2  ;;  %v5306_v43 = vcombine.high %v5242_v56, %v5242_v56 }
 0x3aa   : > { %v8272_v3 = vadd.f32 %v6648_v54, %v4827_v19  ;;  %v5500_v40 = vmax.f32 %v5498_v33, %v5499_v45  ;;  %v8275_v59 = vsel %vm5648_vm1, %v5486_v46, -inf  ;;  %v5429_v63 = vrot.slane %v5428_v10, 1  ;;  %v6657_v46 = vpop.f32.mrf.mxu0 }
 0x3ab   : > { %v8277_v26 = vadd.f32 %v5042_v38, %v4825_v58  ;;  %v8279_v13 = vmax.f32 %v5433_v29, %v5434_v0  ;;  %v5313_v57 = vrot.slane %v5242_v56, %v8236_v51  ;;  %v5320_v37 = vrot.slane %v5306_v43, %v8236_v51 }
 0x3ac   : > { %v5240_v60 = vmax.f32 %v5232_v34, 0.0  ;;  %v5507_v48 = vmax.f32 %v5505_v47, %v5506_v12  ;;  %v8284_v7 = vsel %vm5648_vm1, %v5493_v16, -inf  ;;  %v5443_v2 = vrot.slane %v8264_v24, 1 }
 0x3ad   : > { %v8287_v5 = vmax.f32 %v5447_v9, %v5448_v28  ;;  %v5321_v32 = vcombine.high %v5313_v57, %v5313_v57  ;;  %v5322_v18 = vcombine.high %v5320_v37, %v5320_v37  ;;  %v5508_v25 = vsel %vm5423_vm0, %v5313_v57, -inf }
 0x3ae   : > { %v5522_v31 = vsel %vm5423_vm0, %v5320_v37, -inf  ;;  %v8292_v42 = vsel %vm5648_vm1, %v5500_v40, -inf  ;;  %v5430_v27 = vmax.f32 %v5428_v10, %v5429_v63  ;;  %v5509_v41 = vrot.slane %v5508_v25, 4 }
 0x3af   : > { %v5523_v17 = vrot.slane %v5522_v31, 4  ;;  %v5515_v39 = vsel %vm5423_vm0, %v5321_v32, -inf  ;;  %v5529_v15 = vsel %vm5423_vm0, %v5322_v18, -inf  ;;  %v5272_v21 = vcombine.high %v5240_v60, %v5240_v60 }
 0x3b0   : > { %v5279_v36 = vrot.slane %v5240_v60, %v8236_v51  ;;  %v5510_v62 = vmax.f32 %v5508_v25, %v5509_v41  ;;  %v5516_v6 = vrot.slane %v5515_v39, 4  ;;  %v5530_v61 = vrot.slane %v5529_v15, 4  ;;  %v5201_v25 = vpop.f32.mrf.mxu0 }
 0x3b1   : > { %v5524_v4 = vmax.f32 %v5522_v31, %v5523_v17  ;;  %v5436_v50 = vrot.slane %v8279_v13, 1  ;;  %v5286_v49 = vrot.slane %v5272_v21, %v8236_v51  ;;  %v8304_v43 = vsel %vm5648_vm1, %v5507_v48, -inf }
 0x3b2   : > { %v5287_v20 = vcombine.high %v5279_v36, %v5279_v36  ;;  %v5452_v1 = vsel %vm5423_vm0, %v5279_v36, -inf  ;;  %v5511_v22 = vrot.slane %v5510_v62, 2  ;;  %v5517_v8 = vmax.f32 %v5515_v39, %v5516_v6 }
 0x3b3   : > { %v5525_v44 = vrot.slane %v5524_v4, 2  ;;  %v5531_v23 = vmax.f32 %v5529_v15, %v5530_v61  ;;  %v5288_v33 = vcombine.high %v5286_v49, %v5286_v49  ;;  %v5453_v52 = vrot.slane %v5452_v1, 4 }
 0x3b4   : > { %v5459_v11 = vsel %vm5423_vm0, %v5287_v20, -inf  ;;  %v5466_v29 = vsel %vm5423_vm0, %v5286_v49, -inf  ;;  %v5512_v55 = vmax.f32 %v5510_v62, %v5511_v22  ;;  %v5518_v9 = vrot.slane %v5517_v8, 2  ;;  %v6658_v49 = vpop.f32.mrf.mxu0 }
 0x3b5   : > { %v5526_v54 = vmax.f32 %v5524_v4, %v5525_v44  ;;  %v5532_v19 = vrot.slane %v5531_v23, 2  ;;  %v5454_v30 = vmax.f32 %v5452_v1, %v5453_v52  ;;  %v5460_v47 = vrot.slane %v5459_v11, 4 }
 0x3b6   : > { %v5467_v56 = vrot.slane %v5466_v29, 4  ;;  %v5473_v58 = vsel %vm5423_vm0, %v5288_v33, -inf  ;;  %v5513_v45 = vrot.slane %v5512_v55, 1  ;;  %v5519_v10 = vmax.f32 %v5517_v8, %v5518_v9 }
 0x3b7   : > { %v5527_v0 = vrot.slane %v5526_v54, 1  ;;  %v5533_v34 = vmax.f32 %v5531_v23, %v5532_v19  ;;  %v5455_v16 = vrot.slane %v5454_v30, 2  ;;  %v5461_v12 = vmax.f32 %v5459_v11, %v5460_v47 }
 0x3b8   : > { %v5468_v28 = vmax.f32 %v5466_v29, %v5467_v56  ;;  %v5474_v38 = vrot.slane %v5473_v58, 4  ;;  %v5444_v40 = vmax.f32 %v8264_v24, %v5443_v2  ;;  %v5450_v63 = vrot.slane %v8287_v5, 1 }
 0x3b9   : > { %v5520_v57 = vrot.slane %v5519_v10, 1  ;;  %v5456_v37 = vmax.f32 %v5454_v30, %v5455_v16  ;;  %v5462_v60 = vrot.slane %v5461_v12, 2  ;;  %v5437_v31 = vmax.f32 %v8279_v13, %v5436_v50 }
 0x3ba   : > { %v5469_v32 = vrot.slane %v5468_v28, 2  ;;  %v5475_v18 = vmax.f32 %v5473_v58, %v5474_v38  ;;  %v5514_v41 = vmax.f32 %v5512_v55, %v5513_v45  ;;  %v5222_v39 = vadd.f32 %v6657_v46, %v8267_v53  ;;  %v5204_v46 = vpop.f32.mrf.mxu0 }
 0x3bb   : > { %v5521_v17 = vmax.f32 %v5519_v10, %v5520_v57  ;;  %v5528_v15 = vmax.f32 %v5526_v54, %v5527_v0  ;;  %v5534_v48 = vrot.slane %v5533_v34, 1  ;;  %v5457_v21 = vrot.slane %v5456_v37, 1 }
 0x3bc   : > { %v5463_v36 = vmax.f32 %v5461_v12, %v5462_v60  ;;  %v5451_v24 = vmax.f32 %v8287_v5, %v5450_v63  ;;  %v8312_v2 = vsel %vm5648_vm1, %v5430_v27, -inf  ;;  %v5470_v62 = vmax.f32 %v5468_v28, %v5469_v32 }
 0x3bd   : > { %v5476_v6 = vrot.slane %v5475_v18, 2  ;;  %v8315_v4 = vsel %vm5648_vm1, %v5444_v40, -inf  ;;  %v5665_v13 = vsel %vm5648_vm1, %v5521_v17, -inf  ;;  %v5458_v61 = vmax.f32 %v5456_v37, %v5457_v21 }
 0x3be   : > { %v5464_v50 = vrot.slane %v5463_v36, 1  ;;  %v5471_v53 = vrot.slane %v5470_v62, 1  ;;  %v5237_v1 = vadd.f32 %v8229_v14, %v5222_v39  ;;  %v5220_v22 = vadd.f32 %v5201_v25, %v8270_v35 }
 0x3bf   : > { %v5477_v20 = vmax.f32 %v5475_v18, %v5476_v6  ;;  %v5535_v5 = vmax.f32 %v5533_v34, %v5534_v48  ;;  %v5662_v27 = vsel %vm5648_vm1, %v5514_v41, -inf  ;;  %v8322_v8 = vsel %vm5648_vm1, %v5528_v15, -inf }
 0x3c0   : > { %v5465_v44 = vmax.f32 %v5463_v36, %v5464_v50  ;;  %v8325_v23 = vsel %vm5648_vm1, %v5437_v31, -inf  ;;  %v5666_v33 = vmax.f32 %v8284_v7, %v5665_v13  ;;  %v5223_v11 = vadd.f32 %v6658_v49, %v8272_v3 }
 0x3c1   : > { %v5478_v52 = vrot.slane %v5477_v20, 1  ;;  %v5472_v29 = vmax.f32 %v5470_v62, %v5471_v53  ;;  %v8330_v55 = vsel %vm5648_vm1, %v5458_v61, -inf  ;;  %v5245_v35 = vmax.f32 %v5237_v1, 0.0 }
 0x3c2   : > { %v5235_v9 = vadd.f32 %v8229_v14, %v5220_v22  ;;  %v8334_v54 = vsel %vm5648_vm1, %v5451_v24, -inf  ;;  %v5663_v19 = vmax.f32 %v8275_v59, %v5662_v27  ;;  %v5669_v30 = vmax.f32 %v8292_v42, %v8322_v8 }
 0x3c3   : > { %v8340_v7 = vsel %vm5648_vm1, %v5465_v44, -inf  ;;  %v8343_v3 = vsel %vm5648_vm1, %v5535_v5, -inf  ;;  %v5357_v47 = vcombine.high %v5245_v35, %v5245_v35  ;;  %v5364_v56 = vrot.slane %v5245_v35, %v8236_v51 }
 0x3c4   : > { %v5243_v58 = vmax.f32 %v5235_v9, 0.0  ;;  %v8347_v45 = vsel %vm5713_vm2, %v5666_v33, %v5663_v19  ;;  %v5479_v10 = vmax.f32 %v5477_v20, %v5478_v52  ;;  %v5651_v59 = vmax.f32 %v8312_v2, %v8330_v55 }
 0x3c5   : > { %v5238_v0 = vadd.f32 %v8229_v14, %v5223_v11  ;;  %v5654_v34 = vmax.f32 %v8325_v23, %v8340_v7  ;;  %v8355_v16 = vsel %vm5648_vm1, %v5472_v29, -inf  ;;  %v5371_v12 = vrot.slane %v5357_v47, %v8236_v51 }
 0x3c6   : > { %v5372_v28 = vcombine.high %v5364_v56, %v5364_v56  ;;  %v5592_v38 = vsel %vm5423_vm0, %v5364_v56, -inf  ;;  %v5323_v40 = vcombine.high %v5243_v58, %v5243_v58  ;;  %v5330_v63 = vrot.slane %v5243_v58, %v8236_v51 }
 0x3c7   : > { %v5221_v57 = vadd.f32 %v5204_v46, %v8277_v26  ;;  %v5373_v37 = vcombine.high %v5371_v12, %v5371_v12  ;;  %v5593_v60 = vrot.slane %v5592_v38, 4  ;;  %v5606_v18 = vsel %vm5423_vm0, %v5371_v12, -inf }
 0x3c8   : > { %v5599_v32 = vsel %vm5423_vm0, %v5372_v28, -inf  ;;  %v5607_v31 = vrot.slane %v5606_v18, 4  ;;  %v5337_v41 = vrot.slane %v5323_v40, %v8236_v51  ;;  %v5338_v17 = vcombine.high %v5330_v63, %v5330_v63 }
 0x3c9   : > { %v5600_v25 = vrot.slane %v5599_v32, 4  ;;  %v5594_v39 = vmax.f32 %v5592_v38, %v5593_v60  ;;  %v5613_v15 = vsel %vm5423_vm0, %v5373_v37, -inf  ;;  %v5536_v48 = vsel %vm5423_vm0, %v5330_v63, -inf }
 0x3ca   : > { %v5246_v21 = vmax.f32 %v5238_v0, 0.0  ;;  %v5608_v26 = vmax.f32 %v5606_v18, %v5607_v31  ;;  %v5614_v24 = vrot.slane %v5613_v15, 4  ;;  %v5339_v2 = vcombine.high %v5337_v41, %v5337_v41 }
 0x3cb   : > { %v5601_v36 = vmax.f32 %v5599_v32, %v5600_v25  ;;  %v5595_v62 = vrot.slane %v5594_v39, 2  ;;  %v5537_v6 = vrot.slane %v5536_v48, 4  ;;  %v5543_v13 = vsel %vm5423_vm0, %v5338_v17, -inf }
 0x3cc   : > { %v5550_v61 = vsel %vm5423_vm0, %v5337_v41, -inf  ;;  %v5609_v49 = vrot.slane %v5608_v26, 2  ;;  %v5615_v53 = vmax.f32 %v5613_v15, %v5614_v24  ;;  %v5544_v20 = vrot.slane %v5543_v13, 4 }
 0x3cd   : > { %v5602_v50 = vrot.slane %v5601_v36, 2  ;;  %v5596_v1 = vmax.f32 %v5594_v39, %v5595_v62  ;;  %v5538_v22 = vmax.f32 %v5536_v48, %v5537_v6  ;;  %v5551_v5 = vrot.slane %v5550_v61, 4 }
 0x3ce   : > { %v5557_v27 = vsel %vm5423_vm0, %v5339_v2, -inf  ;;  %v5610_v23 = vmax.f32 %v5608_v26, %v5609_v49  ;;  %v5616_v33 = vrot.slane %v5615_v53, 2  ;;  %v5545_v52 = vmax.f32 %v5543_v13, %v5544_v20 }
 0x3cf   : > { %v5603_v44 = vmax.f32 %v5601_v36, %v5602_v50  ;;  %v5597_v11 = vrot.slane %v5596_v1, 1  ;;  %v5539_v29 = vrot.slane %v5538_v22, 2  ;;  %v5552_v55 = vmax.f32 %v5550_v61, %v5551_v5 }
 0x3d0   : > { %v5558_v35 = vrot.slane %v5557_v27, 4  ;;  %v5657_v9 = vmax.f32 %v8315_v4, %v8355_v16  ;;  %v5611_v7 = vrot.slane %v5610_v23, 1  ;;  %v5617_v47 = vmax.f32 %v5615_v53, %v5616_v33 }
 0x3d1   : > { %v5604_v19 = vrot.slane %v5603_v44, 1  ;;  %v5659_v56 = vsel %vm5648_vm1, %v5479_v10, -inf  ;;  %v5540_v58 = vmax.f32 %v5538_v22, %v5539_v29  ;;  %v5546_v46 = vrot.slane %v5545_v52, 2 }
 0x3d2   : > { %v5374_v0 = vcombine.high %v5246_v21, %v5246_v21  ;;  %v5714_v12 = vsel %vm5713_vm2, %v5654_v34, %v5651_v59  ;;  %v5598_v28 = vmax.f32 %v5596_v1, %v5597_v11  ;;  %v5553_v38 = vrot.slane %v5552_v55, 2 }
 0x3d3   : > { %v5381_v40 = vrot.slane %v5246_v21, %v8236_v51  ;;  %v5672_v4 = vmax.f32 %v8304_v43, %v8343_v3  ;;  %v5605_v16 = vmax.f32 %v5603_v44, %v5604_v19  ;;  %v5618_v63 = vrot.slane %v5617_v47, 1 }
 0x3d4   : > { %v5559_v37 = vmax.f32 %v5557_v27, %v5558_v35  ;;  %v5720_v10 = vsel %vm5715_vm3, %v5669_v30, %v8347_v45  ;;  %v5660_v60 = vmax.f32 %v8334_v54, %v5659_v56  ;;  %v5612_v59 = vmax.f32 %v5610_v23, %v5611_v7 }
 0x3d5   : > { %v5236_v34 = vadd.f32 %v8229_v14, %v5221_v57  ;;  %v5716_v32 = vsel %vm5715_vm3, %v5657_v9, %v5714_v12  ;;  %v5541_v18 = vrot.slane %v5540_v58, 1  ;;  %v8385_v43 = vmax.f32 %v5545_v52, %v5546_v46 }
 0x3d6   : > { %v5388_v3 = vrot.slane %v5374_v0, %v8236_v51  ;;  %v8389_v25 = vsel %vm5648_vm1, %v5598_v28, -inf  ;;  %v8391_v42 = vmax.f32 %v5552_v55, %v5553_v38  ;;  %v5389_v8 = vcombine.high %v5381_v40, %v5381_v40 }
 0x3d7   : > { %v5620_v54 = vsel %vm5423_vm0, %v5381_v40, -inf  ;;  %v8394_v30 = vmax.f32 %v5617_v47, %v5618_v63  ;;  %v8397_v14 = vsel %vm5648_vm1, %v5605_v16, -inf  ;;  %v5560_v45 = vrot.slane %v5559_v37, 2 }
 0x3d8   : > { %v5390_v57 = vcombine.high %v5388_v3, %v5388_v3  ;;  %v8402_v31 = vsel %vm5648_vm1, %v5612_v59, -inf  ;;  %v5621_v41 = vrot.slane %v5620_v54, 4  ;;  %v5627_v17 = vsel %vm5423_vm0, %v5389_v8, -inf }
 0x3d9   : > { %v5634_v39 = vsel %vm5423_vm0, %v5388_v3, -inf  ;;  %v8406_v15 = vmax.f32 %v5540_v58, %v5541_v18  ;;  %v5548_v48 = vrot.slane %v8385_v43, 1  ;;  %v5628_v21 = vrot.slane %v5627_v17, 4 }
 0x3da   : > { %v5635_v36 = vrot.slane %v5634_v39, 4  ;;  %v5622_v26 = vmax.f32 %v5620_v54, %v5621_v41  ;;  %v5641_v24 = vsel %vm5423_vm0, %v5390_v57, -inf  ;;  %v5244_v2 = vmax.f32 %v5236_v34, 0.0 }
 0x3db   : > { %v5718_v62 = vsel %vm5717_vm4, %v5660_v60, %v5716_v32  ;;  %v5555_v6 = vrot.slane %v8391_v42, 1  ;;  %v5629_v13 = vmax.f32 %v5627_v17, %v5628_v21  ;;  %v5642_v50 = vrot.slane %v5641_v24, 4 }
 0x3dc   : > { %v5636_v61 = vmax.f32 %v5634_v39, %v5635_v36  ;;  %5733 = vst.msk [vmem:[%s8412_s29] sm:$0xf] %vm5732_vm5, %v5718_v62  ;;  %v5623_v49 = vrot.slane %v5622_v26, 2  ;;  %v5340_v53 = vcombine.high %v5244_v2, %v5244_v2  ;;  %v5347_v20 = vrot.slane %v5244_v2, %v8236_v51 }
 0x3dd   : > { %v5721_v1 = vsel %vm5717_vm4, %v5672_v4, %v5720_v10  ;;  %v8418_v22 = vmax.f32 %v5559_v37, %v5560_v45  ;;  %v5630_v5 = vrot.slane %v5629_v13, 2  ;;  %v5643_v44 = vmax.f32 %v5641_v24, %v5642_v50 }
 0x3de   : > { %v5637_v27 = vrot.slane %v5636_v61, 2  ;;  %5734 = vst.msk [vmem:[%s8412_s29 + $0x4] sm:$0xf] %vm5732_vm5, %v5721_v1  ;;  %v5624_v23 = vmax.f32 %v5622_v26, %v5623_v49  ;;  %v5354_v33 = vrot.slane %v5340_v53, %v8236_v51  ;;  %v5355_v52 = vcombine.high %v5347_v20, %v5347_v20 }
 0x3df   : > { %v5564_v11 = vsel %vm5423_vm0, %v5347_v20, -inf  ;;  %v5631_v29 = vmax.f32 %v5629_v13, %v5630_v5  ;;  %v5644_v35 = vrot.slane %v5643_v44, 2  ;;  %v5694_v17 = vsel %vm5648_vm1, %v8394_v30, -inf }
 0x3e0   : > { %v5638_v55 = vmax.f32 %v5636_v61, %v5637_v27  ;;  %v5565_v9 = vrot.slane %v5564_v11, 4  ;;  %v5625_v19 = vrot.slane %v5624_v23, 1  ;;  %v5356_v7 = vcombine.high %v5354_v33, %v5354_v33 }
 0x3e1   : > { %v5571_v47 = vsel %vm5423_vm0, %v5355_v52, -inf  ;;  %v5578_v56 = vsel %vm5423_vm0, %v5354_v33, -inf  ;;  %v5632_v58 = vrot.slane %v5631_v29, 1  ;;  %v5645_v0 = vmax.f32 %v5643_v44, %v5644_v35 }
 0x3e2   : > { %v5639_v46 = vrot.slane %v5638_v55, 1  ;;  %v5566_v12 = vmax.f32 %v5564_v11, %v5565_v9  ;;  %v5626_v28 = vmax.f32 %v5624_v23, %v5625_v19  ;;  %v5572_v38 = vrot.slane %v5571_v47, 4 }
 0x3e3   : > { %v5579_v51 = vrot.slane %v5578_v56, 4  ;;  %v5585_v40 = vsel %vm5423_vm0, %v5356_v7, -inf  ;;  %v5633_v4 = vmax.f32 %v5631_v29, %v5632_v58  ;;  %v5646_v63 = vrot.slane %v5645_v0, 1 }
 0x3e4   : > { %v5640_v16 = vmax.f32 %v5638_v55, %v5639_v46  ;;  %v5567_v37 = vrot.slane %v5566_v12, 2  ;;  %v5686_v10 = vsel %vm5648_vm1, %v5626_v28, -inf  ;;  %v5573_v60 = vmax.f32 %v5571_v47, %v5572_v38 }
 0x3e5   : > { %v5580_v59 = vmax.f32 %v5578_v56, %v5579_v51  ;;  %v5586_v34 = vrot.slane %v5585_v40, 4  ;;  %v5647_v32 = vmax.f32 %v5645_v0, %v5646_v63  ;;  %v5687_v18 = vmax.f32 %v8389_v25, %v5686_v10 }
 0x3e6   : > { %v5689_v3 = vsel %vm5648_vm1, %v5633_v4, -inf  ;;  %v5692_v8 = vsel %vm5648_vm1, %v5640_v16, -inf  ;;  %v5568_v57 = vmax.f32 %v5566_v12, %v5567_v37  ;;  %v5574_v41 = vrot.slane %v5573_v60, 2 }
 0x3e7   : > { %v5690_v54 = vmax.f32 %v8397_v14, %v5689_v3  ;;  %v5693_v45 = vmax.f32 %v8402_v31, %v5692_v8  ;;  %v5695_v39 = vsel %vm5648_vm1, %v5647_v32, -inf  ;;  %v5581_v21 = vrot.slane %v5580_v59, 2 }
 0x3e8   : > { %v5587_v36 = vmax.f32 %v5585_v40, %v5586_v34  ;;  %v5696_v26 = vmax.f32 %v5694_v17, %v5695_v39  ;;  %v5569_v24 = vrot.slane %v5568_v57, 1  ;;  %v5575_v2 = vmax.f32 %v5573_v60, %v5574_v41 }
 0x3e9   : > { %v5725_v25 = vsel %vm5713_vm2, %v5690_v54, %v5687_v18  ;;  %v5562_v62 = vrot.slane %v8418_v22, 1  ;;  %v5582_v31 = vmax.f32 %v5580_v59, %v5581_v21  ;;  %v5549_v30 = vmax.f32 %v8385_v43, %v5548_v48 }
 0x3ea   : > { %v5726_v14 = vsel %vm5715_vm3, %v5693_v45, %v5725_v25  ;;  %v5588_v13 = vrot.slane %v5587_v36, 2  ;;  %v5570_v61 = vmax.f32 %v5568_v57, %v5569_v24  ;;  %v5576_v50 = vrot.slane %v5575_v2, 1 }
 0x3eb   : > { %v5727_v49 = vsel %vm5717_vm4, %v5696_v26, %v5726_v14  ;;  %v5556_v53 = vmax.f32 %v8391_v42, %v5555_v6  ;;  %v5583_v20 = vrot.slane %v5582_v31, 1  ;;  %v5673_v5 = vsel %vm5648_vm1, %v8406_v15, -inf }
 0x3ec   : > { %v5589_v1 = vmax.f32 %v5587_v36, %v5588_v13  ;;  %5736 = vst.msk [vmem:[%s8412_s29 + $0xc] sm:$0xf] %vm5732_vm5, %v5727_v49  ;;  %v5577_v27 = vmax.f32 %v5575_v2, %v5576_v50  ;;  %v5674_v43 = vsel %vm5648_vm1, %v5570_v61, -inf  ;;  %v5563_v48 = vmax.f32 %v8418_v22, %v5562_v62 }
 0x3ed   : > { %v5584_v44 = vmax.f32 %v5582_v31, %v5583_v20  ;;  %v5675_v33 = vmax.f32 %v5673_v5, %v5674_v43  ;;  %v5676_v52 = vsel %vm5648_vm1, %v5549_v30, -inf  ;;  %v5679_v6 = vsel %vm5648_vm1, %v5556_v53, -inf }
 0x3ee   : > { %v5590_v23 = vrot.slane %v5589_v1, 1  ;;  %v5677_v42 = vsel %vm5648_vm1, %v5577_v27, -inf  ;;  %v5682_v22 = vsel %vm5648_vm1, %v5563_v48, -inf }
 0x3ef   : > { %v5678_v29 = vmax.f32 %v5676_v52, %v5677_v42  ;;  %v5680_v15 = vsel %vm5648_vm1, %v5584_v44, -inf }
 0x3f0   : > { %v5591_v11 = vmax.f32 %v5589_v1, %v5590_v23  ;;  %v5681_v55 = vmax.f32 %v5679_v6, %v5680_v15 }
 0x3f1   : > { %v5722_v9 = vsel %vm5713_vm2, %v5678_v29, %v5675_v33 }
 0x3f2   : > { %v5683_v35 = vsel %vm5648_vm1, %v5591_v11, -inf  ;;  %v5723_v7 = vsel %vm5715_vm3, %v5681_v55, %v5722_v9 }
 0x3f3   : > { %v5684_v19 = vmax.f32 %v5682_v22, %v5683_v35 }
 0x3f5   : > { %v5724_v47 = vsel %vm5717_vm4, %v5684_v19, %v5723_v7 }
 0x3f6   : > { %5735 = vst.msk [vmem:[%s8412_s29 + $0x8] sm:$0xf] %vm5732_vm5, %v5724_v47 }
 0x3f7   : > { %6794 = shalt.err (!%p6791_p3)
}
 0x3f8   : > { %s6795_s20 = scalar_lea.hbm %s8465_s15, 256  ;;  %s6799_s23 = scalar_lea.hbm %s8521_s7, 512 }
 0x3f9   : > { %p6796_p4 = scmp.ne.s32.totalorder %s8465_s15, %s6795_s20  ;;  %p6800_p9 = scmp.lt.s32.totalorder %s8465_s15, %s8521_s7 }
 0x3fa   : > { %p6801_p10 = scmp.lt.s32.totalorder %s6799_s23, %s6795_s20 }
 0x3fb   : > { %p6797_p7 = pnand %p6796_p4, %p6926_p5 }
 0x3fc   : > { %p6802_p11 = por %p6801_p10, %p6800_p9 }
 0x3fd   : > { %p6798_p8 = pneg %p6797_p7 }
 0x3ff   : > { %p6803_p12 = pnand %p6802_p11, %p6798_p8 }
 0x401   : > { %6806 = shalt.err (!%p6803_p12)
}
 0x402   : > { %s6846_s13 = smov 64   ;;  %s6847_s14 = smov 4  }
 0x403   : > { %6672 = dma.vmem_to_hbm [thread:$0]  (%p6926_p5), %s8467_s9, 256, %s8465_s15, %s8474_s28, %s6846_s13, %s6846_s13, %s6847_s14  }
 0x404 PF: > { %p6678_p13 = scmp.ge.s32.totalorder %s6841_s27, 2  ;;  %s5766_s16 = sand.u32 1, %s6829_s24  }
 0x405   : > { %s5767_s17 = scalar_lea.sflag [#allocation5], %s5766_s16 }
 0x406   : > { %p6675_p0 = pnand %p6678_p13, %p6930_p6 }
 0x408   : > { %p6676_p1 = pneg %p6675_p0 }
 0x40a   : > { %6824 = dma.done.wait (%p6676_p1), %s5767_s17, 256  }
 0x40b   : > { %6826 = vsyncadd (%p6676_p1), %s5767_s17, 4294967040  ;;  %p17_p2 = scmp.ge.s32.totalorder %s6913_s30, 4   ;;  %s8562_s24 = smov %s6833_s25 }
 0x40c   : > { %s8563_s25 = smov %s6837_s26  ;;  %s8564_s26 = smov %s6924_s10 }
 0x40d   : > { %s8565_s27 = smov %s6913_s30  ;;  %19 = sbr.rel (!%p17_p2) target bundleno = 3 (0x3), region = 118 }
 0x412   :  { %5772 = vsyncpa [#allocation5], 1 }
 0x413   :  { %5774 = vsyncpa [#allocation5 + $0x1], 1 }

</bundles_post_ra>
